<compile_context>
chip_gen: v7x
topology: tpu7x:2x2x1
jax: 0.10.0
libtpu: 0.0.40
codegen_flags: <defaults>
</compile_context>

<pallas_src>
import functools

import numpy as np
import jax
import jax.numpy as jnp
from jax.experimental import pallas as pl
from jax.experimental.pallas import tpu as pltpu

_SUBLANE_ALIGN = 16  # bf16 packs 16 rows per (16, 128) vreg tile


def _round_up(x, m):
    return (x + m - 1) // m * m


def _make_tap_masks(H, W):
    """(9, H*W) f32 masks: 1 where 3x3 tap (kh, kw) reads an in-bounds input
    pixel for output pixel p = h*W + w, else 0 (implements the conv's zero
    padding inside the kernel)."""
    HW = H * W
    h = np.arange(HW) // W
    w = np.arange(HW) % W
    m = np.zeros((9, HW), np.float32)
    for kh in range(3):
        for kw in range(3):
            dh, dw = kh - 1, kw - 1
            ok = (h + dh >= 0) & (h + dh < H) & (w + dw >= 0) & (w + dw < W)
            m[kh * 3 + kw] = ok.astype(np.float32)
    return jnp.asarray(m)


def _prep_weight(w, group_sizes, group_sizes_pad):
    """Reorder a torch conv weight (Cout, Cin, 3, 3) into the matmul matrix
    (Cout, 9*sum(group_sizes_pad)) whose K columns match the in-kernel im2col
    row layout: per input group j, columns ordered (tap, padded channel) with
    tap = kh*3 + kw; padded channels get zero columns."""
    cout = w.shape[0]
    parts = []
    start = 0
    for cj, cjp in zip(group_sizes, group_sizes_pad):
        blk = w[:, start:start + cj, :, :]
        start += cj
        if cjp > cj:
            blk = jnp.pad(blk, ((0, 0), (0, cjp - cj), (0, 0), (0, 0)))
        blk = jnp.transpose(blk, (0, 2, 3, 1)).reshape(cout, 9 * cjp)
        parts.append(blk)
    return jnp.concatenate(parts, axis=1)


def _drb_kernel(x_ref, masks_ref, w0, w1, w2, w3, w4,
                b0, b1, b2, b3, b4, o_ref, col_ref, *,
                H, W, c_in, group_pad, growth, neg_slope, residual_beta):
    """Fused DenseResidualBlock for one batch element.

    x_ref     : (1, c_in, H*W)                    f32   NCHW-flat input
    masks_ref : (9, H*W)                          f32   per-tap boundary masks
    w{i}      : (Cout_i, 9*sum(group_pad[:i+1]))  bf16  reordered conv weights
    b{i}      : (Cout_i, 1)                       f32
    o_ref     : (1, c_in, H*W)                    f32
    col_ref   : (9*sum(group_pad), H*W)           bf16  shared im2col scratch
    """
    HW = H * W
    w_refs = (w0, w1, w2, w3, w4)
    b_refs = (b0, b1, b2, b3, b4)

    def write_group_taps(feat, row_base):
        # feat: (Cjp, HW) f32. Scatter its 9 spatially shifted copies (one per
        # 3x3 tap) into the bf16 im2col scratch at rows [row_base+t*Cjp, ...).
        cj = feat.shape[0]
        for kh in range(3):
            for kw in range(3):
                dh, dw = kh - 1, kw - 1
                t = kh * 3 + kw
                shift = (-(dh * W + dw)) % HW          # static lane rotation
                tap = feat if shift == 0 else pltpu.roll(feat, shift, axis=1)
                if not (dh == 0 and dw == 0):
                    tap = tap * masks_ref[t:t + 1, :]  # zero the padded halo
                col_ref[row_base + t * cj:row_base + (t + 1) * cj, :] = (
                    tap.astype(col_ref.dtype))         # cast f32->bf16 once

    x = x_ref[0]                                       # (c_in, HW) f32
    c0p = group_pad[0]
    feat0 = x
    if c0p > c_in:                                     # sublane-align group 0
        feat0 = jnp.concatenate(
            [x, jnp.zeros((c0p - c_in, HW), x.dtype)], axis=0)
    write_group_taps(feat0, 0)

    row_base = 9 * c0p
    k_rows = 9 * c0p
    out = None
    for i in range(5):                                 # the 5 dense ConvBlocks
        slab = col_ref[0:k_rows, :]                    # (K, HW) bf16, no copy/cast
        acc = jnp.dot(w_refs[i][...], slab,            # bf16 MXU matmul,
                      preferred_element_type=jnp.float32)   # f32 accumulation
        acc = acc + b_refs[i][...]                     # (Cout_i,1) broadcast
        if i < 4:
            acc = jnp.where(acc >= 0, acc, neg_slope * acc)  # LeakyReLU(0.2)
            gp = group_pad[i + 1]
            feat = acc
            if gp > growth:                            # sublane-align growth grp
                feat = jnp.concatenate(
                    [acc, jnp.zeros((gp - growth, HW), acc.dtype)], axis=0)
            write_group_taps(feat, row_base)           # dense "concat"
            row_base += 9 * gp
            k_rows += 9 * gp
        out = acc                                      # (Cout_i, HW)

    o_ref[0] = (residual_beta * out + x).astype(o_ref.dtype)


def dense_residual_block(x_nchw, weights, biases, *, growth=32,
                         residual_beta=0.2, neg_slope=0.2):
    """DenseResidualBlock.forward.

    x_nchw  : (N, C_in, H, W)
    weights : list of 5 arrays, weights[i] = (Cout_i, C_in + growth*i, 3, 3)
    biases  : list of 5 arrays, biases[i]  = (Cout_i,)
              with Cout_i = growth for i < 4 and C_in for i == 4.
    """
    N, c_in, H, W = x_nchw.shape
    HW = H * W
    group_sizes = [c_in] + [growth] * 4
    group_pad = ([_round_up(c_in, _SUBLANE_ALIGN)]
                 + [_round_up(growth, _SUBLANE_ALIGN)] * 4)
    c_total_pad = sum(group_pad)

    # NCHW-flat: pure reshape, no transpose / pad pass through HBM.
    x_flat = x_nchw.reshape(N, c_in, HW).astype(jnp.float32)
    masks = _make_tap_masks(H, W)

    wmats, bvecs = [], []
    for i in range(5):
        assert weights[i].shape[2:] == (3, 3), "DenseResidualBlock uses 3x3 convs"
        wmats.append(_prep_weight(weights[i], group_sizes[:i + 1],
                                  group_pad[:i + 1]).astype(jnp.bfloat16))
        bvecs.append(biases[i].reshape(-1, 1).astype(jnp.float32))

    kernel = functools.partial(
        _drb_kernel, H=H, W=W, c_in=c_in, group_pad=tuple(group_pad),
        growth=growth, neg_slope=neg_slope, residual_beta=residual_beta)

    in_specs = [pl.BlockSpec((1, c_in, HW), lambda n: (n, 0, 0)),
                pl.BlockSpec((9, HW), lambda n: (0, 0))]
    for wm in wmats:
        in_specs.append(pl.BlockSpec(wm.shape, lambda n: (0, 0)))
    for bv in bvecs:
        in_specs.append(pl.BlockSpec(bv.shape, lambda n: (0, 0)))

    out_flat = pl.pallas_call(
        kernel,
        out_shape=jax.ShapeDtypeStruct((N, c_in, HW), x_nchw.dtype),
        grid_spec=pltpu.PrefetchScalarGridSpec(
            num_scalar_prefetch=0,
            grid=(N,),
            in_specs=in_specs,
            out_specs=pl.BlockSpec((1, c_in, HW), lambda n: (n, 0, 0)),
            scratch_shapes=[pltpu.VMEM((9 * c_total_pad, HW), jnp.bfloat16)],
        ),
        compiler_params=pltpu.CompilerParams(
            dimension_semantics=("parallel",),
        ),
    )(x_flat, masks, *wmats, *bvecs)

    return out_flat.reshape(N, c_in, H, W)


def _reference(x, weights, biases, residual_beta=0.2, neg_slope=0.2):
    """Pure-JAX (f32, highest precision) reference of the PyTorch forward."""
    new_inputs = x
    out = None
    for i in range(5):
        out = jax.lax.conv_general_dilated(
            new_inputs, weights[i], window_strides=(1, 1),
            padding=((1, 1), (1, 1)),
            dimension_numbers=("NCHW", "OIHW", "NCHW"),
            precision=jax.lax.Precision.HIGHEST)
        out = out + biases[i][None, :, None, None]
        if i < 4:
            out = jnp.where(out >= 0, out, neg_slope * out)
        new_inputs = jnp.concatenate([new_inputs, out], axis=1)
    return residual_beta * out + x


if __name__ == "__main__":
    key = jax.random.PRNGKey(0)
    keys = jax.random.split(key, 11)

    # DenseResidualBlock(in_channels=4, channels=32, residual_beta=0.2)
    N, C0, H, W = 2, 4, 16, 16
    growth = 32

    x = jax.random.normal(keys[0], (N, C0, H, W), jnp.float32)

    weights, biases = [], []
    for i in range(5):
        cin = C0 + growth * i
        cout = growth if i < 4 else C0
        bound = 1.0 / float(np.sqrt(cin * 9))      # kaiming-uniform-like init
        weights.append(jax.random.uniform(keys[1 + 2 * i], (cout, cin, 3, 3),
                                          jnp.float32, -bound, bound))
        biases.append(jax.random.uniform(keys[2 + 2 * i], (cout,),
                                         jnp.float32, -bound, bound))

    out = dense_residual_block(x, weights, biases, growth=growth,
                               residual_beta=0.2, neg_slope=0.2)
    out = jax.block_until_ready(out)

    ref = _reference(x, weights, biases, residual_beta=0.2, neg_slope=0.2)
    assert out.shape == ref.shape == (N, C0, H, W)
    max_err = float(jnp.max(jnp.abs(out - ref)))
    # bf16 MXU inputs with f32 accumulation -> relaxed tolerance.
    assert jnp.allclose(out, ref, atol=2e-2, rtol=2e-2), max_err
    print("KERNEL_OK")
</pallas_src>

<mosaic_0001>
module attributes {stable_mosaic.version = 11 : i64} {
  func.func @_drb_kernel(%arg0: i32, %arg1: memref<1x4x256xf32, #tpu.memory_space<vmem>>, %arg2: memref<9x256xf32, #tpu.memory_space<vmem>>, %arg3: memref<32x144xbf16, #tpu.memory_space<vmem>>, %arg4: memref<32x432xbf16, #tpu.memory_space<vmem>>, %arg5: memref<32x720xbf16, #tpu.memory_space<vmem>>, %arg6: memref<32x1008xbf16, #tpu.memory_space<vmem>>, %arg7: memref<4x1296xbf16, #tpu.memory_space<vmem>>, %arg8: memref<32x1xf32, #tpu.memory_space<vmem>>, %arg9: memref<32x1xf32, #tpu.memory_space<vmem>>, %arg10: memref<32x1xf32, #tpu.memory_space<vmem>>, %arg11: memref<32x1xf32, #tpu.memory_space<vmem>>, %arg12: memref<4x1xf32, #tpu.memory_space<vmem>>, %arg13: memref<1x4x256xf32, #tpu.memory_space<vmem>>, %arg14: memref<1296x256xbf16, #tpu.memory_space<vmem>>) attributes {dimension_semantics = [#tpu.dimension_semantics<parallel>], iteration_bounds = array<i64: 2>, scalar_prefetch = 0 : i64, scratch_operands = 1 : i64, tpu.core_type = #tpu.core_type<tc>, window_params = [{transform_indices = @transform_0, window_bounds = array<i64: 1, 4, 256>}, {pipeline_mode = #tpu.pipeline_mode<synchronous>, transform_indices = @transform_1, window_bounds = array<i64: 9, 256>}, {pipeline_mode = #tpu.pipeline_mode<synchronous>, transform_indices = @transform_2, window_bounds = array<i64: 32, 144>}, {pipeline_mode = #tpu.pipeline_mode<synchronous>, transform_indices = @transform_3, window_bounds = array<i64: 32, 432>}, {pipeline_mode = #tpu.pipeline_mode<synchronous>, transform_indices = @transform_4, window_bounds = array<i64: 32, 720>}, {pipeline_mode = #tpu.pipeline_mode<synchronous>, transform_indices = @transform_5, window_bounds = array<i64: 32, 1008>}, {pipeline_mode = #tpu.pipeline_mode<synchronous>, transform_indices = @transform_6, window_bounds = array<i64: 4, 1296>}, {pipeline_mode = #tpu.pipeline_mode<synchronous>, transform_indices = @transform_7, window_bounds = array<i64: 32, 1>}, {pipeline_mode = #tpu.pipeline_mode<synchronous>, transform_indices = @transform_8, window_bounds = array<i64: 32, 1>}, {pipeline_mode = #tpu.pipeline_mode<synchronous>, transform_indices = @transform_9, window_bounds = array<i64: 32, 1>}, {pipeline_mode = #tpu.pipeline_mode<synchronous>, transform_indices = @transform_10, window_bounds = array<i64: 32, 1>}, {pipeline_mode = #tpu.pipeline_mode<synchronous>, transform_indices = @transform_11, window_bounds = array<i64: 4, 1>}, {transform_indices = @transform_12, window_bounds = array<i64: 1, 4, 256>}]} {
    %c0 = arith.constant 0 : index
    %c0_0 = arith.constant 0 : index
    %c0_1 = arith.constant 0 : index
    %0 = vector.load %arg1[%c0, %c0_0, %c0_1] : memref<1x4x256xf32, #tpu.memory_space<vmem>>, vector<1x4x256xf32>
    %1 = vector.shape_cast %0 : vector<1x4x256xf32> to vector<4x256xf32>
    %cst = arith.constant 0.000000e+00 : f32
    %2 = vector.broadcast %cst : f32 to vector<12x256xf32>
    %3 = tpu.concatenate %1, %2 in 0 : vector<4x256xf32>, vector<12x256xf32> -> vector<16x256xf32>
    %c17_i32 = arith.constant 17 : i32
    %4 = tpu.dynamic_rotate %3 by %c17_i32 dim 1 : vector<16x256xf32>, i32 -> vector<16x256xf32>
    %c0_2 = arith.constant 0 : index
    %c0_3 = arith.constant 0 : index
    %5 = vector.load %arg2[%c0_2, %c0_3] : memref<9x256xf32, #tpu.memory_space<vmem>>, vector<1x256xf32>
    %6 = vector.broadcast %5 : vector<1x256xf32> to vector<16x256xf32>
    %7 = arith.mulf %4, %6 : vector<16x256xf32>
    %8 = arith.truncf %7 : vector<16x256xf32> to vector<16x256xbf16>
    %c0_4 = arith.constant 0 : index
    %c0_5 = arith.constant 0 : index
    %9 = vector.load %arg14[%c0_4, %c0_5] : memref<1296x256xbf16, #tpu.memory_space<vmem>>, vector<16x256xbf16>
    tpu.vector_store %arg14[%c0_4, %c0_5], %8 {strides = array<i32>} : memref<1296x256xbf16, #tpu.memory_space<vmem>>, vector<16x256xbf16>,
    %c16_i32 = arith.constant 16 : i32
    %10 = tpu.dynamic_rotate %3 by %c16_i32 dim 1 : vector<16x256xf32>, i32 -> vector<16x256xf32>
    %c1 = arith.constant 1 : index
    %c0_6 = arith.constant 0 : index
    %11 = vector.load %arg2[%c1, %c0_6] : memref<9x256xf32, #tpu.memory_space<vmem>>, vector<1x256xf32>
    %12 = vector.broadcast %11 : vector<1x256xf32> to vector<16x256xf32>
    %13 = arith.mulf %10, %12 : vector<16x256xf32>
    %14 = arith.truncf %13 : vector<16x256xf32> to vector<16x256xbf16>
    %c16 = arith.constant 16 : index
    %c0_7 = arith.constant 0 : index
    %15 = vector.load %arg14[%c16, %c0_7] : memref<1296x256xbf16, #tpu.memory_space<vmem>>, vector<16x256xbf16>
    tpu.vector_store %arg14[%c16, %c0_7], %14 {strides = array<i32>} : memref<1296x256xbf16, #tpu.memory_space<vmem>>, vector<16x256xbf16>,
    %c15_i32 = arith.constant 15 : i32
    %16 = tpu.dynamic_rotate %3 by %c15_i32 dim 1 : vector<16x256xf32>, i32 -> vector<16x256xf32>
    %c2 = arith.constant 2 : index
    %c0_8 = arith.constant 0 : index
    %17 = vector.load %arg2[%c2, %c0_8] : memref<9x256xf32, #tpu.memory_space<vmem>>, vector<1x256xf32>
    %18 = vector.broadcast %17 : vector<1x256xf32> to vector<16x256xf32>
    %19 = arith.mulf %16, %18 : vector<16x256xf32>
    %20 = arith.truncf %19 : vector<16x256xf32> to vector<16x256xbf16>
    %c32 = arith.constant 32 : index
    %c0_9 = arith.constant 0 : index
    %21 = vector.load %arg14[%c32, %c0_9] : memref<1296x256xbf16, #tpu.memory_space<vmem>>, vector<16x256xbf16>
    tpu.vector_store %arg14[%c32, %c0_9], %20 {strides = array<i32>} : memref<1296x256xbf16, #tpu.memory_space<vmem>>, vector<16x256xbf16>,
    %c1_i32 = arith.constant 1 : i32
    %22 = tpu.dynamic_rotate %3 by %c1_i32 dim 1 : vector<16x256xf32>, i32 -> vector<16x256xf32>
    %c3 = arith.constant 3 : index
    %c0_10 = arith.constant 0 : index
    %23 = vector.load %arg2[%c3, %c0_10] : memref<9x256xf32, #tpu.memory_space<vmem>>, vector<1x256xf32>
    %24 = vector.broadcast %23 : vector<1x256xf32> to vector<16x256xf32>
    %25 = arith.mulf %22, %24 : vector<16x256xf32>
    %26 = arith.truncf %25 : vector<16x256xf32> to vector<16x256xbf16>
    %c48 = arith.constant 48 : index
    %c0_11 = arith.constant 0 : index
    %27 = vector.load %arg14[%c48, %c0_11] : memref<1296x256xbf16, #tpu.memory_space<vmem>>, vector<16x256xbf16>
    tpu.vector_store %arg14[%c48, %c0_11], %26 {strides = array<i32>} : memref<1296x256xbf16, #tpu.memory_space<vmem>>, vector<16x256xbf16>,
    %28 = arith.truncf %3 : vector<16x256xf32> to vector<16x256xbf16>
    %c64 = arith.constant 64 : index
    %c0_12 = arith.constant 0 : index
    %29 = vector.load %arg14[%c64, %c0_12] : memref<1296x256xbf16, #tpu.memory_space<vmem>>, vector<16x256xbf16>
    tpu.vector_store %arg14[%c64, %c0_12], %28 {strides = array<i32>} : memref<1296x256xbf16, #tpu.memory_space<vmem>>, vector<16x256xbf16>,
    %c255_i32 = arith.constant 255 : i32
    %30 = tpu.dynamic_rotate %3 by %c255_i32 dim 1 : vector<16x256xf32>, i32 -> vector<16x256xf32>
    %c5 = arith.constant 5 : index
    %c0_13 = arith.constant 0 : index
    %31 = vector.load %arg2[%c5, %c0_13] : memref<9x256xf32, #tpu.memory_space<vmem>>, vector<1x256xf32>
    %32 = vector.broadcast %31 : vector<1x256xf32> to vector<16x256xf32>
    %33 = arith.mulf %30, %32 : vector<16x256xf32>
    %34 = arith.truncf %33 : vector<16x256xf32> to vector<16x256xbf16>
    %c80 = arith.constant 80 : index
    %c0_14 = arith.constant 0 : index
    %35 = vector.load %arg14[%c80, %c0_14] : memref<1296x256xbf16, #tpu.memory_space<vmem>>, vector<16x256xbf16>
    tpu.vector_store %arg14[%c80, %c0_14], %34 {strides = array<i32>} : memref<1296x256xbf16, #tpu.memory_space<vmem>>, vector<16x256xbf16>,
    %c241_i32 = arith.constant 241 : i32
    %36 = tpu.dynamic_rotate %3 by %c241_i32 dim 1 : vector<16x256xf32>, i32 -> vector<16x256xf32>
    %c6 = arith.constant 6 : index
    %c0_15 = arith.constant 0 : index
    %37 = vector.load %arg2[%c6, %c0_15] : memref<9x256xf32, #tpu.memory_space<vmem>>, vector<1x256xf32>
    %38 = vector.broadcast %37 : vector<1x256xf32> to vector<16x256xf32>
    %39 = arith.mulf %36, %38 : vector<16x256xf32>
    %40 = arith.truncf %39 : vector<16x256xf32> to vector<16x256xbf16>
    %c96 = arith.constant 96 : index
    %c0_16 = arith.constant 0 : index
    %41 = vector.load %arg14[%c96, %c0_16] : memref<1296x256xbf16, #tpu.memory_space<vmem>>, vector<16x256xbf16>
    tpu.vector_store %arg14[%c96, %c0_16], %40 {strides = array<i32>} : memref<1296x256xbf16, #tpu.memory_space<vmem>>, vector<16x256xbf16>,
    %c240_i32 = arith.constant 240 : i32
    %42 = tpu.dynamic_rotate %3 by %c240_i32 dim 1 : vector<16x256xf32>, i32 -> vector<16x256xf32>
    %c7 = arith.constant 7 : index
    %c0_17 = arith.constant 0 : index
    %43 = vector.load %arg2[%c7, %c0_17] : memref<9x256xf32, #tpu.memory_space<vmem>>, vector<1x256xf32>
    %44 = vector.broadcast %43 : vector<1x256xf32> to vector<16x256xf32>
    %45 = arith.mulf %42, %44 : vector<16x256xf32>
    %46 = arith.truncf %45 : vector<16x256xf32> to vector<16x256xbf16>
    %c112 = arith.constant 112 : index
    %c0_18 = arith.constant 0 : index
    %47 = vector.load %arg14[%c112, %c0_18] : memref<1296x256xbf16, #tpu.memory_space<vmem>>, vector<16x256xbf16>
    tpu.vector_store %arg14[%c112, %c0_18], %46 {strides = array<i32>} : memref<1296x256xbf16, #tpu.memory_space<vmem>>, vector<16x256xbf16>,
    %c239_i32 = arith.constant 239 : i32
    %48 = tpu.dynamic_rotate %3 by %c239_i32 dim 1 : vector<16x256xf32>, i32 -> vector<16x256xf32>
    %c8 = arith.constant 8 : index
    %c0_19 = arith.constant 0 : index
    %49 = vector.load %arg2[%c8, %c0_19] : memref<9x256xf32, #tpu.memory_space<vmem>>, vector<1x256xf32>
    %50 = vector.broadcast %49 : vector<1x256xf32> to vector<16x256xf32>
    %51 = arith.mulf %48, %50 : vector<16x256xf32>
    %52 = arith.truncf %51 : vector<16x256xf32> to vector<16x256xbf16>
    %c128 = arith.constant 128 : index
    %c0_20 = arith.constant 0 : index
    %53 = vector.load %arg14[%c128, %c0_20] : memref<1296x256xbf16, #tpu.memory_space<vmem>>, vector<16x256xbf16>
    tpu.vector_store %arg14[%c128, %c0_20], %52 {strides = array<i32>} : memref<1296x256xbf16, #tpu.memory_space<vmem>>, vector<16x256xbf16>,
    %c0_21 = arith.constant 0 : index
    %c0_22 = arith.constant 0 : index
    %54 = vector.load %arg14[%c0_21, %c0_22] : memref<1296x256xbf16, #tpu.memory_space<vmem>>, vector<144x256xbf16>
    %c0_23 = arith.constant 0 : index
    %c0_24 = arith.constant 0 : index
    %55 = vector.load %arg3[%c0_23, %c0_24] : memref<32x144xbf16, #tpu.memory_space<vmem>>, vector<32x144xbf16>
    %cst_25 = arith.constant dense<0.000000e+00> : vector<32x256xf32>
    %56 = tpu.matmul %55, %54, %cst_25 {dimension_numbers = #tpu.dot_dimension_numbers<[1], [0], [0], [1], [0, 0, 1, 1], [], []>} : vector<32x144xbf16>, vector<144x256xbf16>, vector<32x256xf32> -> vector<32x256xf32>
    %c0_26 = arith.constant 0 : index
    %c0_27 = arith.constant 0 : index
    %57 = vector.load %arg8[%c0_26, %c0_27] : memref<32x1xf32, #tpu.memory_space<vmem>>, vector<32x1xf32>
    %58 = vector.broadcast %57 : vector<32x1xf32> to vector<32x256xf32>
    %59 = arith.addf %56, %58 : vector<32x256xf32>
    %cst_28 = arith.constant 0.000000e+00 : f32
    %60 = vector.broadcast %cst_28 : f32 to vector<32x256xf32>
    %61 = arith.cmpf oge, %59, %60 : vector<32x256xf32>
    %cst_29 = arith.constant 2.000000e-01 : f32
    %62 = vector.broadcast %cst_29 : f32 to vector<32x256xf32>
    %63 = arith.mulf %62, %59 : vector<32x256xf32>
    %64 = arith.select %61, %59, %63 : vector<32x256xi1>, vector<32x256xf32>
    %c17_i32_30 = arith.constant 17 : i32
    %65 = tpu.dynamic_rotate %64 by %c17_i32_30 dim 1 : vector<32x256xf32>, i32 -> vector<32x256xf32>
    %c0_31 = arith.constant 0 : index
    %c0_32 = arith.constant 0 : index
    %66 = vector.load %arg2[%c0_31, %c0_32] : memref<9x256xf32, #tpu.memory_space<vmem>>, vector<1x256xf32>
    %67 = vector.broadcast %66 : vector<1x256xf32> to vector<32x256xf32>
    %68 = arith.mulf %65, %67 : vector<32x256xf32>
    %69 = arith.truncf %68 : vector<32x256xf32> to vector<32x256xbf16>
    %c144 = arith.constant 144 : index
    %c0_33 = arith.constant 0 : index
    %70 = vector.load %arg14[%c144, %c0_33] : memref<1296x256xbf16, #tpu.memory_space<vmem>>, vector<32x256xbf16>
    tpu.vector_store %arg14[%c144, %c0_33], %69 {strides = array<i32>} : memref<1296x256xbf16, #tpu.memory_space<vmem>>, vector<32x256xbf16>,
    %c16_i32_34 = arith.constant 16 : i32
    %71 = tpu.dynamic_rotate %64 by %c16_i32_34 dim 1 : vector<32x256xf32>, i32 -> vector<32x256xf32>
    %c1_35 = arith.constant 1 : index
    %c0_36 = arith.constant 0 : index
    %72 = vector.load %arg2[%c1_35, %c0_36] : memref<9x256xf32, #tpu.memory_space<vmem>>, vector<1x256xf32>
    %73 = vector.broadcast %72 : vector<1x256xf32> to vector<32x256xf32>
    %74 = arith.mulf %71, %73 : vector<32x256xf32>
    %75 = arith.truncf %74 : vector<32x256xf32> to vector<32x256xbf16>
    %c176 = arith.constant 176 : index
    %c0_37 = arith.constant 0 : index
    %76 = vector.load %arg14[%c176, %c0_37] : memref<1296x256xbf16, #tpu.memory_space<vmem>>, vector<32x256xbf16>
    tpu.vector_store %arg14[%c176, %c0_37], %75 {strides = array<i32>} : memref<1296x256xbf16, #tpu.memory_space<vmem>>, vector<32x256xbf16>,
    %c15_i32_38 = arith.constant 15 : i32
    %77 = tpu.dynamic_rotate %64 by %c15_i32_38 dim 1 : vector<32x256xf32>, i32 -> vector<32x256xf32>
    %c2_39 = arith.constant 2 : index
    %c0_40 = arith.constant 0 : index
    %78 = vector.load %arg2[%c2_39, %c0_40] : memref<9x256xf32, #tpu.memory_space<vmem>>, vector<1x256xf32>
    %79 = vector.broadcast %78 : vector<1x256xf32> to vector<32x256xf32>
    %80 = arith.mulf %77, %79 : vector<32x256xf32>
    %81 = arith.truncf %80 : vector<32x256xf32> to vector<32x256xbf16>
    %c208 = arith.constant 208 : index
    %c0_41 = arith.constant 0 : index
    %82 = vector.load %arg14[%c208, %c0_41] : memref<1296x256xbf16, #tpu.memory_space<vmem>>, vector<32x256xbf16>
    tpu.vector_store %arg14[%c208, %c0_41], %81 {strides = array<i32>} : memref<1296x256xbf16, #tpu.memory_space<vmem>>, vector<32x256xbf16>,
    %c1_i32_42 = arith.constant 1 : i32
    %83 = tpu.dynamic_rotate %64 by %c1_i32_42 dim 1 : vector<32x256xf32>, i32 -> vector<32x256xf32>
    %c3_43 = arith.constant 3 : index
    %c0_44 = arith.constant 0 : index
    %84 = vector.load %arg2[%c3_43, %c0_44] : memref<9x256xf32, #tpu.memory_space<vmem>>, vector<1x256xf32>
    %85 = vector.broadcast %84 : vector<1x256xf32> to vector<32x256xf32>
    %86 = arith.mulf %83, %85 : vector<32x256xf32>
    %87 = arith.truncf %86 : vector<32x256xf32> to vector<32x256xbf16>
    %c240 = arith.constant 240 : index
    %c0_45 = arith.constant 0 : index
    %88 = vector.load %arg14[%c240, %c0_45] : memref<1296x256xbf16, #tpu.memory_space<vmem>>, vector<32x256xbf16>
    tpu.vector_store %arg14[%c240, %c0_45], %87 {strides = array<i32>} : memref<1296x256xbf16, #tpu.memory_space<vmem>>, vector<32x256xbf16>,
    %89 = arith.truncf %64 : vector<32x256xf32> to vector<32x256xbf16>
    %c272 = arith.constant 272 : index
    %c0_46 = arith.constant 0 : index
    %90 = vector.load %arg14[%c272, %c0_46] : memref<1296x256xbf16, #tpu.memory_space<vmem>>, vector<32x256xbf16>
    tpu.vector_store %arg14[%c272, %c0_46], %89 {strides = array<i32>} : memref<1296x256xbf16, #tpu.memory_space<vmem>>, vector<32x256xbf16>,
    %c255_i32_47 = arith.constant 255 : i32
    %91 = tpu.dynamic_rotate %64 by %c255_i32_47 dim 1 : vector<32x256xf32>, i32 -> vector<32x256xf32>
    %c5_48 = arith.constant 5 : index
    %c0_49 = arith.constant 0 : index
    %92 = vector.load %arg2[%c5_48, %c0_49] : memref<9x256xf32, #tpu.memory_space<vmem>>, vector<1x256xf32>
    %93 = vector.broadcast %92 : vector<1x256xf32> to vector<32x256xf32>
    %94 = arith.mulf %91, %93 : vector<32x256xf32>
    %95 = arith.truncf %94 : vector<32x256xf32> to vector<32x256xbf16>
    %c304 = arith.constant 304 : index
    %c0_50 = arith.constant 0 : index
    %96 = vector.load %arg14[%c304, %c0_50] : memref<1296x256xbf16, #tpu.memory_space<vmem>>, vector<32x256xbf16>
    tpu.vector_store %arg14[%c304, %c0_50], %95 {strides = array<i32>} : memref<1296x256xbf16, #tpu.memory_space<vmem>>, vector<32x256xbf16>,
    %c241_i32_51 = arith.constant 241 : i32
    %97 = tpu.dynamic_rotate %64 by %c241_i32_51 dim 1 : vector<32x256xf32>, i32 -> vector<32x256xf32>
    %c6_52 = arith.constant 6 : index
    %c0_53 = arith.constant 0 : index
    %98 = vector.load %arg2[%c6_52, %c0_53] : memref<9x256xf32, #tpu.memory_space<vmem>>, vector<1x256xf32>
    %99 = vector.broadcast %98 : vector<1x256xf32> to vector<32x256xf32>
    %100 = arith.mulf %97, %99 : vector<32x256xf32>
    %101 = arith.truncf %100 : vector<32x256xf32> to vector<32x256xbf16>
    %c336 = arith.constant 336 : index
    %c0_54 = arith.constant 0 : index
    %102 = vector.load %arg14[%c336, %c0_54] : memref<1296x256xbf16, #tpu.memory_space<vmem>>, vector<32x256xbf16>
    tpu.vector_store %arg14[%c336, %c0_54], %101 {strides = array<i32>} : memref<1296x256xbf16, #tpu.memory_space<vmem>>, vector<32x256xbf16>,
    %c240_i32_55 = arith.constant 240 : i32
    %103 = tpu.dynamic_rotate %64 by %c240_i32_55 dim 1 : vector<32x256xf32>, i32 -> vector<32x256xf32>
    %c7_56 = arith.constant 7 : index
    %c0_57 = arith.constant 0 : index
    %104 = vector.load %arg2[%c7_56, %c0_57] : memref<9x256xf32, #tpu.memory_space<vmem>>, vector<1x256xf32>
    %105 = vector.broadcast %104 : vector<1x256xf32> to vector<32x256xf32>
    %106 = arith.mulf %103, %105 : vector<32x256xf32>
    %107 = arith.truncf %106 : vector<32x256xf32> to vector<32x256xbf16>
    %c368 = arith.constant 368 : index
    %c0_58 = arith.constant 0 : index
    %108 = vector.load %arg14[%c368, %c0_58] : memref<1296x256xbf16, #tpu.memory_space<vmem>>, vector<32x256xbf16>
    tpu.vector_store %arg14[%c368, %c0_58], %107 {strides = array<i32>} : memref<1296x256xbf16, #tpu.memory_space<vmem>>, vector<32x256xbf16>,
    %c239_i32_59 = arith.constant 239 : i32
    %109 = tpu.dynamic_rotate %64 by %c239_i32_59 dim 1 : vector<32x256xf32>, i32 -> vector<32x256xf32>
    %c8_60 = arith.constant 8 : index
    %c0_61 = arith.constant 0 : index
    %110 = vector.load %arg2[%c8_60, %c0_61] : memref<9x256xf32, #tpu.memory_space<vmem>>, vector<1x256xf32>
    %111 = vector.broadcast %110 : vector<1x256xf32> to vector<32x256xf32>
    %112 = arith.mulf %109, %111 : vector<32x256xf32>
    %113 = arith.truncf %112 : vector<32x256xf32> to vector<32x256xbf16>
    %c400 = arith.constant 400 : index
    %c0_62 = arith.constant 0 : index
    %114 = vector.load %arg14[%c400, %c0_62] : memref<1296x256xbf16, #tpu.memory_space<vmem>>, vector<32x256xbf16>
    tpu.vector_store %arg14[%c400, %c0_62], %113 {strides = array<i32>} : memref<1296x256xbf16, #tpu.memory_space<vmem>>, vector<32x256xbf16>,
    %c0_63 = arith.constant 0 : index
    %c0_64 = arith.constant 0 : index
    %115 = vector.load %arg14[%c0_63, %c0_64] : memref<1296x256xbf16, #tpu.memory_space<vmem>>, vector<432x256xbf16>
    %c0_65 = arith.constant 0 : index
    %c0_66 = arith.constant 0 : index
    %116 = vector.load %arg4[%c0_65, %c0_66] : memref<32x432xbf16, #tpu.memory_space<vmem>>, vector<32x432xbf16>
    %cst_67 = arith.constant dense<0.000000e+00> : vector<32x256xf32>
    %117 = tpu.matmul %116, %115, %cst_67 {dimension_numbers = #tpu.dot_dimension_numbers<[1], [0], [0], [1], [0, 0, 1, 1], [], []>} : vector<32x432xbf16>, vector<432x256xbf16>, vector<32x256xf32> -> vector<32x256xf32>
    %c0_68 = arith.constant 0 : index
    %c0_69 = arith.constant 0 : index
    %118 = vector.load %arg9[%c0_68, %c0_69] : memref<32x1xf32, #tpu.memory_space<vmem>>, vector<32x1xf32>
    %119 = vector.broadcast %118 : vector<32x1xf32> to vector<32x256xf32>
    %120 = arith.addf %117, %119 : vector<32x256xf32>
    %cst_70 = arith.constant 0.000000e+00 : f32
    %121 = vector.broadcast %cst_70 : f32 to vector<32x256xf32>
    %122 = arith.cmpf oge, %120, %121 : vector<32x256xf32>
    %cst_71 = arith.constant 2.000000e-01 : f32
    %123 = vector.broadcast %cst_71 : f32 to vector<32x256xf32>
    %124 = arith.mulf %123, %120 : vector<32x256xf32>
    %125 = arith.select %122, %120, %124 : vector<32x256xi1>, vector<32x256xf32>
    %c17_i32_72 = arith.constant 17 : i32
    %126 = tpu.dynamic_rotate %125 by %c17_i32_72 dim 1 : vector<32x256xf32>, i32 -> vector<32x256xf32>
    %c0_73 = arith.constant 0 : index
    %c0_74 = arith.constant 0 : index
    %127 = vector.load %arg2[%c0_73, %c0_74] : memref<9x256xf32, #tpu.memory_space<vmem>>, vector<1x256xf32>
    %128 = vector.broadcast %127 : vector<1x256xf32> to vector<32x256xf32>
    %129 = arith.mulf %126, %128 : vector<32x256xf32>
    %130 = arith.truncf %129 : vector<32x256xf32> to vector<32x256xbf16>
    %c432 = arith.constant 432 : index
    %c0_75 = arith.constant 0 : index
    %131 = vector.load %arg14[%c432, %c0_75] : memref<1296x256xbf16, #tpu.memory_space<vmem>>, vector<32x256xbf16>
    tpu.vector_store %arg14[%c432, %c0_75], %130 {strides = array<i32>} : memref<1296x256xbf16, #tpu.memory_space<vmem>>, vector<32x256xbf16>,
    %c16_i32_76 = arith.constant 16 : i32
    %132 = tpu.dynamic_rotate %125 by %c16_i32_76 dim 1 : vector<32x256xf32>, i32 -> vector<32x256xf32>
    %c1_77 = arith.constant 1 : index
    %c0_78 = arith.constant 0 : index
    %133 = vector.load %arg2[%c1_77, %c0_78] : memref<9x256xf32, #tpu.memory_space<vmem>>, vector<1x256xf32>
    %134 = vector.broadcast %133 : vector<1x256xf32> to vector<32x256xf32>
    %135 = arith.mulf %132, %134 : vector<32x256xf32>
    %136 = arith.truncf %135 : vector<32x256xf32> to vector<32x256xbf16>
    %c464 = arith.constant 464 : index
    %c0_79 = arith.constant 0 : index
    %137 = vector.load %arg14[%c464, %c0_79] : memref<1296x256xbf16, #tpu.memory_space<vmem>>, vector<32x256xbf16>
    tpu.vector_store %arg14[%c464, %c0_79], %136 {strides = array<i32>} : memref<1296x256xbf16, #tpu.memory_space<vmem>>, vector<32x256xbf16>,
    %c15_i32_80 = arith.constant 15 : i32
    %138 = tpu.dynamic_rotate %125 by %c15_i32_80 dim 1 : vector<32x256xf32>, i32 -> vector<32x256xf32>
    %c2_81 = arith.constant 2 : index
    %c0_82 = arith.constant 0 : index
    %139 = vector.load %arg2[%c2_81, %c0_82] : memref<9x256xf32, #tpu.memory_space<vmem>>, vector<1x256xf32>
    %140 = vector.broadcast %139 : vector<1x256xf32> to vector<32x256xf32>
    %141 = arith.mulf %138, %140 : vector<32x256xf32>
    %142 = arith.truncf %141 : vector<32x256xf32> to vector<32x256xbf16>
    %c496 = arith.constant 496 : index
    %c0_83 = arith.constant 0 : index
    %143 = vector.load %arg14[%c496, %c0_83] : memref<1296x256xbf16, #tpu.memory_space<vmem>>, vector<32x256xbf16>
    tpu.vector_store %arg14[%c496, %c0_83], %142 {strides = array<i32>} : memref<1296x256xbf16, #tpu.memory_space<vmem>>, vector<32x256xbf16>,
    %c1_i32_84 = arith.constant 1 : i32
    %144 = tpu.dynamic_rotate %125 by %c1_i32_84 dim 1 : vector<32x256xf32>, i32 -> vector<32x256xf32>
    %c3_85 = arith.constant 3 : index
    %c0_86 = arith.constant 0 : index
    %145 = vector.load %arg2[%c3_85, %c0_86] : memref<9x256xf32, #tpu.memory_space<vmem>>, vector<1x256xf32>
    %146 = vector.broadcast %145 : vector<1x256xf32> to vector<32x256xf32>
    %147 = arith.mulf %144, %146 : vector<32x256xf32>
    %148 = arith.truncf %147 : vector<32x256xf32> to vector<32x256xbf16>
    %c528 = arith.constant 528 : index
    %c0_87 = arith.constant 0 : index
    %149 = vector.load %arg14[%c528, %c0_87] : memref<1296x256xbf16, #tpu.memory_space<vmem>>, vector<32x256xbf16>
    tpu.vector_store %arg14[%c528, %c0_87], %148 {strides = array<i32>} : memref<1296x256xbf16, #tpu.memory_space<vmem>>, vector<32x256xbf16>,
    %150 = arith.truncf %125 : vector<32x256xf32> to vector<32x256xbf16>
    %c560 = arith.constant 560 : index
    %c0_88 = arith.constant 0 : index
    %151 = vector.load %arg14[%c560, %c0_88] : memref<1296x256xbf16, #tpu.memory_space<vmem>>, vector<32x256xbf16>
    tpu.vector_store %arg14[%c560, %c0_88], %150 {strides = array<i32>} : memref<1296x256xbf16, #tpu.memory_space<vmem>>, vector<32x256xbf16>,
    %c255_i32_89 = arith.constant 255 : i32
    %152 = tpu.dynamic_rotate %125 by %c255_i32_89 dim 1 : vector<32x256xf32>, i32 -> vector<32x256xf32>
    %c5_90 = arith.constant 5 : index
    %c0_91 = arith.constant 0 : index
    %153 = vector.load %arg2[%c5_90, %c0_91] : memref<9x256xf32, #tpu.memory_space<vmem>>, vector<1x256xf32>
    %154 = vector.broadcast %153 : vector<1x256xf32> to vector<32x256xf32>
    %155 = arith.mulf %152, %154 : vector<32x256xf32>
    %156 = arith.truncf %155 : vector<32x256xf32> to vector<32x256xbf16>
    %c592 = arith.constant 592 : index
    %c0_92 = arith.constant 0 : index
    %157 = vector.load %arg14[%c592, %c0_92] : memref<1296x256xbf16, #tpu.memory_space<vmem>>, vector<32x256xbf16>
    tpu.vector_store %arg14[%c592, %c0_92], %156 {strides = array<i32>} : memref<1296x256xbf16, #tpu.memory_space<vmem>>, vector<32x256xbf16>,
    %c241_i32_93 = arith.constant 241 : i32
    %158 = tpu.dynamic_rotate %125 by %c241_i32_93 dim 1 : vector<32x256xf32>, i32 -> vector<32x256xf32>
    %c6_94 = arith.constant 6 : index
    %c0_95 = arith.constant 0 : index
    %159 = vector.load %arg2[%c6_94, %c0_95] : memref<9x256xf32, #tpu.memory_space<vmem>>, vector<1x256xf32>
    %160 = vector.broadcast %159 : vector<1x256xf32> to vector<32x256xf32>
    %161 = arith.mulf %158, %160 : vector<32x256xf32>
    %162 = arith.truncf %161 : vector<32x256xf32> to vector<32x256xbf16>
    %c624 = arith.constant 624 : index
    %c0_96 = arith.constant 0 : index
    %163 = vector.load %arg14[%c624, %c0_96] : memref<1296x256xbf16, #tpu.memory_space<vmem>>, vector<32x256xbf16>
    tpu.vector_store %arg14[%c624, %c0_96], %162 {strides = array<i32>} : memref<1296x256xbf16, #tpu.memory_space<vmem>>, vector<32x256xbf16>,
    %c240_i32_97 = arith.constant 240 : i32
    %164 = tpu.dynamic_rotate %125 by %c240_i32_97 dim 1 : vector<32x256xf32>, i32 -> vector<32x256xf32>
    %c7_98 = arith.constant 7 : index
    %c0_99 = arith.constant 0 : index
    %165 = vector.load %arg2[%c7_98, %c0_99] : memref<9x256xf32, #tpu.memory_space<vmem>>, vector<1x256xf32>
    %166 = vector.broadcast %165 : vector<1x256xf32> to vector<32x256xf32>
    %167 = arith.mulf %164, %166 : vector<32x256xf32>
    %168 = arith.truncf %167 : vector<32x256xf32> to vector<32x256xbf16>
    %c656 = arith.constant 656 : index
    %c0_100 = arith.constant 0 : index
    %169 = vector.load %arg14[%c656, %c0_100] : memref<1296x256xbf16, #tpu.memory_space<vmem>>, vector<32x256xbf16>
    tpu.vector_store %arg14[%c656, %c0_100], %168 {strides = array<i32>} : memref<1296x256xbf16, #tpu.memory_space<vmem>>, vector<32x256xbf16>,
    %c239_i32_101 = arith.constant 239 : i32
    %170 = tpu.dynamic_rotate %125 by %c239_i32_101 dim 1 : vector<32x256xf32>, i32 -> vector<32x256xf32>
    %c8_102 = arith.constant 8 : index
    %c0_103 = arith.constant 0 : index
    %171 = vector.load %arg2[%c8_102, %c0_103] : memref<9x256xf32, #tpu.memory_space<vmem>>, vector<1x256xf32>
    %172 = vector.broadcast %171 : vector<1x256xf32> to vector<32x256xf32>
    %173 = arith.mulf %170, %172 : vector<32x256xf32>
    %174 = arith.truncf %173 : vector<32x256xf32> to vector<32x256xbf16>
    %c688 = arith.constant 688 : index
    %c0_104 = arith.constant 0 : index
    %175 = vector.load %arg14[%c688, %c0_104] : memref<1296x256xbf16, #tpu.memory_space<vmem>>, vector<32x256xbf16>
    tpu.vector_store %arg14[%c688, %c0_104], %174 {strides = array<i32>} : memref<1296x256xbf16, #tpu.memory_space<vmem>>, vector<32x256xbf16>,
    %c0_105 = arith.constant 0 : index
    %c0_106 = arith.constant 0 : index
    %176 = vector.load %arg14[%c0_105, %c0_106] : memref<1296x256xbf16, #tpu.memory_space<vmem>>, vector<720x256xbf16>
    %c0_107 = arith.constant 0 : index
    %c0_108 = arith.constant 0 : index
    %177 = vector.load %arg5[%c0_107, %c0_108] : memref<32x720xbf16, #tpu.memory_space<vmem>>, vector<32x720xbf16>
    %cst_109 = arith.constant dense<0.000000e+00> : vector<32x256xf32>
    %178 = tpu.matmul %177, %176, %cst_109 {dimension_numbers = #tpu.dot_dimension_numbers<[1], [0], [0], [1], [0, 0, 1, 1], [], []>} : vector<32x720xbf16>, vector<720x256xbf16>, vector<32x256xf32> -> vector<32x256xf32>
    %c0_110 = arith.constant 0 : index
    %c0_111 = arith.constant 0 : index
    %179 = vector.load %arg10[%c0_110, %c0_111] : memref<32x1xf32, #tpu.memory_space<vmem>>, vector<32x1xf32>
    %180 = vector.broadcast %179 : vector<32x1xf32> to vector<32x256xf32>
    %181 = arith.addf %178, %180 : vector<32x256xf32>
    %cst_112 = arith.constant 0.000000e+00 : f32
    %182 = vector.broadcast %cst_112 : f32 to vector<32x256xf32>
    %183 = arith.cmpf oge, %181, %182 : vector<32x256xf32>
    %cst_113 = arith.constant 2.000000e-01 : f32
    %184 = vector.broadcast %cst_113 : f32 to vector<32x256xf32>
    %185 = arith.mulf %184, %181 : vector<32x256xf32>
    %186 = arith.select %183, %181, %185 : vector<32x256xi1>, vector<32x256xf32>
    %c17_i32_114 = arith.constant 17 : i32
    %187 = tpu.dynamic_rotate %186 by %c17_i32_114 dim 1 : vector<32x256xf32>, i32 -> vector<32x256xf32>
    %c0_115 = arith.constant 0 : index
    %c0_116 = arith.constant 0 : index
    %188 = vector.load %arg2[%c0_115, %c0_116] : memref<9x256xf32, #tpu.memory_space<vmem>>, vector<1x256xf32>
    %189 = vector.broadcast %188 : vector<1x256xf32> to vector<32x256xf32>
    %190 = arith.mulf %187, %189 : vector<32x256xf32>
    %191 = arith.truncf %190 : vector<32x256xf32> to vector<32x256xbf16>
    %c720 = arith.constant 720 : index
    %c0_117 = arith.constant 0 : index
    %192 = vector.load %arg14[%c720, %c0_117] : memref<1296x256xbf16, #tpu.memory_space<vmem>>, vector<32x256xbf16>
    tpu.vector_store %arg14[%c720, %c0_117], %191 {strides = array<i32>} : memref<1296x256xbf16, #tpu.memory_space<vmem>>, vector<32x256xbf16>,
    %c16_i32_118 = arith.constant 16 : i32
    %193 = tpu.dynamic_rotate %186 by %c16_i32_118 dim 1 : vector<32x256xf32>, i32 -> vector<32x256xf32>
    %c1_119 = arith.constant 1 : index
    %c0_120 = arith.constant 0 : index
    %194 = vector.load %arg2[%c1_119, %c0_120] : memref<9x256xf32, #tpu.memory_space<vmem>>, vector<1x256xf32>
    %195 = vector.broadcast %194 : vector<1x256xf32> to vector<32x256xf32>
    %196 = arith.mulf %193, %195 : vector<32x256xf32>
    %197 = arith.truncf %196 : vector<32x256xf32> to vector<32x256xbf16>
    %c752 = arith.constant 752 : index
    %c0_121 = arith.constant 0 : index
    %198 = vector.load %arg14[%c752, %c0_121] : memref<1296x256xbf16, #tpu.memory_space<vmem>>, vector<32x256xbf16>
    tpu.vector_store %arg14[%c752, %c0_121], %197 {strides = array<i32>} : memref<1296x256xbf16, #tpu.memory_space<vmem>>, vector<32x256xbf16>,
    %c15_i32_122 = arith.constant 15 : i32
    %199 = tpu.dynamic_rotate %186 by %c15_i32_122 dim 1 : vector<32x256xf32>, i32 -> vector<32x256xf32>
    %c2_123 = arith.constant 2 : index
    %c0_124 = arith.constant 0 : index
    %200 = vector.load %arg2[%c2_123, %c0_124] : memref<9x256xf32, #tpu.memory_space<vmem>>, vector<1x256xf32>
    %201 = vector.broadcast %200 : vector<1x256xf32> to vector<32x256xf32>
    %202 = arith.mulf %199, %201 : vector<32x256xf32>
    %203 = arith.truncf %202 : vector<32x256xf32> to vector<32x256xbf16>
    %c784 = arith.constant 784 : index
    %c0_125 = arith.constant 0 : index
    %204 = vector.load %arg14[%c784, %c0_125] : memref<1296x256xbf16, #tpu.memory_space<vmem>>, vector<32x256xbf16>
    tpu.vector_store %arg14[%c784, %c0_125], %203 {strides = array<i32>} : memref<1296x256xbf16, #tpu.memory_space<vmem>>, vector<32x256xbf16>,
    %c1_i32_126 = arith.constant 1 : i32
    %205 = tpu.dynamic_rotate %186 by %c1_i32_126 dim 1 : vector<32x256xf32>, i32 -> vector<32x256xf32>
    %c3_127 = arith.constant 3 : index
    %c0_128 = arith.constant 0 : index
    %206 = vector.load %arg2[%c3_127, %c0_128] : memref<9x256xf32, #tpu.memory_space<vmem>>, vector<1x256xf32>
    %207 = vector.broadcast %206 : vector<1x256xf32> to vector<32x256xf32>
    %208 = arith.mulf %205, %207 : vector<32x256xf32>
    %209 = arith.truncf %208 : vector<32x256xf32> to vector<32x256xbf16>
    %c816 = arith.constant 816 : index
    %c0_129 = arith.constant 0 : index
    %210 = vector.load %arg14[%c816, %c0_129] : memref<1296x256xbf16, #tpu.memory_space<vmem>>, vector<32x256xbf16>
    tpu.vector_store %arg14[%c816, %c0_129], %209 {strides = array<i32>} : memref<1296x256xbf16, #tpu.memory_space<vmem>>, vector<32x256xbf16>,
    %211 = arith.truncf %186 : vector<32x256xf32> to vector<32x256xbf16>
    %c848 = arith.constant 848 : index
    %c0_130 = arith.constant 0 : index
    %212 = vector.load %arg14[%c848, %c0_130] : memref<1296x256xbf16, #tpu.memory_space<vmem>>, vector<32x256xbf16>
    tpu.vector_store %arg14[%c848, %c0_130], %211 {strides = array<i32>} : memref<1296x256xbf16, #tpu.memory_space<vmem>>, vector<32x256xbf16>,
    %c255_i32_131 = arith.constant 255 : i32
    %213 = tpu.dynamic_rotate %186 by %c255_i32_131 dim 1 : vector<32x256xf32>, i32 -> vector<32x256xf32>
    %c5_132 = arith.constant 5 : index
    %c0_133 = arith.constant 0 : index
    %214 = vector.load %arg2[%c5_132, %c0_133] : memref<9x256xf32, #tpu.memory_space<vmem>>, vector<1x256xf32>
    %215 = vector.broadcast %214 : vector<1x256xf32> to vector<32x256xf32>
    %216 = arith.mulf %213, %215 : vector<32x256xf32>
    %217 = arith.truncf %216 : vector<32x256xf32> to vector<32x256xbf16>
    %c880 = arith.constant 880 : index
    %c0_134 = arith.constant 0 : index
    %218 = vector.load %arg14[%c880, %c0_134] : memref<1296x256xbf16, #tpu.memory_space<vmem>>, vector<32x256xbf16>
    tpu.vector_store %arg14[%c880, %c0_134], %217 {strides = array<i32>} : memref<1296x256xbf16, #tpu.memory_space<vmem>>, vector<32x256xbf16>,
    %c241_i32_135 = arith.constant 241 : i32
    %219 = tpu.dynamic_rotate %186 by %c241_i32_135 dim 1 : vector<32x256xf32>, i32 -> vector<32x256xf32>
    %c6_136 = arith.constant 6 : index
    %c0_137 = arith.constant 0 : index
    %220 = vector.load %arg2[%c6_136, %c0_137] : memref<9x256xf32, #tpu.memory_space<vmem>>, vector<1x256xf32>
    %221 = vector.broadcast %220 : vector<1x256xf32> to vector<32x256xf32>
    %222 = arith.mulf %219, %221 : vector<32x256xf32>
    %223 = arith.truncf %222 : vector<32x256xf32> to vector<32x256xbf16>
    %c912 = arith.constant 912 : index
    %c0_138 = arith.constant 0 : index
    %224 = vector.load %arg14[%c912, %c0_138] : memref<1296x256xbf16, #tpu.memory_space<vmem>>, vector<32x256xbf16>
    tpu.vector_store %arg14[%c912, %c0_138], %223 {strides = array<i32>} : memref<1296x256xbf16, #tpu.memory_space<vmem>>, vector<32x256xbf16>,
    %c240_i32_139 = arith.constant 240 : i32
    %225 = tpu.dynamic_rotate %186 by %c240_i32_139 dim 1 : vector<32x256xf32>, i32 -> vector<32x256xf32>
    %c7_140 = arith.constant 7 : index
    %c0_141 = arith.constant 0 : index
    %226 = vector.load %arg2[%c7_140, %c0_141] : memref<9x256xf32, #tpu.memory_space<vmem>>, vector<1x256xf32>
    %227 = vector.broadcast %226 : vector<1x256xf32> to vector<32x256xf32>
    %228 = arith.mulf %225, %227 : vector<32x256xf32>
    %229 = arith.truncf %228 : vector<32x256xf32> to vector<32x256xbf16>
    %c944 = arith.constant 944 : index
    %c0_142 = arith.constant 0 : index
    %230 = vector.load %arg14[%c944, %c0_142] : memref<1296x256xbf16, #tpu.memory_space<vmem>>, vector<32x256xbf16>
    tpu.vector_store %arg14[%c944, %c0_142], %229 {strides = array<i32>} : memref<1296x256xbf16, #tpu.memory_space<vmem>>, vector<32x256xbf16>,
    %c239_i32_143 = arith.constant 239 : i32
    %231 = tpu.dynamic_rotate %186 by %c239_i32_143 dim 1 : vector<32x256xf32>, i32 -> vector<32x256xf32>
    %c8_144 = arith.constant 8 : index
    %c0_145 = arith.constant 0 : index
    %232 = vector.load %arg2[%c8_144, %c0_145] : memref<9x256xf32, #tpu.memory_space<vmem>>, vector<1x256xf32>
    %233 = vector.broadcast %232 : vector<1x256xf32> to vector<32x256xf32>
    %234 = arith.mulf %231, %233 : vector<32x256xf32>
    %235 = arith.truncf %234 : vector<32x256xf32> to vector<32x256xbf16>
    %c976 = arith.constant 976 : index
    %c0_146 = arith.constant 0 : index
    %236 = vector.load %arg14[%c976, %c0_146] : memref<1296x256xbf16, #tpu.memory_space<vmem>>, vector<32x256xbf16>
    tpu.vector_store %arg14[%c976, %c0_146], %235 {strides = array<i32>} : memref<1296x256xbf16, #tpu.memory_space<vmem>>, vector<32x256xbf16>,
    %c0_147 = arith.constant 0 : index
    %c0_148 = arith.constant 0 : index
    %237 = vector.load %arg14[%c0_147, %c0_148] : memref<1296x256xbf16, #tpu.memory_space<vmem>>, vector<1008x256xbf16>
    %c0_149 = arith.constant 0 : index
    %c0_150 = arith.constant 0 : index
    %238 = vector.load %arg6[%c0_149, %c0_150] : memref<32x1008xbf16, #tpu.memory_space<vmem>>, vector<32x1008xbf16>
    %cst_151 = arith.constant dense<0.000000e+00> : vector<32x256xf32>
    %239 = tpu.matmul %238, %237, %cst_151 {dimension_numbers = #tpu.dot_dimension_numbers<[1], [0], [0], [1], [0, 0, 1, 1], [], []>} : vector<32x1008xbf16>, vector<1008x256xbf16>, vector<32x256xf32> -> vector<32x256xf32>
    %c0_152 = arith.constant 0 : index
    %c0_153 = arith.constant 0 : index
    %240 = vector.load %arg11[%c0_152, %c0_153] : memref<32x1xf32, #tpu.memory_space<vmem>>, vector<32x1xf32>
    %241 = vector.broadcast %240 : vector<32x1xf32> to vector<32x256xf32>
    %242 = arith.addf %239, %241 : vector<32x256xf32>
    %cst_154 = arith.constant 0.000000e+00 : f32
    %243 = vector.broadcast %cst_154 : f32 to vector<32x256xf32>
    %244 = arith.cmpf oge, %242, %243 : vector<32x256xf32>
    %cst_155 = arith.constant 2.000000e-01 : f32
    %245 = vector.broadcast %cst_155 : f32 to vector<32x256xf32>
    %246 = arith.mulf %245, %242 : vector<32x256xf32>
    %247 = arith.select %244, %242, %246 : vector<32x256xi1>, vector<32x256xf32>
    %c17_i32_156 = arith.constant 17 : i32
    %248 = tpu.dynamic_rotate %247 by %c17_i32_156 dim 1 : vector<32x256xf32>, i32 -> vector<32x256xf32>
    %c0_157 = arith.constant 0 : index
    %c0_158 = arith.constant 0 : index
    %249 = vector.load %arg2[%c0_157, %c0_158] : memref<9x256xf32, #tpu.memory_space<vmem>>, vector<1x256xf32>
    %250 = vector.broadcast %249 : vector<1x256xf32> to vector<32x256xf32>
    %251 = arith.mulf %248, %250 : vector<32x256xf32>
    %252 = arith.truncf %251 : vector<32x256xf32> to vector<32x256xbf16>
    %c1008 = arith.constant 1008 : index
    %c0_159 = arith.constant 0 : index
    %253 = vector.load %arg14[%c1008, %c0_159] : memref<1296x256xbf16, #tpu.memory_space<vmem>>, vector<32x256xbf16>
    tpu.vector_store %arg14[%c1008, %c0_159], %252 {strides = array<i32>} : memref<1296x256xbf16, #tpu.memory_space<vmem>>, vector<32x256xbf16>,
    %c16_i32_160 = arith.constant 16 : i32
    %254 = tpu.dynamic_rotate %247 by %c16_i32_160 dim 1 : vector<32x256xf32>, i32 -> vector<32x256xf32>
    %c1_161 = arith.constant 1 : index
    %c0_162 = arith.constant 0 : index
    %255 = vector.load %arg2[%c1_161, %c0_162] : memref<9x256xf32, #tpu.memory_space<vmem>>, vector<1x256xf32>
    %256 = vector.broadcast %255 : vector<1x256xf32> to vector<32x256xf32>
    %257 = arith.mulf %254, %256 : vector<32x256xf32>
    %258 = arith.truncf %257 : vector<32x256xf32> to vector<32x256xbf16>
    %c1040 = arith.constant 1040 : index
    %c0_163 = arith.constant 0 : index
    %259 = vector.load %arg14[%c1040, %c0_163] : memref<1296x256xbf16, #tpu.memory_space<vmem>>, vector<32x256xbf16>
    tpu.vector_store %arg14[%c1040, %c0_163], %258 {strides = array<i32>} : memref<1296x256xbf16, #tpu.memory_space<vmem>>, vector<32x256xbf16>,
    %c15_i32_164 = arith.constant 15 : i32
    %260 = tpu.dynamic_rotate %247 by %c15_i32_164 dim 1 : vector<32x256xf32>, i32 -> vector<32x256xf32>
    %c2_165 = arith.constant 2 : index
    %c0_166 = arith.constant 0 : index
    %261 = vector.load %arg2[%c2_165, %c0_166] : memref<9x256xf32, #tpu.memory_space<vmem>>, vector<1x256xf32>
    %262 = vector.broadcast %261 : vector<1x256xf32> to vector<32x256xf32>
    %263 = arith.mulf %260, %262 : vector<32x256xf32>
    %264 = arith.truncf %263 : vector<32x256xf32> to vector<32x256xbf16>
    %c1072 = arith.constant 1072 : index
    %c0_167 = arith.constant 0 : index
    %265 = vector.load %arg14[%c1072, %c0_167] : memref<1296x256xbf16, #tpu.memory_space<vmem>>, vector<32x256xbf16>
    tpu.vector_store %arg14[%c1072, %c0_167], %264 {strides = array<i32>} : memref<1296x256xbf16, #tpu.memory_space<vmem>>, vector<32x256xbf16>,
    %c1_i32_168 = arith.constant 1 : i32
    %266 = tpu.dynamic_rotate %247 by %c1_i32_168 dim 1 : vector<32x256xf32>, i32 -> vector<32x256xf32>
    %c3_169 = arith.constant 3 : index
    %c0_170 = arith.constant 0 : index
    %267 = vector.load %arg2[%c3_169, %c0_170] : memref<9x256xf32, #tpu.memory_space<vmem>>, vector<1x256xf32>
    %268 = vector.broadcast %267 : vector<1x256xf32> to vector<32x256xf32>
    %269 = arith.mulf %266, %268 : vector<32x256xf32>
    %270 = arith.truncf %269 : vector<32x256xf32> to vector<32x256xbf16>
    %c1104 = arith.constant 1104 : index
    %c0_171 = arith.constant 0 : index
    %271 = vector.load %arg14[%c1104, %c0_171] : memref<1296x256xbf16, #tpu.memory_space<vmem>>, vector<32x256xbf16>
    tpu.vector_store %arg14[%c1104, %c0_171], %270 {strides = array<i32>} : memref<1296x256xbf16, #tpu.memory_space<vmem>>, vector<32x256xbf16>,
    %272 = arith.truncf %247 : vector<32x256xf32> to vector<32x256xbf16>
    %c1136 = arith.constant 1136 : index
    %c0_172 = arith.constant 0 : index
    %273 = vector.load %arg14[%c1136, %c0_172] : memref<1296x256xbf16, #tpu.memory_space<vmem>>, vector<32x256xbf16>
    tpu.vector_store %arg14[%c1136, %c0_172], %272 {strides = array<i32>} : memref<1296x256xbf16, #tpu.memory_space<vmem>>, vector<32x256xbf16>,
    %c255_i32_173 = arith.constant 255 : i32
    %274 = tpu.dynamic_rotate %247 by %c255_i32_173 dim 1 : vector<32x256xf32>, i32 -> vector<32x256xf32>
    %c5_174 = arith.constant 5 : index
    %c0_175 = arith.constant 0 : index
    %275 = vector.load %arg2[%c5_174, %c0_175] : memref<9x256xf32, #tpu.memory_space<vmem>>, vector<1x256xf32>
    %276 = vector.broadcast %275 : vector<1x256xf32> to vector<32x256xf32>
    %277 = arith.mulf %274, %276 : vector<32x256xf32>
    %278 = arith.truncf %277 : vector<32x256xf32> to vector<32x256xbf16>
    %c1168 = arith.constant 1168 : index
    %c0_176 = arith.constant 0 : index
    %279 = vector.load %arg14[%c1168, %c0_176] : memref<1296x256xbf16, #tpu.memory_space<vmem>>, vector<32x256xbf16>
    tpu.vector_store %arg14[%c1168, %c0_176], %278 {strides = array<i32>} : memref<1296x256xbf16, #tpu.memory_space<vmem>>, vector<32x256xbf16>,
    %c241_i32_177 = arith.constant 241 : i32
    %280 = tpu.dynamic_rotate %247 by %c241_i32_177 dim 1 : vector<32x256xf32>, i32 -> vector<32x256xf32>
    %c6_178 = arith.constant 6 : index
    %c0_179 = arith.constant 0 : index
    %281 = vector.load %arg2[%c6_178, %c0_179] : memref<9x256xf32, #tpu.memory_space<vmem>>, vector<1x256xf32>
    %282 = vector.broadcast %281 : vector<1x256xf32> to vector<32x256xf32>
    %283 = arith.mulf %280, %282 : vector<32x256xf32>
    %284 = arith.truncf %283 : vector<32x256xf32> to vector<32x256xbf16>
    %c1200 = arith.constant 1200 : index
    %c0_180 = arith.constant 0 : index
    %285 = vector.load %arg14[%c1200, %c0_180] : memref<1296x256xbf16, #tpu.memory_space<vmem>>, vector<32x256xbf16>
    tpu.vector_store %arg14[%c1200, %c0_180], %284 {strides = array<i32>} : memref<1296x256xbf16, #tpu.memory_space<vmem>>, vector<32x256xbf16>,
    %c240_i32_181 = arith.constant 240 : i32
    %286 = tpu.dynamic_rotate %247 by %c240_i32_181 dim 1 : vector<32x256xf32>, i32 -> vector<32x256xf32>
    %c7_182 = arith.constant 7 : index
    %c0_183 = arith.constant 0 : index
    %287 = vector.load %arg2[%c7_182, %c0_183] : memref<9x256xf32, #tpu.memory_space<vmem>>, vector<1x256xf32>
    %288 = vector.broadcast %287 : vector<1x256xf32> to vector<32x256xf32>
    %289 = arith.mulf %286, %288 : vector<32x256xf32>
    %290 = arith.truncf %289 : vector<32x256xf32> to vector<32x256xbf16>
    %c1232 = arith.constant 1232 : index
    %c0_184 = arith.constant 0 : index
    %291 = vector.load %arg14[%c1232, %c0_184] : memref<1296x256xbf16, #tpu.memory_space<vmem>>, vector<32x256xbf16>
    tpu.vector_store %arg14[%c1232, %c0_184], %290 {strides = array<i32>} : memref<1296x256xbf16, #tpu.memory_space<vmem>>, vector<32x256xbf16>,
    %c239_i32_185 = arith.constant 239 : i32
    %292 = tpu.dynamic_rotate %247 by %c239_i32_185 dim 1 : vector<32x256xf32>, i32 -> vector<32x256xf32>
    %c8_186 = arith.constant 8 : index
    %c0_187 = arith.constant 0 : index
    %293 = vector.load %arg2[%c8_186, %c0_187] : memref<9x256xf32, #tpu.memory_space<vmem>>, vector<1x256xf32>
    %294 = vector.broadcast %293 : vector<1x256xf32> to vector<32x256xf32>
    %295 = arith.mulf %292, %294 : vector<32x256xf32>
    %296 = arith.truncf %295 : vector<32x256xf32> to vector<32x256xbf16>
    %c1264 = arith.constant 1264 : index
    %c0_188 = arith.constant 0 : index
    %297 = vector.load %arg14[%c1264, %c0_188] : memref<1296x256xbf16, #tpu.memory_space<vmem>>, vector<32x256xbf16>
    tpu.vector_store %arg14[%c1264, %c0_188], %296 {strides = array<i32>} : memref<1296x256xbf16, #tpu.memory_space<vmem>>, vector<32x256xbf16>,
    %c0_189 = arith.constant 0 : index
    %c0_190 = arith.constant 0 : index
    %298 = vector.load %arg14[%c0_189, %c0_190] : memref<1296x256xbf16, #tpu.memory_space<vmem>>, vector<1296x256xbf16>
    %c0_191 = arith.constant 0 : index
    %c0_192 = arith.constant 0 : index
    %299 = vector.load %arg7[%c0_191, %c0_192] : memref<4x1296xbf16, #tpu.memory_space<vmem>>, vector<4x1296xbf16>
    %cst_193 = arith.constant dense<0.000000e+00> : vector<4x256xf32>
    %300 = tpu.matmul %299, %298, %cst_193 {dimension_numbers = #tpu.dot_dimension_numbers<[1], [0], [0], [1], [0, 0, 1, 1], [], []>} : vector<4x1296xbf16>, vector<1296x256xbf16>, vector<4x256xf32> -> vector<4x256xf32>
    %c0_194 = arith.constant 0 : index
    %c0_195 = arith.constant 0 : index
    %301 = vector.load %arg12[%c0_194, %c0_195] : memref<4x1xf32, #tpu.memory_space<vmem>>, vector<4x1xf32>
    %302 = vector.broadcast %301 : vector<4x1xf32> to vector<4x256xf32>
    %303 = arith.addf %300, %302 : vector<4x256xf32>
    %cst_196 = arith.constant 2.000000e-01 : f32
    %304 = vector.broadcast %cst_196 : f32 to vector<4x256xf32>
    %305 = arith.mulf %304, %303 : vector<4x256xf32>
    %306 = arith.addf %305, %1 : vector<4x256xf32>
    %c0_197 = arith.constant 0 : index
    %c0_198 = arith.constant 0 : index
    %c0_199 = arith.constant 0 : index
    %307 = vector.load %arg13[%c0_197, %c0_198, %c0_199] : memref<1x4x256xf32, #tpu.memory_space<vmem>>, vector<1x4x256xf32>
    %308 = vector.shape_cast %307 : vector<1x4x256xf32> to vector<4x256xf32>
    %309 = vector.shape_cast %306 : vector<4x256xf32> to vector<1x4x256xf32>
    tpu.vector_store %arg13[%c0_197, %c0_198, %c0_199], %309 {strides = array<i32>} : memref<1x4x256xf32, #tpu.memory_space<vmem>>, vector<1x4x256xf32>,
    return
  }
  func.func @transform_0(%arg0: i32) -> (i32, i32, i32) {
    %c0_i32 = arith.constant 0 : i32
    %c0_i32_0 = arith.constant 0 : i32
    %c0_i32_1 = arith.constant 0 : i32
    return %arg0, %c0_i32, %c0_i32_0 : i32, i32, i32
  }
  func.func @transform_1(%arg0: i32) -> (i32, i32) {
    %c0_i32 = arith.constant 0 : i32
    %c0_i32_0 = arith.constant 0 : i32
    %c0_i32_1 = arith.constant 0 : i32
    return %c0_i32, %c0_i32_0 : i32, i32
  }
  func.func @transform_2(%arg0: i32) -> (i32, i32) {
    %c0_i32 = arith.constant 0 : i32
    %c0_i32_0 = arith.constant 0 : i32
    %c0_i32_1 = arith.constant 0 : i32
    return %c0_i32, %c0_i32_0 : i32, i32
  }
  func.func @transform_3(%arg0: i32) -> (i32, i32) {
    %c0_i32 = arith.constant 0 : i32
    %c0_i32_0 = arith.constant 0 : i32
    %c0_i32_1 = arith.constant 0 : i32
    return %c0_i32, %c0_i32_0 : i32, i32
  }
  func.func @transform_4(%arg0: i32) -> (i32, i32) {
    %c0_i32 = arith.constant 0 : i32
    %c0_i32_0 = arith.constant 0 : i32
    %c0_i32_1 = arith.constant 0 : i32
    return %c0_i32, %c0_i32_0 : i32, i32
  }
  func.func @transform_5(%arg0: i32) -> (i32, i32) {
    %c0_i32 = arith.constant 0 : i32
    %c0_i32_0 = arith.constant 0 : i32
    %c0_i32_1 = arith.constant 0 : i32
    return %c0_i32, %c0_i32_0 : i32, i32
  }
  func.func @transform_6(%arg0: i32) -> (i32, i32) {
    %c0_i32 = arith.constant 0 : i32
    %c0_i32_0 = arith.constant 0 : i32
    %c0_i32_1 = arith.constant 0 : i32
    return %c0_i32, %c0_i32_0 : i32, i32
  }
  func.func @transform_7(%arg0: i32) -> (i32, i32) {
    %c0_i32 = arith.constant 0 : i32
    %c0_i32_0 = arith.constant 0 : i32
    %c0_i32_1 = arith.constant 0 : i32
    return %c0_i32, %c0_i32_0 : i32, i32
  }
  func.func @transform_8(%arg0: i32) -> (i32, i32) {
    %c0_i32 = arith.constant 0 : i32
    %c0_i32_0 = arith.constant 0 : i32
    %c0_i32_1 = arith.constant 0 : i32
    return %c0_i32, %c0_i32_0 : i32, i32
  }
  func.func @transform_9(%arg0: i32) -> (i32, i32) {
    %c0_i32 = arith.constant 0 : i32
    %c0_i32_0 = arith.constant 0 : i32
    %c0_i32_1 = arith.constant 0 : i32
    return %c0_i32, %c0_i32_0 : i32, i32
  }
  func.func @transform_10(%arg0: i32) -> (i32, i32) {
    %c0_i32 = arith.constant 0 : i32
    %c0_i32_0 = arith.constant 0 : i32
    %c0_i32_1 = arith.constant 0 : i32
    return %c0_i32, %c0_i32_0 : i32, i32
  }
  func.func @transform_11(%arg0: i32) -> (i32, i32) {
    %c0_i32 = arith.constant 0 : i32
    %c0_i32_0 = arith.constant 0 : i32
    %c0_i32_1 = arith.constant 0 : i32
    return %c0_i32, %c0_i32_0 : i32, i32
  }
  func.func @transform_12(%arg0: i32) -> (i32, i32, i32) {
    %c0_i32 = arith.constant 0 : i32
    %c0_i32_0 = arith.constant 0 : i32
    %c0_i32_1 = arith.constant 0 : i32
    return %arg0, %c0_i32, %c0_i32_0 : i32, i32, i32
  }
}

</mosaic_0001>

<bundles_post_ra>
// kernel: tpu_custom_call.1
= control target key start
LH: loop header
LB: loop body
LE: loop exit
PB: predicated region body
PF: predicated region fallthrough
CT: control target
= control target key end

     0   :  { %s7839_s0 = inlined_call_operand.hbm [shape: f32[2,4,256], index: 0, kind: input, shape index: {}]   ;;  %s7840_s1 = inlined_call_operand.hbm [shape: f32[9,256], index: 1, kind: input, shape index: {}]   ;;  %s7841_s2 = inlined_call_operand.hbm [shape: bf16[32,144], index: 2, kind: input, shape index: {}]   ;;  %s7842_s3 = inlined_call_operand.hbm [shape: bf16[32,432], index: 3, kind: input, shape index: {}]   ;;  %s7843_s4 = inlined_call_operand.hbm [shape: bf16[32,720], index: 4, kind: input, shape index: {}]   ;;  %s7844_s5 = inlined_call_operand.vmem [shape: bf16[32,1008], index: 5, kind: input, shape index: {}]   ;;  %s7845_s6 = inlined_call_operand.vmem [shape: bf16[4,1296], index: 6, kind: input, shape index: {}]   ;;  %s7846_s7 = inlined_call_operand.vmem [shape: f32[32,1], index: 7, kind: input, shape index: {}]   ;;  %s7847_s8 = inlined_call_operand.vmem [shape: f32[32,1], index: 8, kind: input, shape index: {}]   ;;  %s7848_s9 = inlined_call_operand.vmem [shape: f32[32,1], index: 9, kind: input, shape index: {}]   ;;  %s7849_s10 = inlined_call_operand.vmem [shape: f32[32,1], index: 10, kind: input, shape index: {}]   ;;  %s7850_s11 = inlined_call_operand.vmem [shape: f32[4,1], index: 11, kind: input, shape index: {}]   ;;  %s7851_s12 = inlined_call_operand.hbm [shape: f32[2,4,256], index: 12, kind: output, shape index: {}]  }
   0x1   :  { %7961 = sst [smem:[#allocation80_spill]] %s7839_s0 }
   0x2   :  { %7962 = sst [smem:[#allocation81_spill]] %s7840_s1 }
   0x3   :  { %7963 = sst [smem:[#allocation82_spill]] %s7841_s2 }
   0x4   :  { %7964 = sst [smem:[#allocation83_spill]] %s7842_s3 }
   0x5   :  { %7965 = sst [smem:[#allocation84_spill]] %s7843_s4 }
   0x6   :  { %7966 = sst [smem:[#allocation85_spill]] %s7845_s6 }
   0x7   :  { %7967 = sst [smem:[#allocation86_spill]] %s7849_s10 }
   0x8   :  { %7968 = sst [smem:[#allocation87_spill]] %s7850_s11 }
   0x9   :  { %7969 = sst [smem:[#allocation88_spill]] %s7851_s12 }
   0xa   :  { %17 = vsyncpa [#allocation4], 0 }
   0xb   :  { %19 = vsyncpa [#allocation4 + $0x1], 0 }
   0xc   :  { %20 = vsyncpa [#allocation7], 0 }
   0xd   :  { %21 = vsyncpa [#allocation10], 0 }
   0xe   :  { %22 = vsyncpa [#allocation5], 0 }
   0xf   :  { %24 = vsyncpa [#allocation5 + $0x1], 0  ;;  %s4974_s21 = smov 0   ;;  %s4976_s22 = smov 0  }
  0x10   :  { %s4978_s23 = smov 0   ;;  %s4980_s24 = smov 0  }
  0x11 LB: > { %s4885_s25 = smov [#allocation6]   ;;  %s4995_s27 = sadd.s32 4294967295, %s4883_s24   ;;  %s4883_s24 = sphi %s4980_s24, %s8156_s24   ;;  %s4879_s23 = sphi %s4978_s23, %s8155_s23   ;;  %s4875_s22 = sphi %s4976_s22, %s8154_s22   ;;  %s4871_s21 = sphi %s4974_s21, %s8153_s21  }
  0x12   : > { %s330_s26 = sshll.u32 %s4885_s25, 4  ;;  %p4323_p0 = scmp.ge.s32.totalorder %s4883_s24, 1  ;;  %s5000_s26 = int_to_ptr.vmem [resolvable:$true] %s330_s26 }
  0x13   : > { %p7855_p1 = scmp.eq.s32.totalorder %s4995_s27, 0  ;;  %p318_p2 = scmp.lt.s32.totalorder %s4883_s24, 3 }
  0x14   : > { %s4886_s29 = smov [#allocation9]   ;;  %s4887_s14 = smov [#allocation8]  }
  0x15   : > { %p5002_p3 = pnand %p4323_p0, %p318_p2  ;;  %s356_s30 = sshll.u32 %s4886_s29, 4  ;;  %s5015_s30 = int_to_ptr.vmem [resolvable:$true] %s356_s30 }
  0x16   : > { %s343_s15 = sshll.u32 %s4887_s14, 4  ;;  %s7972_s1 = sld [smem:[#allocation81_spill]]  ;;  %s5017_s15 = int_to_ptr.vmem [resolvable:$true] %s343_s15 }
  0x17   : > { %s7970_s28 = scalar_select %p5002_p3, 1, 0 }
  0x18   : > { %p4539_p5 = pneg %p5002_p3 }
  0x1a   : > { %p5011_p6 = pnand %p4539_p5, %p7855_p1 }
  0x1c   : > { %s4667_s18 = scalar_lea.hbm %s7972_s1, 512  ;;  %p5027_p8 = pneg %p5011_p6 }
  0x1d   : > { %p4668_p7 = scmp.ne.s32.totalorder %s7972_s1, %s4667_s18  ;;  %p4674_p11 = scmp.lt.u32.totalorder %s4667_s18, %s7972_s1 }
  0x1f   : > { %p4670_p9 = pnand %p5027_p8, %p4668_p7 }
  0x21   : > { %p4671_p10 = pneg %p4670_p9 }
  0x23   : > { %p4676_p12 = pnand %p4674_p11, %p4671_p10 }
  0x25   : > { %4679 = shalt.err (!%p4676_p12)
}
  0x26   : > { %s4680_s16 = scalar_lea.vmem %s5000_s26, 512  ;;  %p4688_p5 = scmp.lt.s32.totalorder %s5000_s26, %s5000_s26 }
  0x27   : > { %p4681_p13 = scmp.ne.s32.totalorder %s5000_s26, %s4680_s16  ;;  %p4689_p4 = scmp.lt.s32.totalorder %s4680_s16, %s4680_s16 }
  0x29   : > { %p4683_p0 = pnand %p4681_p13, %p5027_p8  ;;  %p4690_p7 = por %p4689_p4, %p4688_p5 }
  0x2b   : > { %p4684_p2 = pneg %p4683_p0 }
  0x2d   : > { %p4691_p9 = pnand %p4690_p7, %p4684_p2 }
  0x2f   : > { %4694 = shalt.err (!%p4691_p9)
}
  0x30   : > { %s4888_s17 = smov 256   ;;  %s4889_s18 = smov 16  }
  0x31   : > { %4542 = dma.hbm_to_vmem [thread:$0]  (!%p5011_p6), %s7972_s1, 512, %s5000_s26, [#allocation7], %s4888_s17, %s4888_s17, %s4889_s18  }
  0x32   : > { %s7974_s3 = sld [smem:[#allocation83_spill]] }
  0x38   : > { %s4695_s12 = scalar_lea.hbm %s7974_s3, 1024 }
  0x39   : > { %p4696_p4 = scmp.ne.s32.totalorder %s7974_s3, %s4695_s12  ;;  %p4702_p12 = scmp.lt.u32.totalorder %s4695_s12, %s7974_s3 }
  0x3b   : > { %p4698_p10 = pnand %p4696_p4, %p5027_p8 }
  0x3d   : > { %p4699_p11 = pneg %p4698_p10 }
  0x3f   : > { %p4704_p13 = pnand %p4702_p12, %p4699_p11 }
  0x41   : > { %4707 = shalt.err (!%p4704_p13)
}
  0x42   : > { %s4708_s26 = scalar_lea.vmem %s5015_s30, 1024  ;;  %p4716_p7 = scmp.lt.s32.totalorder %s5015_s30, %s5015_s30 }
  0x43   : > { %p4709_p0 = scmp.ne.s32.totalorder %s5015_s30, %s4708_s26  ;;  %p4717_p9 = scmp.lt.s32.totalorder %s4708_s26, %s4708_s26 }
  0x45   : > { %p4711_p2 = pnand %p4709_p0, %p5027_p8  ;;  %p4718_p4 = por %p4717_p9, %p4716_p7 }
  0x47   : > { %p4712_p5 = pneg %p4711_p2 }
  0x49   : > { %p4719_p10 = pnand %p4718_p4, %p4712_p5 }
  0x4b   : > { %4722 = shalt.err (!%p4719_p10)
}
  0x4c   : > { %4548 = dma.hbm_to_vmem [thread:$0]  (!%p5011_p6), %s7974_s3, 1024, %s5015_s30, [#allocation10], %s4888_s17, %s4888_s17, %s4889_s18  }
  0x4d   : > { %s7975_s2 = sld [smem:[#allocation82_spill]] }
  0x53   : > { %s4723_s19 = scalar_lea.hbm %s7975_s2, 512 }
  0x54   : > { %p4724_p11 = scmp.ne.s32.totalorder %s7975_s2, %s4723_s19  ;;  %p4730_p0 = scmp.lt.u32.totalorder %s4723_s19, %s7975_s2 }
  0x56   : > { %p4726_p12 = pnand %p4724_p11, %p5027_p8 }
  0x58   : > { %p4727_p13 = pneg %p4726_p12 }
  0x5a   : > { %p4732_p2 = pnand %p4730_p0, %p4727_p13 }
  0x5c   : > { %4735 = shalt.err (!%p4732_p2)
}
  0x5d   : > { %s4736_s30 = scalar_lea.vmem %s5017_s15, 512  ;;  %p4744_p4 = scmp.lt.s32.totalorder %s5017_s15, %s5017_s15 }
  0x5e   : > { %p4737_p5 = scmp.ne.s32.totalorder %s5017_s15, %s4736_s30  ;;  %p4745_p10 = scmp.lt.s32.totalorder %s4736_s30, %s4736_s30 }
  0x60   : > { %p4739_p7 = pnand %p4737_p5, %p5027_p8  ;;  %p4746_p11 = por %p4745_p10, %p4744_p4 }
  0x62   : > { %p4740_p9 = pneg %p4739_p7 }
  0x64   : > { %p4747_p12 = pnand %p4746_p11, %p4740_p9 }
  0x66   : > { %4750 = shalt.err (!%p4747_p12)
}
  0x67   : > { %s4890_s17 = smov 128   ;;  %s4891_s18 = smov 8  }
  0x68   : > { %4545 = dma.hbm_to_vmem [thread:$0]  (!%p5011_p6), %s7975_s2, 512, %s5017_s15, [#allocation7], %s4890_s17, %s4890_s17, %s4891_s18  }
  0x69   : > { %s4892_s10 = smov [#allocation11]   ;;  %s7976_s4 = sld [smem:[#allocation84_spill]] }
  0x6a   : > { %s369_s11 = sshll.u32 %s4892_s10, 4  ;;  %s370_s11 = int_to_ptr.vmem [resolvable:$true] %s369_s11 }
  0x6f   : > { %s4751_s20 = scalar_lea.hbm %s7976_s4, 1536 }
  0x70   : > { %p4752_p13 = scmp.ne.s32.totalorder %s7976_s4, %s4751_s20  ;;  %p4758_p5 = scmp.lt.u32.totalorder %s4751_s20, %s7976_s4 }
  0x72   : > { %p4754_p0 = pnand %p4752_p13, %p5027_p8 }
  0x74   : > { %p4755_p2 = pneg %p4754_p0 }
  0x76   : > { %p4760_p7 = pnand %p4758_p5, %p4755_p2 }
  0x78   : > { %4763 = shalt.err (!%p4760_p7)
}
  0x79   : > { %s4764_s15 = scalar_lea.vmem %s370_s11, 1536  ;;  %p4772_p11 = scmp.lt.s32.totalorder %s370_s11, %s370_s11 }
  0x7a   : > { %p4765_p9 = scmp.ne.s32.totalorder %s370_s11, %s4764_s15  ;;  %p4773_p12 = scmp.lt.s32.totalorder %s4764_s15, %s4764_s15 }
  0x7c   : > { %p4767_p4 = pnand %p4765_p9, %p5027_p8  ;;  %p4774_p1 = por %p4773_p12, %p4772_p11 }
  0x7e   : > { %p4768_p10 = pneg %p4767_p4 }
  0x80   : > { %p4775_p3 = pnand %p4774_p1, %p4768_p10 }
  0x82   : > { %4778 = shalt.err (!%p4775_p3)
}
  0x83   : > { %s4893_s17 = smov 384   ;;  %s4894_s25 = smov 24  }
  0x84   : > { %4551 = dma.hbm_to_vmem [thread:$0]  (!%p5011_p6), %s7976_s4, 1536, %s370_s11, [#allocation10], %s4893_s17, %s4893_s17, %s4894_s25  }
  0x85   : > { %s4322_s6 = sadd.s32 4294967294, %s4883_s24   ;;  %s5114_s10 = sadd.s32 1, %s4883_s24  }
  0x86   : > { %s34_s12 = ssub.s32 %s4883_s24, %s5114_s10  ;;  %s37_s19 = sadd.s32 1, %s4879_s23 }
  0x87   : > { %p35_p1 = scmp.eq.s32.totalorder %s34_s12, 0  ;;  %p44_p3 = scmp.ne.s32.totalorder %s4879_s23, %s4875_s22 }
  0x88   : > { %p45_p8 = scmp.eq.s32.totalorder %s4883_s24, 0  ;;  %p50_p13 = scmp.ne.s32.totalorder %s4875_s22, %s4871_s21 }
  0x89   : > { %s5125_s20 = scalar_select %p35_p1, %s4879_s23, %s37_s19  }
  0x8a   : > { %p5127_p0 = por %p45_p8, %p44_p3  ;;  %p7978_p2 = scmp.eq.s32.totalorder %s4995_s27, 0 }
  0x8b   : > { %p305_p5 = scmp.eq.s32.totalorder %s4995_s27, 1  ;;  %p311_p7 = scmp.eq.s32.totalorder %s4322_s6, 1 }
  0x8c   : > { %p5133_p6 = por %p7978_p2, %p50_p13  ;;  %p4564_p9 = scmp.lt.s32.totalorder %s4883_s24, 2 }
  0x8d   : > { %s404_s29 = sand.u32 1, %s4879_s23   ;;  %p5140_p4 = por %p305_p5, %p44_p3 }
  0x8e   : > { %p5144_p10 = por %p311_p7, %p50_p13  ;;  %s4329_s30 = sshll.u32 %s404_s29, 3 }
  0x8f   : > { %s7980_s14 = scalar_select %p5140_p4, 1, 0 }
  0x90   : > { %s7981_s16 = scalar_select %p5144_p10, 1, 0 }
  0x91   : > { %s4393_s15 = sshll.u32 %s4883_s24, 7  ;;  %s7982_s0 = sld [smem:[#allocation80_spill]] }
  0x92   : > { %s408_s26 = scalar_lea.vmem [#allocation3], %s4329_s30  ;;  %p5158_p11 = pnand %p4564_p9, %p5127_p0 }
  0x93   : > { %s416_s6 = sshll.u32 %s408_s26, 4  ;;  %s405_s19 = scalar_lea.sflag [#allocation4], %s404_s29  ;;  %s5154_s6 = int_to_ptr.vmem [resolvable:$true] %s416_s6 }
  0x94   : > { %p4781_p1 = pneg %p5158_p11 }
  0x97   : > { %s5152_s18 = scalar_lea.hbm %s7982_s0, %s4393_s15  ;;  %s4784_s17 = scalar_lea.hbm %s7982_s0, 256 }
  0x98   : > { %s4779_s1 = scalar_lea.hbm %s5152_s18, 128  ;;  %p4785_p13 = scmp.lt.u32.totalorder %s5152_s18, %s7982_s0 }
  0x99   : > { %p4780_p12 = scmp.ne.s32.totalorder %s5152_s18, %s4779_s1  ;;  %p4786_p0 = scmp.lt.u32.totalorder %s4784_s17, %s4779_s1 }
  0x9a   : > { %p4788_p5 = scmp.lt.u32.totalorder %s4779_s1, %s5152_s18 }
  0x9b   : > { %p4782_p3 = pnand %p4781_p1, %p4780_p12  ;;  %p4787_p2 = por %p4786_p0, %p4785_p13 }
  0x9d   : > { %p4783_p8 = pneg %p4782_p3  ;;  %p4789_p7 = por %p4788_p5, %p4787_p2 }
  0x9f   : > { %p4790_p9 = pnand %p4789_p7, %p4783_p8 }
  0xa1   : > { %4793 = shalt.err (!%p4790_p9)
}
  0xa2   : > { %s4794_s29 = scalar_lea.vmem %s5154_s6, 128  ;;  %s4895_s26 = smov [#allocation3]  }
  0xa3   : > { %p4795_p12 = scmp.ne.s32.totalorder %s5154_s6, %s4794_s29  ;;  %s4799_s30 = sshll.u32 %s4895_s26, 4  ;;  %s4800_s30 = int_to_ptr.vmem [resolvable:$false] %s4799_s30 }
  0xa4   : > { %s4801_s15 = scalar_lea.vmem %s4800_s30, 256  ;;  %p4802_p4 = scmp.lt.s32.totalorder %s5154_s6, %s4800_s30 }
  0xa5   : > { %p4797_p3 = pnand %p4795_p12, %p4781_p1  ;;  %p4803_p13 = scmp.lt.s32.totalorder %s4801_s15, %s4794_s29 }
  0xa7   : > { %p4798_p10 = pneg %p4797_p3  ;;  %p4804_p0 = por %p4803_p13, %p4802_p4 }
  0xa9   : > { %p4805_p2 = pnand %p4804_p0, %p4798_p10 }
  0xab   : > { %4808 = shalt.err (!%p4805_p2)
}
  0xac   : > { %4555 = dma.hbm_to_vmem [thread:$0]  (!%p5158_p11), %s5152_s18, 128, %s5154_s6, %s405_s19  }
  0xad   : > { %p7984_p8 = scmp.ne.s32.totalorder %s7970_s28, 0 }
  0xaf   : > { %425 = sbr.rel (%p7984_p8) target bundleno = 2472 (0x9a8), region = 68 }
  0xb6   : > { %s5190_s1 = sand.u32 1, %s4875_s22  }
  0xb7   : > { %s7858_s17 = sshll.u32 %s5190_s1, 3  ;;  %s428_s13 = scalar_lea.sflag [#allocation4], %s5190_s1 }
  0xb8   : > { %s5196_s25 = scalar_lea.vmem [#allocation3], %s7858_s17 }
  0xb9   : > { %4854 = dma.done.wait (%p5133_p6), %s428_s13, 128  }
  0xba   : > { %4856 = vsyncadd (%p5133_p6), %s428_s13, 4294967168  ;;  %p7985_p4 = scmp.eq.s32.totalorder %s4995_s27, 0 }
  0xbc   : > { %4858 = dma.done.wait (%p7985_p4), [#allocation7], 1024   ;;  %p7986_p10 = pmov %p7985_p4 }
  0xbd   : > { %p7987_p11 = pmov %p7985_p4 }
  0xbe   : > { %4860 = vsyncadd (%p7986_p10), [#allocation7], 4294966272 }
  0xbf   : > { %4862 = dma.done.wait (%p7987_p11), [#allocation10], 2560   ;;  %p7988_p1 = pmov %p7985_p4 }
  0xc0   : > { %v4896_v0 = vmov 0.0   ;;  %s7959_s28 = smov 17   ;;  %vm493_vm0 = vcmask 1043456   ;;  %s7924_s11 = smov 16   ;;  %v5215_v1 = vld [vmem:[%s5196_s25] sm:$0xff]  ;;  %vm805_vm1 = vcmask 130048   ;;  %v502_v11 = vlaneseq }
  0xc1   : > { %4864 = vsyncadd (%p7988_p1), [#allocation10], 4294964736  ;;  %498 = vrot.lane.b32.xlu1 %v4896_v0, %s7959_s28  ;;  %v494_v2 = vsel %vm493_vm0, %v5215_v1, 0.0  ;;  %v5221_v3 = vcombine.high %v5215_v1, %v5215_v1  ;;  %s7869_s18 = smov 15   ;;  %s7867_s6 = smov 1   ;;  %v764_v6 = vld [vmem:[%s7846_s7 + $0x8] sm:$0xff] }
  0xc2   : > { %496 = vrot.lane.b32.xlu0 %v494_v2, %s7959_s28  ;;  %s7861_s12 = smov 127   ;;  %s7859_s19 = smov 113   ;;  %v4629_v5 = vld [vmem:[#allocation8 + $0x4] ss:$8 sps:$4 sm:$0xff]   ;;  %v763_v7 = vld [vmem:[%s7846_s7] sm:$0xff]  ;;  %v7871_v8 = vmov 0  }
  0xc3   : > { %7989 = vst [vmem:[#allocation17_spill] sm:$0xff] %v5221_v3  ;;  %v495_v4 = vsel %vm493_vm0, %v5221_v3, 0.0  ;;  %s7865_s29 = smov 112   ;;  %s7863_s26 = smov 111   ;;  %4343 = vmatprep.mubr.msk.bf16.mxu1 %vm805_vm1, %v4629_v5  ;;  %4625 = vset.pattern.permute.xlu1 %v7871_v8  ;;  %v765_v9 = vld [vmem:[%s7846_s7 + $0x10] sm:$0xff]  ;;  %v766_v10 = vld [vmem:[%s7846_s7 + $0x18] sm:$0xff] }
  0xc4   : > { %4624 = vset.pattern.permute.xlu0 %v7871_v8  ;;  %v5268_v13 = vshrl.u32 %v502_v11, 7  ;;  %v5276_v17 = vand.u32 127, %v502_v11  ;;  %v507_v18 = vld [vmem:[#allocation6] ss:$8 sm:$0x3]  ;;  %vm4906_vm7 = vmmov 1  }
  0xc5   : > { %529 = vrot.lane.b32.xlu1 %v4896_v0, %s7924_s11  ;;  %v537_v23 = vld [vmem:[#allocation6 + $0x1] ss:$8 sm:$0x3]  ;;  %v567_v44 = vld [vmem:[#allocation6 + $0x2] ss:$8 sm:$0x3]  ;;  %vm5334_vm8 = vmpackc.low %vm4906_vm7, %vm493_vm0 }
  0xc6   : > { %500 = vrot.lane.b32.xlu0 %v495_v4, %s7959_s28  ;;  %7990 = vst [vmem:[#allocation18_spill] sm:$0xff] %v5268_v13  ;;  %v5271_v15 = vsub.s32 0, %v5268_v13  ;;  %v5274_v16 = vsub.s32 1, %v5268_v13  ;;  %vm504_vm2 = vcmp.lt.s32.totalorder %v5276_v17, 17  ;;  %vm533_vm3 = vcmp.lt.s32.totalorder %v5276_v17, 16  ;;  %s8008_s17 = smov 127  }
  0xc7   : > { %vm563_vm4 = vcmp.lt.s32.totalorder %v5276_v17, 15  ;;  %v597_v51 = vld [vmem:[#allocation6 + $0x3] ss:$8 sm:$0x3]  ;;  %vm593_vm5 = vcmp.lt.s32.totalorder %v5276_v17, 1  ;;  %vm627_vm6 = vcmp.lt.s32.totalorder %v5276_v17, 127 }
  0xc8   : > { %v512_v21 = vrot.slane %v507_v18, %v5271_v15  ;;  %v516_v22 = vrot.slane %v507_v18, %v5274_v16  ;;  %v542_v26 = vrot.slane %v537_v23, %v5271_v15  ;;  %v546_v27 = vrot.slane %v537_v23, %v5274_v16  ;;  %s8064_s30 = smov 1   ;;  %s8140_s15 = smov 17  }
  0xc9   : > { %527 = vrot.lane.b32.xlu1 %v494_v2, %s7924_s11  ;;  %v572_v49 = vrot.slane %v567_v44, %v5271_v15  ;;  %v576_v50 = vrot.slane %v567_v44, %v5274_v16  ;;  %v602_v55 = vrot.slane %v597_v51, %v5271_v15  ;;  %v606_v56 = vrot.slane %v597_v51, %v5274_v16  ;;  %s8149_s13 = sld [smem:[#allocation88_spill]]  ;;  %p8150_p5 = scmp.ne.s32.totalorder %s7980_s14, 0 }
  0xca   : > { %531 = vrot.lane.b32.xlu0 %v495_v4, %s7924_s11  ;;  %vm657_vm9 = vcmp.lt.s32.totalorder %v5276_v17, 113  ;;  %vm687_vm10 = vcmp.lt.s32.totalorder %v5276_v17, 112  ;;  %vm717_vm11 = vcmp.lt.s32.totalorder %v5276_v17, 111 }
  0xcd   : > { %561 = vrot.lane.b32.xlu1 %v495_v4, %s7869_s18 }
  0xce   : > { %557 = vrot.lane.b32.xlu0 %v494_v2, %s7869_s18 }
  0xd1   : > { %587 = vrot.lane.b32.xlu1 %v494_v2, %s7867_s6 }
  0xd2   : > { %559 = vrot.lane.b32.xlu0 %v4896_v0, %s7869_s18 }
  0xd5   : > { %589 = vrot.lane.b32.xlu1 %v4896_v0, %s7867_s6 }
  0xd6   : > { %591 = vrot.lane.b32.xlu0 %v495_v4, %s7867_s6 }
  0xd9   : > { %625 = vrot.lane.b32.xlu1 %v495_v4, %s7861_s12 }
  0xda   : > { %621 = vrot.lane.b32.xlu0 %v494_v2, %s7861_s12 }
  0xdd   : > { %651 = vrot.lane.b32.xlu1 %v494_v2, %s7859_s19 }
  0xde   : > { %623 = vrot.lane.b32.xlu0 %v4896_v0, %s7861_s12  ;;  %s8009_s12 = smov 113  }
  0xe1   : > { %653 = vrot.lane.b32.xlu1 %v4896_v0, %s7859_s19 }
  0xe2   : > { %655 = vrot.lane.b32.xlu0 %v495_v4, %s7859_s19  ;;  %s8010_s19 = smov 112  }
  0xe5   : > { %685 = vrot.lane.b32.xlu1 %v495_v4, %s7865_s29 }
  0xe6   : > { %681 = vrot.lane.b32.xlu0 %v494_v2, %s7865_s29 }
  0xe9   : > { %711 = vrot.lane.b32.xlu1 %v494_v2, %s7863_s26 }
  0xea   : > { %683 = vrot.lane.b32.xlu0 %v4896_v0, %s7865_s29  ;;  %s8011_s29 = smov 111  }
  0xed   : > { %713 = vrot.lane.b32.xlu1 %v4896_v0, %s7863_s26 }
  0xee   : > { %715 = vrot.lane.b32.xlu0 %v495_v4, %s7863_s26  ;;  %s8063_s26 = smov 15  }
  0xf1   : > { %774 = vperm.xlu1 %4625, %v764_v6  }
  0xf2   : > { %769 = vperm.xlu0 %4624, %v763_v7  }
  0xf5   : > { %779 = vperm.xlu1 %4625, %v765_v9  }
  0xf6   : > { %784 = vperm.xlu0 %4624, %v766_v10  }
 0x133   : > { %v499_v12 = vpop.permute.xlu1 %498 }
 0x134   : > { %v497_v19 = vpop.permute.xlu0 %496  ;;  %v521_v30 = vmul.f32 %v512_v21, %v499_v12  ;;  %v522_v31 = vmul.f32 %v516_v22, %v499_v12  ;;  %v631_v12 = vld [vmem:[#allocation6 + $0x5] ss:$8 sm:$0x3] }
 0x135   : > { %v640_v23 = vrot.slane %v631_v12, %v5274_v16 }
 0x137   : > { %v530_v14 = vpop.permute.xlu1 %529 }
 0x138   : > { %v501_v24 = vpop.permute.xlu0 %500  ;;  %v551_v40 = vmul.f32 %v542_v26, %v530_v14  ;;  %v552_v41 = vmul.f32 %v546_v27, %v530_v14 }
 0x139   : > { %v505_v28 = vsel %vm504_vm2, %v497_v19, %v501_v24  ;;  %v506_v29 = vsel %vm504_vm2, %v501_v24, %v497_v19  ;;  %v661_v24 = vld [vmem:[#allocation6 + $0x6] ss:$8 sm:$0x3] }
 0x13a   : > { %v519_v32 = vmul.f32 %v512_v21, %v506_v29  ;;  %v520_v33 = vmul.f32 %v516_v22, %v505_v28  ;;  %v7996_v22 = vmov 0 }
 0x13b   : > { %v528_v20 = vpop.permute.xlu1 %527  ;;  %v7997_v22 = vsel %vm5334_vm8, 4294967295, %v7996_v22 }
 0x13c   : > { %v5288_v34 = vpack.c.bf16 %v521_v30, %v519_v32  ;;  %v5290_v35 = vpack.c.bf16 %v522_v31, %v520_v33  ;;  %v532_v36 = vpop.permute.xlu0 %531  ;;  %7998 = vst [vmem:[#allocation24_spill] sm:$0xff] %v7997_v22  ;;  %v666_v30 = vrot.slane %v661_v24, %v5271_v15  ;;  %v670_v31 = vrot.slane %v661_v24, %v5274_v16 }
 0x13d   : > { %v534_v38 = vsel %vm533_vm3, %v528_v20, %v532_v36  ;;  %v535_v39 = vsel %vm533_vm3, %v532_v36, %v528_v20  ;;  %v5331_v20 = vpack.c.bf16 %v4896_v0, %v5221_v3 }
 0x13e   : > { %v549_v42 = vmul.f32 %v542_v26, %v535_v39  ;;  %v550_v43 = vmul.f32 %v546_v27, %v534_v38  ;;  %812 = vmatprep.subr.bf16.mxu1 %v5290_v35  ;;  %v636_v26 = vrot.slane %v631_v12, %v5271_v15  ;;  %v5346_v27 = vpack.c.bf16 %v4896_v0, %v5215_v1 }
 0x13f   : > { %v562_v25 = vpop.permute.xlu1 %561  ;;  %813 = vmatpush1.bf16.msra.mxu1 %v5288_v34  ;;  %7995 = vst [vmem:[#allocation23_spill] sm:$0xff] %v5331_v20 }
 0x140   : > { %v5299_v45 = vpack.c.bf16 %v551_v40, %v549_v42  ;;  %v5301_v46 = vpack.c.bf16 %v552_v41, %v550_v43  ;;  %v558_v47 = vpop.permute.xlu0 %557  ;;  %7999 = vst [vmem:[#allocation25_spill] sm:$0xff] %v5346_v27 }
 0x141   : > { %v564_v52 = vsel %vm563_vm4, %v558_v47, %v562_v25  ;;  %v565_v53 = vsel %vm563_vm4, %v562_v25, %v558_v47 }
 0x142   : > { %814 = vmatprep.subr.bf16.mxu1 %v5301_v46  ;;  %v579_v58 = vmul.f32 %v572_v49, %v565_v53  ;;  %v580_v59 = vmul.f32 %v576_v50, %v564_v52 }
 0x143   : > { %v588_v37 = vpop.permute.xlu1 %587  ;;  %815 = vmatpush1.bf16.msra.mxu1 %v5299_v45 }
 0x144   : > { %v560_v54 = vpop.permute.xlu0 %559 }
 0x145   : > { %v581_v60 = vmul.f32 %v572_v49, %v560_v54  ;;  %v582_v61 = vmul.f32 %v576_v50, %v560_v54 }
 0x147   : > { %v590_v48 = vpop.permute.xlu1 %589  ;;  %v5314_v62 = vpack.c.bf16 %v581_v60, %v579_v58  ;;  %v5316_v63 = vpack.c.bf16 %v582_v61, %v580_v59 }
 0x148   : > { %v611_v2 = vmul.f32 %v602_v55, %v590_v48  ;;  %v612_v4 = vmul.f32 %v606_v56, %v590_v48  ;;  %v592_v5 = vpop.permute.xlu0 %591  ;;  %v691_v48 = vld [vmem:[#allocation6 + $0x7] ss:$8 sm:$0x3] }
 0x149   : > { %7991 = vst [vmem:[#allocation19_spill] sm:$0xff] %v5314_v62  ;;  %7992 = vst [vmem:[#allocation20_spill] sm:$0xff] %v5316_v63  ;;  %v594_v7 = vsel %vm593_vm5, %v588_v37, %v592_v5  ;;  %v595_v9 = vsel %vm593_vm5, %v592_v5, %v588_v37  ;;  %816 = vmatprep.subr.bf16.mxu1 %v5316_v63  ;;  %v696_v53 = vrot.slane %v691_v48, %v5271_v15 }
 0x14a   : > { %v609_v10 = vmul.f32 %v602_v55, %v595_v9  ;;  %v610_v11 = vmul.f32 %v606_v56, %v594_v7  ;;  %817 = vmatpush1.bf16.msra.mxu1 %v5314_v62  ;;  %v700_v54 = vrot.slane %v691_v48, %v5274_v16  ;;  %v721_v55 = vld [vmem:[#allocation6 + $0x10] ss:$8 sm:$0x3] }
 0x14b   : > { %v626_v57 = vpop.permute.xlu1 %625  ;;  %v726_v59 = vrot.slane %v721_v55, %v5271_v15  ;;  %v730_v60 = vrot.slane %v721_v55, %v5274_v16 }
 0x14c   : > { %v5325_v14 = vpack.c.bf16 %v611_v2, %v609_v10  ;;  %v5327_v18 = vpack.c.bf16 %v612_v4, %v610_v11  ;;  %v622_v19 = vpop.permute.xlu0 %621 }
 0x14d   : > { %v629_v25 = vsel %vm627_vm6, %v626_v57, %v622_v19  ;;  %v628_v28 = vsel %vm627_vm6, %v622_v19, %v626_v57 }
 0x14e   : > { %7993 = vst [vmem:[#allocation21_spill] sm:$0xff] %v5325_v14  ;;  %7994 = vst [vmem:[#allocation22_spill] sm:$0xff] %v5327_v18  ;;  %818 = vmatprep.subr.bf16.mxu1 %v5327_v18  ;;  %v644_v32 = vmul.f32 %v640_v23, %v629_v25  ;;  %v643_v0 = vmul.f32 %v636_v26, %v628_v28  ;;  %v4627_v28 = vld [vmem:[#allocation8] ss:$8 sps:$4 sm:$0xff]  }
 0x14f   : > { %v652_v6 = vpop.permute.xlu1 %651  ;;  %819 = vmatpush1.bf16.msra.mxu1 %v5325_v14 }
 0x150   : > { %v624_v29 = vpop.permute.xlu0 %623  ;;  %4397 = vmatprep.subr.msk.bf16.mxu1 %vm5334_vm8, %v5331_v20 }
 0x151   : > { %v645_v33 = vmul.f32 %v636_v26, %v624_v29  ;;  %v646_v36 = vmul.f32 %v640_v23, %v624_v29  ;;  %v4630_v29 = vld [vmem:[#allocation8 + $0x14] ss:$8 sps:$4 sm:$0xff]  }
 0x153   : > { %v654_v21 = vpop.permute.xlu1 %653  ;;  %v5356_v1 = vpack.c.bf16 %v646_v36, %v644_v32  ;;  %4400 = vmatpush1.bf16.msk.msra.mxu1 %vm5334_vm8, %v5346_v27  ;;  %v5361_v41 = vpack.c.bf16 %v645_v33, %v643_v0 }
 0x154   : > { %v675_v38 = vmul.f32 %v666_v30, %v654_v21  ;;  %v676_v39 = vmul.f32 %v670_v31, %v654_v21  ;;  %v656_v40 = vpop.permute.xlu0 %655 }
 0x155   : > { %8000 = vst [vmem:[#allocation26_spill] sm:$0xff] %v5356_v1  ;;  %8001 = vst [vmem:[#allocation27_spill] sm:$0xff] %v5361_v41  ;;  %v658_v42 = vsel %vm657_vm9, %v652_v6, %v656_v40  ;;  %v659_v43 = vsel %vm657_vm9, %v656_v40, %v652_v6  ;;  %822 = vmatprep.subr.bf16.mxu1 %v5356_v1 }
 0x156   : > { %v673_v44 = vmul.f32 %v666_v30, %v658_v42  ;;  %v674_v47 = vmul.f32 %v670_v31, %v659_v43  ;;  %v4632_v30 = vld [vmem:[#allocation8 + $0x10] ss:$8 sps:$4 sm:$0xff]  }
 0x157   : > { %v686_v37 = vpop.permute.xlu1 %685  ;;  %823 = vmatpush1.bf16.msra.mxu1 %v5361_v41 }
 0x158   : > { %v5370_v50 = vpack.c.bf16 %v675_v38, %v673_v44  ;;  %v5372_v51 = vpack.c.bf16 %v676_v39, %v674_v47  ;;  %v682_v52 = vpop.permute.xlu0 %681 }
 0x159   : > { %v688_v56 = vsel %vm687_vm10, %v682_v52, %v686_v37  ;;  %v689_v57 = vsel %vm687_vm10, %v686_v37, %v682_v52 }
 0x15a   : > { %8002 = vst [vmem:[#allocation28_spill] sm:$0xff] %v5370_v50  ;;  %8003 = vst [vmem:[#allocation29_spill] sm:$0xff] %v5372_v51  ;;  %824 = vmatprep.subr.bf16.mxu1 %v5372_v51  ;;  %v703_v61 = vmul.f32 %v696_v53, %v688_v56  ;;  %v704_v2 = vmul.f32 %v700_v54, %v689_v57 }
 0x15b   : > { %v712_v49 = vpop.permute.xlu1 %711  ;;  %825 = vmatpush1.bf16.msra.mxu1 %v5370_v50 }
 0x15c   : > { %v684_v58 = vpop.permute.xlu0 %683 }
 0x15d   : > { %v705_v4 = vmul.f32 %v696_v53, %v684_v58  ;;  %v706_v5 = vmul.f32 %v700_v54, %v684_v58 }
 0x15f   : > { %v714_v6 = vpop.permute.xlu1 %713  ;;  %v5385_v7 = vpack.c.bf16 %v705_v4, %v703_v61  ;;  %v5387_v9 = vpack.c.bf16 %v706_v5, %v704_v2 }
 0x160   : > { %v716_v10 = vpop.permute.xlu0 %715  ;;  %v735_v11 = vmul.f32 %v726_v59, %v714_v6  ;;  %v736_v12 = vmul.f32 %v730_v60, %v714_v6 }
 0x161   : > { %8004 = vst [vmem:[#allocation30_spill] sm:$0xff] %v5385_v7  ;;  %8005 = vst [vmem:[#allocation31_spill] sm:$0xff] %v5387_v9  ;;  %v718_v19 = vsel %vm717_vm11, %v712_v49, %v716_v10  ;;  %v719_v21 = vsel %vm717_vm11, %v716_v10, %v712_v49  ;;  %826 = vmatprep.subr.bf16.mxu1 %v5387_v9 }
 0x162   : > { %v733_v23 = vmul.f32 %v726_v59, %v718_v19  ;;  %v734_v24 = vmul.f32 %v730_v60, %v719_v21  ;;  %827 = vmatpush1.bf16.msra.mxu1 %v5385_v7 }
 0x164   : > { %v5395_v25 = vpack.c.bf16 %v735_v11, %v733_v23  ;;  %v5397_v26 = vpack.c.bf16 %v736_v12, %v734_v24 }
 0x166   : > { %8006 = vst [vmem:[#allocation32_spill] sm:$0xff] %v5395_v25  ;;  %8007 = vst [vmem:[#allocation33_spill] sm:$0xff] %v5397_v26  ;;  %828 = vmatprep.subr.bf16.mxu1 %v5397_v26 }
 0x167   : > { %829 = vmatpush1.bf16.msra.mxu1 %v5395_v25 }
 0x168   : > { %1444 = vmatprep.subr.bf16.mxu1 %v5290_v35 }
 0x16a   : > { %845 = vmatmul.mubr.bf16.vlgmr.msra.gmra.mrb[0].mxu1 %v4627_v28  ;;  %v4635_v28 = vld [vmem:[#allocation9 + $0x4] ss:$16 sps:$4 sm:$0xff]  }
 0x16b   : > { %1445 = vmatpush1.bf16.msra.mxu1 %v5288_v34  ;;  %4344 = vmatprep.mubr.msk.bf16.mxu1 %vm805_vm1, %v4630_v29 }
 0x16c   : > { %1446 = vmatprep.subr.bf16.mxu1 %v5301_v46 }
 0x16f   : > { %1447 = vmatpush1.bf16.msra.mxu1 %v5299_v45 }
 0x170   : > { %1448 = vmatprep.subr.bf16.mxu1 %v5316_v63  ;;  %v775_v37 = vpop.permute.xlu1 %774 }
 0x171   : > { %v770_v31 = vpop.permute.xlu0 %769 }
 0x172   : > { %855 = vmatmul.mubr.bf16.gmra.mrb[4].mxu1 %v4632_v30 }
 0x173   : > { %1449 = vmatpush1.bf16.msra.mxu1 %v5314_v62  ;;  %1476 = vmatprep.mubr.bf16.mxu1 %v4635_v28 }
 0x174   : > { %1450 = vmatprep.subr.bf16.mxu1 %v5327_v18  ;;  %v780_v59 = vpop.permute.xlu1 %779 }
 0x175   : > { %v785_v61 = vpop.permute.xlu0 %784 }
 0x177   : > { %1451 = vmatpush1.bf16.msra.mxu1 %v5325_v14 }
 0x178   : > { %4403 = vmatprep.subr.msk.bf16.mxu1 %vm5334_vm8, %v5331_v20 }
 0x17b   : > { %4406 = vmatpush1.bf16.msk.msra.mxu1 %vm5334_vm8, %v5346_v27 }
 0x17c   : > { %1454 = vmatprep.subr.bf16.mxu1 %v5356_v1 }
 0x17f   : > { %1455 = vmatpush1.bf16.msra.mxu1 %v5361_v41 }
 0x180   : > { %1456 = vmatprep.subr.bf16.mxu1 %v5372_v51 }
 0x183   : > { %1457 = vmatpush1.bf16.msra.mxu1 %v5370_v50 }
 0x184   : > { %1458 = vmatprep.subr.bf16.mxu1 %v5387_v9 }
 0x187   : > { %1459 = vmatpush1.bf16.msra.mxu1 %v5385_v7 }
 0x188   : > { %1460 = vmatprep.subr.bf16.mxu1 %v5397_v26 }
 0x18b   : > { %1461 = vmatpush1.bf16.msra.mxu1 %v5395_v25 }
 0x23d   : > { %v846_v32 = vpop.f32.mrb[0].mxu1 }
 0x23e   : > { %v847_v33 = vadd.f32 %v846_v32, %v770_v31  ;;  %v848_v36 = vpop.f32.mrb[1].mxu1 }
 0x23f   : > { %v850_v0 = vpop.f32.mrb[2].mxu1  ;;  %v849_v53 = vadd.f32 %v848_v36, %v770_v31 }
 0x240   : > { %vm865_vm12 = vcmp.ge.f32.partialorder %v847_v33, 0.0  ;;  %v873_v38 = vmul.f32 0.2, %v847_v33  ;;  %v851_v39 = vadd.f32 %v850_v0, %v775_v37  ;;  %v852_v40 = vpop.f32.mrb[3].mxu1 }
 0x241   : > { %v853_v54 = vadd.f32 %v852_v40, %v775_v37  ;;  %v874_v55 = vmul.f32 0.2, %v849_v53  ;;  %vm866_vm14 = vcmp.ge.f32.partialorder %v849_v53, 0.0  ;;  %v1375_v37 = vld [vmem:[%s7847_s8] sm:$0xff]  ;;  %v1377_v40 = vld [vmem:[%s7847_s8 + $0x10] sm:$0xff] }
 0x242   : > { %v5424_v42 = vsel %vm865_vm12, %v847_v33, %v873_v38  ;;  %vm867_vm13 = vcmp.ge.f32.partialorder %v851_v39, 0.0  ;;  %v875_v43 = vmul.f32 0.2, %v851_v39  ;;  %v1376_v38 = vld [vmem:[%s7847_s8 + $0x8] sm:$0xff] }
 0x243   : > { %889 = vrot.lane.b32.xlu1 %v5424_v42, %s7959_s28  ;;  %v876_v56 = vmul.f32 0.2, %v853_v54  ;;  %vm868_vm15 = vcmp.ge.f32.partialorder %v853_v54, 0.0  ;;  %v5448_v57 = vsel %vm866_vm14, %v849_v53, %v874_v55  ;;  %vm1437_vm14 = vcmask 392192  }
 0x244   : > { %v5428_v44 = vsel %vm867_vm13, %v851_v39, %v875_v43 }
 0x245   : > { %v856_v47 = vpop.f32.mrb[4].mxu1  ;;  %891 = vrot.lane.b32.xlu0 %v5428_v44, %s7959_s28  ;;  %v5452_v58 = vsel %vm868_vm15, %v853_v54, %v876_v56 }
 0x246   : > { %v858_v48 = vpop.f32.mrb[5].mxu1  ;;  %v857_v60 = vadd.f32 %v856_v47, %v780_v59  ;;  %v913_v47 = vld [vmem:[#allocation6] ss:$8 sm:$0x3] }
 0x247   : > { %v860_v49 = vpop.f32.mrb[6].mxu1  ;;  %941 = vrot.lane.b32.xlu1 %v5424_v42, %s7924_s11  ;;  %v859_v11 = vadd.f32 %v858_v48, %v780_v59  ;;  %v1378_v48 = vld [vmem:[%s7847_s8 + $0x18] sm:$0xff]  ;;  %v922_v53 = vrot.slane %v913_v47, %v5274_v16 }
 0x248   : > { %v862_v52 = vpop.f32.mrb[7].mxu1  ;;  %v861_v2 = vadd.f32 %v860_v49, %v785_v61  ;;  %v877_v4 = vmul.f32 0.2, %v857_v60  ;;  %vm869_vm0 = vcmp.ge.f32.partialorder %v857_v60, 0.0 }
 0x249   : > { %943 = vrot.lane.b32.xlu0 %v5428_v44, %s7924_s11  ;;  %v863_v12 = vadd.f32 %v862_v52, %v785_v61  ;;  %v878_v19 = vmul.f32 0.2, %v859_v11  ;;  %vm870_vm12 = vcmp.ge.f32.partialorder %v859_v11, 0.0  ;;  %v918_v52 = vrot.slane %v913_v47, %v5271_v15 }
 0x24a   : > { %v879_v5 = vmul.f32 0.2, %v861_v2  ;;  %vm871_vm7 = vcmp.ge.f32.partialorder %v861_v2, 0.0  ;;  %v5472_v6 = vsel %vm869_vm0, %v857_v60, %v877_v4 }
 0x24b   : > { %993 = vrot.lane.b32.xlu1 %v5424_v42, %s7869_s18  ;;  %v880_v21 = vmul.f32 0.2, %v863_v12  ;;  %vm872_vm13 = vcmp.ge.f32.partialorder %v863_v12, 0.0  ;;  %v5496_v23 = vsel %vm870_vm12, %v859_v11, %v878_v19 }
 0x24c   : > { %v5476_v10 = vsel %vm871_vm7, %v861_v2, %v879_v5 }
 0x24d   : > { %995 = vrot.lane.b32.xlu0 %v5428_v44, %s7869_s18  ;;  %v5500_v24 = vsel %vm872_vm13, %v863_v12, %v880_v21 }
 0x24f   : > { %1045 = vrot.lane.b32.xlu1 %v5424_v42, %s7867_s6 }
 0x251   : > { %1047 = vrot.lane.b32.xlu0 %v5428_v44, %s7867_s6 }
 0x253   : > { %1105 = vrot.lane.b32.xlu1 %v5424_v42, %s8008_s17 }
 0x255   : > { %1107 = vrot.lane.b32.xlu0 %v5428_v44, %s8008_s17 }
 0x257   : > { %897 = vrot.lane.b32.xlu1 %v5448_v57, %s7959_s28 }
 0x259   : > { %899 = vrot.lane.b32.xlu0 %v5452_v58, %s7959_s28 }
 0x25b   : > { %949 = vrot.lane.b32.xlu1 %v5448_v57, %s7924_s11 }
 0x25d   : > { %951 = vrot.lane.b32.xlu0 %v5452_v58, %s7924_s11 }
 0x25f   : > { %1001 = vrot.lane.b32.xlu1 %v5448_v57, %s7869_s18 }
 0x261   : > { %1003 = vrot.lane.b32.xlu0 %v5452_v58, %s7869_s18 }
 0x263   : > { %1053 = vrot.lane.b32.xlu1 %v5448_v57, %s7867_s6 }
 0x265   : > { %1055 = vrot.lane.b32.xlu0 %v5452_v58, %s7867_s6 }
 0x267   : > { %1113 = vrot.lane.b32.xlu1 %v5448_v57, %s8008_s17 }
 0x269   : > { %1115 = vrot.lane.b32.xlu0 %v5452_v58, %s8008_s17 }
 0x26b   : > { %893 = vrot.lane.b32.xlu1 %v5472_v6, %s7959_s28 }
 0x26d   : > { %895 = vrot.lane.b32.xlu0 %v5476_v10, %s7959_s28 }
 0x26f   : > { %945 = vrot.lane.b32.xlu1 %v5472_v6, %s7924_s11 }
 0x271   : > { %947 = vrot.lane.b32.xlu0 %v5476_v10, %s7924_s11 }
 0x273   : > { %997 = vrot.lane.b32.xlu1 %v5472_v6, %s7869_s18 }
 0x275   : > { %999 = vrot.lane.b32.xlu0 %v5476_v10, %s7869_s18 }
 0x277   : > { %1049 = vrot.lane.b32.xlu1 %v5472_v6, %s7867_s6 }
 0x279   : > { %1051 = vrot.lane.b32.xlu0 %v5476_v10, %s7867_s6 }
 0x27b   : > { %1109 = vrot.lane.b32.xlu1 %v5472_v6, %s8008_s17 }
 0x27d   : > { %1111 = vrot.lane.b32.xlu0 %v5476_v10, %s8008_s17 }
 0x27f   : > { %901 = vrot.lane.b32.xlu1 %v5496_v23, %s7959_s28 }
 0x281   : > { %903 = vrot.lane.b32.xlu0 %v5500_v24, %s7959_s28 }
 0x283   : > { %1157 = vrot.lane.b32.xlu1 %v5424_v42, %s8009_s12 }
 0x285   : > { %1159 = vrot.lane.b32.xlu0 %v5428_v44, %s8009_s12 }
 0x287   : > { %953 = vrot.lane.b32.xlu1 %v5496_v23, %s7924_s11 }
 0x289   : > { %955 = vrot.lane.b32.xlu0 %v5500_v24, %s7924_s11 }
 0x28b   : > { %1005 = vrot.lane.b32.xlu1 %v5496_v23, %s7869_s18 }
 0x28d   : > { %1167 = vrot.lane.b32.xlu0 %v5452_v58, %s8009_s12 }
 0x28f   : > { %1057 = vrot.lane.b32.xlu1 %v5496_v23, %s7867_s6 }
 0x291   : > { %1007 = vrot.lane.b32.xlu0 %v5500_v24, %s7869_s18  ;;  %s8077_s18 = sld [smem:[#allocation85_spill]] }
 0x293   : > { %1117 = vrot.lane.b32.xlu1 %v5496_v23, %s8008_s17 }
 0x295   : > { %1163 = vrot.lane.b32.xlu0 %v5476_v10, %s8009_s12 }
 0x297   : > { %1165 = vrot.lane.b32.xlu1 %v5448_v57, %s8009_s12 }
 0x299   : > { %1059 = vrot.lane.b32.xlu0 %v5500_v24, %s7867_s6  ;;  %s8138_s6 = smov 16  }
 0x29b   : > { %1161 = vrot.lane.b32.xlu1 %v5472_v6, %s8009_s12 }
 0x29d   : > { %1211 = vrot.lane.b32.xlu0 %v5428_v44, %s8010_s19 }
 0x29f   : > { %1169 = vrot.lane.b32.xlu1 %v5496_v23, %s8009_s12 }
 0x2a1   : > { %1219 = vrot.lane.b32.xlu0 %v5452_v58, %s8010_s19 }
 0x2a3   : > { %1209 = vrot.lane.b32.xlu1 %v5424_v42, %s8010_s19 }
 0x2a5   : > { %1215 = vrot.lane.b32.xlu0 %v5476_v10, %s8010_s19 }
 0x2a7   : > { %1217 = vrot.lane.b32.xlu1 %v5448_v57, %s8010_s19 }
 0x2a9   : > { %1119 = vrot.lane.b32.xlu0 %v5500_v24, %s8008_s17 }
 0x2ab   : > { %1213 = vrot.lane.b32.xlu1 %v5472_v6, %s8010_s19 }
 0x2ad   : > { %1263 = vrot.lane.b32.xlu0 %v5428_v44, %s8011_s29 }
 0x2af   : > { %1221 = vrot.lane.b32.xlu1 %v5496_v23, %s8010_s19 }
 0x2b1   : > { %1171 = vrot.lane.b32.xlu0 %v5500_v24, %s8009_s12 }
 0x2b3   : > { %1261 = vrot.lane.b32.xlu1 %v5424_v42, %s8011_s29 }
 0x2b5   : > { %v890_v29 = vpop.permute.xlu1 %889  ;;  %1271 = vrot.lane.b32.xlu0 %v5452_v58, %s8011_s29 }
 0x2b7   : > { %1269 = vrot.lane.b32.xlu1 %v5448_v57, %s8011_s29  ;;  %v892_v30 = vpop.permute.xlu0 %891 }
 0x2b9   : > { %v5558_v31 = vpop.permute.xlu1 %941  ;;  %1223 = vrot.lane.b32.xlu0 %v5500_v24, %s8010_s19 }
 0x2bb   : > { %1265 = vrot.lane.b32.xlu1 %v5472_v6, %s8011_s29  ;;  %v5564_v32 = vpop.permute.xlu0 %943 }
 0x2bd   : > { %v5566_v33 = vpop.permute.xlu1 %993  ;;  %1267 = vrot.lane.b32.xlu0 %v5476_v10, %s8011_s29 }
 0x2bf   : > { %1273 = vrot.lane.b32.xlu1 %v5496_v23, %s8011_s29  ;;  %v5572_v36 = vpop.permute.xlu0 %995 }
 0x2c1   : > { %v5577_v0 = vpop.permute.xlu1 %1045  ;;  %1275 = vrot.lane.b32.xlu0 %v5500_v24, %s8011_s29 }
 0x2c3   : > { %1381 = vperm.xlu1 %4625, %v1375_v37   ;;  %v5584_v39 = vpop.permute.xlu0 %1047 }
 0x2c5   : > { %v5589_v43 = vpop.permute.xlu1 %1105  ;;  %1386 = vperm.xlu0 %4624, %v1376_v38  }
 0x2c7   : > { %1391 = vperm.xlu1 %4625, %v1377_v40   ;;  %v5594_v49 = vpop.permute.xlu0 %1107 }
 0x2c9   : > { %v898_v54 = vpop.permute.xlu1 %897  ;;  %1396 = vperm.xlu0 %4624, %v1378_v48  }
 0x2ca   : > { %v905_v55 = vsel %vm504_vm2, %v890_v29, %v898_v54  ;;  %v909_v56 = vsel %vm504_vm2, %v898_v54, %v890_v29 }
 0x2cb   : > { %v900_v59 = vpop.permute.xlu0 %899  ;;  %v925_v2 = vmul.f32 %v918_v52, %v909_v56  ;;  %v926_v4 = vmul.f32 %v922_v53, %v905_v55 }
 0x2cc   : > { %v906_v60 = vsel %vm504_vm2, %v892_v30, %v900_v59  ;;  %v910_v61 = vsel %vm504_vm2, %v900_v59, %v892_v30 }
 0x2cd   : > { %v927_v5 = vmul.f32 %v918_v52, %v910_v61  ;;  %v928_v11 = vmul.f32 %v922_v53, %v906_v60  ;;  %v950_v12 = vpop.permute.xlu1 %949 }
 0x2ce   : > { %v957_v26 = vsel %vm533_vm3, %v5558_v31, %v950_v12  ;;  %v961_v22 = vsel %vm533_vm3, %v950_v12, %v5558_v31 }
 0x2cf   : > { %v5606_v19 = vpack.c.bf16 %v927_v5, %v925_v2  ;;  %v5608_v21 = vpack.c.bf16 %v928_v11, %v926_v4  ;;  %v952_v28 = vpop.permute.xlu0 %951  ;;  %v965_v5 = vld [vmem:[#allocation6 + $0x1] ss:$8 sm:$0x3] }
 0x2d0   : > { %v958_v8 = vsel %vm533_vm3, %v5564_v32, %v952_v28  ;;  %v974_v13 = vrot.slane %v965_v5, %v5274_v16  ;;  %v970_v25 = vrot.slane %v965_v5, %v5271_v15  ;;  %v962_v9 = vsel %vm533_vm3, %v952_v28, %v5564_v32  ;;  %v1017_v32 = vld [vmem:[#allocation6 + $0x2] ss:$8 sm:$0x3] }
 0x2d1   : > { %8012 = vst [vmem:[#allocation34_spill] sm:$0xff] %v5606_v19  ;;  %8013 = vst [vmem:[#allocation35_spill] sm:$0xff] %v5608_v21  ;;  %v5610_v37 = vpop.permute.xlu1 %1001  ;;  %1462 = vmatprep.subr.bf16.mxu1 %v5608_v21 }
 0x2d2   : > { %1463 = vmatpush1.bf16.msra.mxu1 %v5606_v19  ;;  %v980_v50 = vmul.f32 %v974_v13, %v958_v8  ;;  %v978_v20 = vmul.f32 %v974_v13, %v957_v26  ;;  %v979_v14 = vmul.f32 %v970_v25, %v962_v9  ;;  %v1026_v26 = vrot.slane %v1017_v32, %v5274_v16 }
 0x2d3   : > { %v1004_v29 = vpop.permute.xlu0 %1003 }
 0x2d5   : > { %v5614_v38 = vpop.permute.xlu1 %1053 }
 0x2d7   : > { %v5616_v30 = vpop.permute.xlu0 %1055 }
 0x2d9   : > { %v5618_v40 = vpop.permute.xlu1 %1113 }
 0x2db   : > { %v5620_v47 = vpop.permute.xlu0 %1115 }
 0x2dd   : > { %v894_v48 = vpop.permute.xlu1 %893 }
 0x2df   : > { %v896_v54 = vpop.permute.xlu0 %895 }
 0x2e1   : > { %v946_v55 = vpop.permute.xlu1 %945 }
 0x2e3   : > { %v948_v56 = vpop.permute.xlu0 %947 }
 0x2e5   : > { %v5622_v59 = vpop.permute.xlu1 %997 }
 0x2e7   : > { %v5624_v60 = vpop.permute.xlu0 %999 }
 0x2e9   : > { %v5626_v61 = vpop.permute.xlu1 %1049 }
 0x2eb   : > { %v5628_v2 = vpop.permute.xlu0 %1051 }
 0x2ed   : > { %v5630_v4 = vpop.permute.xlu1 %1109 }
 0x2ef   : > { %v5632_v11 = vpop.permute.xlu0 %1111 }
 0x2f1   : > { %v902_v3 = vpop.permute.xlu1 %901 }
 0x2f2   : > { %v907_v19 = vsel %vm504_vm2, %v894_v48, %v902_v3  ;;  %v911_v21 = vsel %vm504_vm2, %v902_v3, %v894_v48 }
 0x2f3   : > { %v904_v7 = vpop.permute.xlu0 %903  ;;  %v929_v1 = vmul.f32 %v918_v52, %v911_v21  ;;  %v930_v3 = vmul.f32 %v922_v53, %v907_v19  ;;  %v5664_v21 = vpack.c.bf16 %v980_v50, %v978_v20  ;;  %v1022_v20 = vrot.slane %v1017_v32, %v5271_v15  ;;  %v1069_v32 = vld [vmem:[#allocation6 + $0x3] ss:$8 sm:$0x3] }
 0x2f4   : > { %v908_v51 = vsel %vm504_vm2, %v896_v54, %v904_v7  ;;  %v912_v41 = vsel %vm504_vm2, %v904_v7, %v896_v54  ;;  %v977_v7 = vmul.f32 %v970_v25, %v961_v22  ;;  %v1009_v50 = vsel %vm563_vm4, %v5566_v33, %v5610_v37 }
 0x2f5   : > { %v931_v48 = vmul.f32 %v918_v52, %v912_v41  ;;  %v932_v5 = vmul.f32 %v922_v53, %v908_v51  ;;  %v5653_v27 = vpop.permute.xlu1 %1157  ;;  %8016 = vst [vmem:[#allocation38_spill] sm:$0xff] %v5664_v21  ;;  %v1010_v41 = vsel %vm563_vm4, %v5572_v36, %v1004_v29  ;;  %v1014_v52 = vsel %vm563_vm4, %v1004_v29, %v5572_v36 }
 0x2f6   : > { %v5676_v22 = vpack.c.bf16 %v979_v14, %v977_v7  ;;  %v1032_v53 = vmul.f32 %v1026_v26, %v1010_v41  ;;  %v1030_v36 = vmul.f32 %v1026_v26, %v1009_v50  ;;  %v1031_v29 = vmul.f32 %v1022_v20, %v1014_v52 }
 0x2f7   : > { %v5658_v8 = vpack.c.bf16 %v931_v48, %v929_v1  ;;  %v5660_v28 = vpack.c.bf16 %v932_v5, %v930_v3  ;;  %v5662_v18 = vpop.permute.xlu0 %1159  ;;  %v1013_v5 = vsel %vm563_vm4, %v5610_v37, %v5566_v33  ;;  %v1078_v37 = vrot.slane %v1069_v32, %v5274_v16 }
 0x2f8   : > { %8017 = vst [vmem:[#allocation39_spill] sm:$0xff] %v5676_v22 }
 0x2f9   : > { %8014 = vst [vmem:[#allocation36_spill] sm:$0xff] %v5658_v8  ;;  %8015 = vst [vmem:[#allocation37_spill] sm:$0xff] %v5660_v28  ;;  %v954_v51 = vpop.permute.xlu1 %953  ;;  %1464 = vmatprep.subr.bf16.mxu1 %v5660_v28 }
 0x2fa   : > { %v959_v1 = vsel %vm533_vm3, %v946_v55, %v954_v51  ;;  %v963_v9 = vsel %vm533_vm3, %v954_v51, %v946_v55  ;;  %1465 = vmatpush1.bf16.msra.mxu1 %v5658_v8  ;;  %v1029_v51 = vmul.f32 %v1022_v20, %v1013_v5  ;;  %v1074_v5 = vrot.slane %v1069_v32, %v5271_v15 }
 0x2fb   : > { %1466 = vmatprep.subr.bf16.mxu1 %v5664_v21  ;;  %v956_v31 = vpop.permute.xlu0 %955  ;;  %v981_v19 = vmul.f32 %v970_v25, %v963_v9  ;;  %v982_v54 = vmul.f32 %v974_v13, %v959_v1 }
 0x2fc   : > { %v960_v12 = vsel %vm533_vm3, %v948_v56, %v956_v31  ;;  %v964_v14 = vsel %vm533_vm3, %v956_v31, %v948_v56  ;;  %v5717_v50 = vpack.c.bf16 %v1031_v29, %v1029_v51  ;;  %v1061_v31 = vsel %vm593_vm5, %v5577_v0, %v5614_v38 }
 0x2fd   : > { %v983_v55 = vmul.f32 %v970_v25, %v964_v14  ;;  %v984_v3 = vmul.f32 %v974_v13, %v960_v12  ;;  %v1006_v48 = vpop.permute.xlu1 %1005  ;;  %v5702_v25 = vpack.c.bf16 %v1032_v53, %v1030_v36  ;;  %v1062_v13 = vsel %vm593_vm5, %v5584_v39, %v5616_v30 }
 0x2fe   : > { %1467 = vmatpush1.bf16.msra.mxu1 %v5676_v22  ;;  %v1011_v1 = vsel %vm563_vm4, %v5622_v59, %v1006_v48  ;;  %v1015_v9 = vsel %vm563_vm4, %v1006_v48, %v5622_v59  ;;  %8021 = vst [vmem:[#allocation43_spill] sm:$0xff] %v5717_v50  ;;  %v1066_v53 = vsel %vm593_vm5, %v5616_v30, %v5584_v39 }
 0x2ff   : > { %v5696_v7 = vpack.c.bf16 %v983_v55, %v981_v19  ;;  %v5698_v41 = vpack.c.bf16 %v984_v3, %v982_v54  ;;  %v5700_v56 = vpop.permute.xlu0 %1167  ;;  %8020 = vst [vmem:[#allocation42_spill] sm:$0xff] %v5702_v25  ;;  %v1084_v12 = vmul.f32 %v1078_v37, %v1062_v13  ;;  %v1033_v19 = vmul.f32 %v1022_v20, %v1015_v9 }
 0x300   : > { %v1034_v54 = vmul.f32 %v1026_v26, %v1011_v1  ;;  %v1065_v39 = vsel %vm593_vm5, %v5614_v38, %v5577_v0  ;;  %v1082_v30 = vmul.f32 %v1078_v37, %v1061_v31 }
 0x301   : > { %8018 = vst [vmem:[#allocation40_spill] sm:$0xff] %v5696_v7  ;;  %8019 = vst [vmem:[#allocation41_spill] sm:$0xff] %v5698_v41  ;;  %v1058_v33 = vpop.permute.xlu1 %1057  ;;  %1468 = vmatprep.subr.bf16.mxu1 %v5698_v41  ;;  %v1081_v32 = vmul.f32 %v1074_v5, %v1065_v39 }
 0x302   : > { %1469 = vmatpush1.bf16.msra.mxu1 %v5696_v7  ;;  %v1063_v13 = vsel %vm593_vm5, %v5626_v61, %v1058_v33  ;;  %v1067_v0 = vsel %vm593_vm5, %v1058_v33, %v5626_v61  ;;  %v4633_v33 = vld [vmem:[#allocation9] ss:$16 sps:$4 sm:$0xff]  }
 0x303   : > { %1470 = vmatprep.subr.bf16.mxu1 %v5702_v25  ;;  %v1008_v52 = vpop.permute.xlu0 %1007 }
 0x304   : > { %v1012_v59 = vsel %vm563_vm4, %v5624_v60, %v1008_v52  ;;  %v1016_v14 = vsel %vm563_vm4, %v1008_v52, %v5624_v60  ;;  %v1085_v52 = vmul.f32 %v1074_v5, %v1067_v0 }
 0x305   : > { %v1035_v55 = vmul.f32 %v1022_v20, %v1016_v14  ;;  %v1036_v3 = vmul.f32 %v1026_v26, %v1012_v59  ;;  %v5734_v48 = vpop.permute.xlu1 %1117  ;;  %v1083_v20 = vmul.f32 %v1074_v5, %v1066_v53  ;;  %v5748_v26 = vpack.c.bf16 %v1084_v12, %v1082_v30 }
 0x306   : > { %1471 = vmatpush1.bf16.msra.mxu1 %v5717_v50  ;;  %v1086_v53 = vmul.f32 %v1078_v37, %v1063_v13 }
 0x307   : > { %v5742_v36 = vpack.c.bf16 %v1035_v55, %v1033_v19  ;;  %v5744_v29 = vpack.c.bf16 %v1036_v3, %v1034_v54  ;;  %v5746_v60 = vpop.permute.xlu0 %1163  ;;  %8024 = vst [vmem:[#allocation46_spill] sm:$0xff] %v5748_v26  ;;  %v5761_v1 = vpack.c.bf16 %v1083_v20, %v1081_v32  ;;  %v1129_v55 = vld [vmem:[#allocation6 + $0x5] ss:$8 sm:$0x3]  ;;  %v5807_v20 = vpack.c.bf16 %v5428_v44, %v5424_v42  ;;  %v4638_v42 = vld [vmem:[#allocation9 + $0x20] ss:$16 sps:$4 sm:$0xff]  }
 0x308   : > { %v4636_v3 = vld [vmem:[#allocation9 + $0x24] ss:$16 sps:$4 sm:$0xff]   ;;  %v1134_v32 = vrot.slane %v1129_v55, %v5271_v15 }
 0x309   : > { %8022 = vst [vmem:[#allocation44_spill] sm:$0xff] %v5742_v36  ;;  %8023 = vst [vmem:[#allocation45_spill] sm:$0xff] %v5744_v29  ;;  %v5750_v51 = vpop.permute.xlu1 %1165  ;;  %1472 = vmatprep.subr.bf16.mxu1 %v5744_v29 }
 0x30a   : > { %1473 = vmatpush1.bf16.msra.mxu1 %v5742_v36  ;;  %8025 = vst [vmem:[#allocation47_spill] sm:$0xff] %v5761_v1  ;;  %8029 = vst [vmem:[#allocation51_spill] sm:$0xff] %v5807_v20 }
 0x30b   : > { %1474 = vmatprep.subr.bf16.mxu1 %v5748_v26  ;;  %v1060_v38 = vpop.permute.xlu0 %1059 }
 0x30c   : > { %v1064_v9 = vsel %vm593_vm5, %v5628_v2, %v1060_v38  ;;  %v1068_v31 = vsel %vm593_vm5, %v1060_v38, %v5628_v2  ;;  %v5784_v2 = vpack.c.bf16 %v5452_v58, %v5448_v57  ;;  %v1125_v57 = vsel %vm627_vm6, %v5618_v40, %v5589_v43 }
 0x30d   : > { %v1087_v12 = vmul.f32 %v1074_v5, %v1068_v31  ;;  %v1088_v59 = vmul.f32 %v1078_v37, %v1064_v9  ;;  %v5769_v61 = vpop.permute.xlu1 %1161  ;;  %v1126_v37 = vsel %vm627_vm6, %v5620_v47, %v5594_v49  ;;  %v1138_v5 = vrot.slane %v1129_v55, %v5274_v16 }
 0x30e   : > { %1475 = vmatpush1.bf16.msra.mxu1 %v5761_v1  ;;  %8028 = vst [vmem:[#allocation50_spill] sm:$0xff] %v5784_v2  ;;  %v1122_v58 = vsel %vm627_vm6, %v5594_v49, %v5620_v47  ;;  %v5814_v38 = vpack.c.bf16 %v5500_v24, %v5496_v23  ;;  %v1121_v49 = vsel %vm627_vm6, %v5589_v43, %v5618_v40  ;;  %v1181_v47 = vld [vmem:[#allocation6 + $0x6] ss:$8 sm:$0x3] }
 0x30f   : > { %v5772_v14 = vpack.c.bf16 %v1087_v12, %v1085_v52  ;;  %v5774_v19 = vpack.c.bf16 %v1088_v59, %v1086_v53  ;;  %v5776_v54 = vpop.permute.xlu0 %1211  ;;  %v1144_v13 = vmul.f32 %v1138_v5, %v1126_v37  ;;  %v1142_v44 = vmul.f32 %v1138_v5, %v1125_v57  ;;  %v4641_v43 = vld [vmem:[#allocation9 + $0xc] ss:$16 sps:$4 sm:$0xff]  }
 0x310   : > { %8030 = vst [vmem:[#allocation52_spill] sm:$0xff] %v5814_v38  ;;  %v1143_v9 = vmul.f32 %v1134_v32, %v1122_v58  ;;  %v1123_v23 = vsel %vm627_vm6, %v5630_v4, %v5734_v48  ;;  %v5832_v24 = vpack.c.bf16 %v5476_v10, %v5472_v6  ;;  %v1141_v40 = vmul.f32 %v1134_v32, %v1121_v49 }
 0x311   : > { %8026 = vst [vmem:[#allocation48_spill] sm:$0xff] %v5772_v14  ;;  %8027 = vst [vmem:[#allocation49_spill] sm:$0xff] %v5774_v19  ;;  %v5778_v39 = vpop.permute.xlu1 %1169  ;;  %1497 = vmatprep.subr.bf16.mxu1 %v5774_v19  ;;  %2242 = vmatprep.subr.bf16.mxu0 %v5774_v19  ;;  %v5834_v52 = vpack.c.bf16 %v1144_v13, %v1142_v44  ;;  %v1186_v53 = vrot.slane %v1181_v47, %v5271_v15 }
 0x312   : > { %1477 = vmatmul.mubr.bf16.vlgmr.msra.gmra.mrb[8].mxu1 %v4633_v33  ;;  %2243 = vmatpush1.bf16.msra.mxu0 %v5772_v14  ;;  %8031 = vst [vmem:[#allocation53_spill] sm:$0xff] %v5832_v24  ;;  %v1190_v59 = vrot.slane %v1181_v47, %v5274_v16  ;;  %v1127_v33 = vsel %vm627_vm6, %v5734_v48, %v5630_v4 }
 0x313   : > { %1498 = vmatpush1.bf16.msra.mxu1 %v5772_v14  ;;  %2244 = vmatprep.subr.bf16.mxu0 %v5784_v2  ;;  %v5794_v30 = vpop.permute.xlu0 %1219  ;;  %8032 = vst [vmem:[#allocation54_spill] sm:$0xff] %v5834_v52  ;;  %v1177_v6 = vsel %vm657_vm9, %v5750_v51, %v5653_v27  ;;  %v5847_v10 = vpack.c.bf16 %v1143_v9, %v1141_v40  ;;  %v1233_v9 = vld [vmem:[#allocation6 + $0x7] ss:$8 sm:$0x3] }
 0x314   : > { %1499 = vmatprep.subr.bf16.mxu1 %v5784_v2  ;;  %1486 = vmatprep.mubr.bf16.mxu1 %v4636_v3  ;;  %v1178_v55 = vsel %vm657_vm9, %v5700_v56, %v5662_v18  ;;  %v1145_v3 = vmul.f32 %v1134_v32, %v1123_v23  ;;  %v1173_v48 = vsel %vm657_vm9, %v5653_v27, %v5750_v51 }
 0x315   : > { %v5810_v0 = vpop.permute.xlu1 %1209  ;;  %8033 = vst [vmem:[#allocation55_spill] sm:$0xff] %v5847_v10  ;;  %v1146_v58 = vmul.f32 %v1138_v5, %v1127_v33  ;;  %v1194_v13 = vmul.f32 %v1190_v59, %v1177_v6  ;;  %v1174_v27 = vsel %vm657_vm9, %v5662_v18, %v5700_v56  ;;  %v1196_v51 = vmul.f32 %v1190_v59, %v1178_v55 }
 0x316   : > { %2245 = vmatpush1.bf16.msra.mxu0 %v5807_v20  ;;  %v1193_v44 = vmul.f32 %v1186_v53, %v1173_v48  ;;  %v1179_v40 = vsel %vm657_vm9, %v5778_v39, %v5769_v61  ;;  %v1238_v33 = vrot.slane %v1233_v9, %v5271_v15 }
 0x317   : > { %1500 = vmatpush1.bf16.msra.mxu1 %v5807_v20  ;;  %2246 = vmatprep.subr.bf16.mxu0 %v5814_v38  ;;  %v5823_v31 = vpop.permute.xlu0 %1215  ;;  %v5883_v18 = vpack.c.bf16 %v1196_v51, %v1194_v13 }
 0x318   : > { %1501 = vmatprep.subr.bf16.mxu1 %v5814_v38 }
 0x319   : > { %v1218_v12 = vpop.permute.xlu1 %1217  ;;  %8036 = vst [vmem:[#allocation58_spill] sm:$0xff] %v5883_v18 }
 0x31a   : > { %2247 = vmatpush1.bf16.msra.mxu0 %v5832_v24  ;;  %1487 = vmatmul.mubr.bf16.gmra.mrb[12].mxu1 %v4638_v42  ;;  %v1229_v6 = vsel %vm687_vm10, %v1218_v12, %v5810_v0 }
 0x31b   : > { %1502 = vmatpush1.bf16.msra.mxu1 %v5832_v24  ;;  %2248 = vmatprep.subr.bf16.mxu0 %v5834_v52  ;;  %v1120_v4 = vpop.permute.xlu0 %1119 }
 0x31c   : > { %1503 = vmatprep.subr.bf16.mxu1 %v5834_v52  ;;  %v1124_v37 = vsel %vm627_vm6, %v5632_v11, %v1120_v4  ;;  %v1128_v57 = vsel %vm627_vm6, %v1120_v4, %v5632_v11  ;;  %4353 = vmatprep.mubr.msk.bf16.mxu1 %vm1437_vm14, %v4641_v43  ;;  %v1242_v4 = vrot.slane %v1233_v9, %v5274_v16 }
 0x31d   : > { %v1147_v49 = vmul.f32 %v1134_v32, %v1124_v37  ;;  %v1148_v47 = vmul.f32 %v1138_v5, %v1128_v57  ;;  %v1214_v42 = vpop.permute.xlu1 %1213  ;;  %v1175_v5 = vsel %vm657_vm9, %v5769_v61, %v5778_v39  ;;  %v1195_v32 = vmul.f32 %v1186_v53, %v1174_v27 }
 0x31e   : > { %2249 = vmatpush1.bf16.msra.mxu0 %v5847_v10  ;;  %v1230_v61 = vsel %vm687_vm10, %v5794_v30, %v5776_v54  ;;  %v1225_v39 = vsel %vm687_vm10, %v5810_v0, %v1218_v12  ;;  %v1246_v13 = vmul.f32 %v1242_v4, %v1229_v6  ;;  %v1226_v0 = vsel %vm687_vm10, %v5776_v54, %v5794_v30 }
 0x31f   : > { %v5872_v23 = vpack.c.bf16 %v1147_v49, %v1145_v3  ;;  %v5874_v11 = vpack.c.bf16 %v1148_v47, %v1146_v58  ;;  %1504 = vmatpush1.bf16.msra.mxu1 %v5847_v10  ;;  %v5877_v43 = vpop.permute.xlu0 %1263  ;;  %v5896_v55 = vpack.c.bf16 %v1195_v32, %v1193_v44  ;;  %v1197_v3 = vmul.f32 %v1186_v53, %v1175_v5 }
 0x320   : > { %v1198_v58 = vmul.f32 %v1190_v59, %v1179_v40  ;;  %v1248_v12 = vmul.f32 %v1242_v4, %v1230_v61  ;;  %v1245_v51 = vmul.f32 %v1238_v33, %v1225_v39  ;;  %v1247_v5 = vmul.f32 %v1238_v33, %v1226_v0 }
 0x321   : > { %8034 = vst [vmem:[#allocation56_spill] sm:$0xff] %v5872_v23  ;;  %8035 = vst [vmem:[#allocation57_spill] sm:$0xff] %v5874_v11  ;;  %v1222_v56 = vpop.permute.xlu1 %1221  ;;  %1505 = vmatprep.subr.bf16.mxu1 %v5874_v11  ;;  %2250 = vmatprep.subr.bf16.mxu0 %v5874_v11 }
 0x322   : > { %2251 = vmatpush1.bf16.msra.mxu0 %v5872_v23  ;;  %8037 = vst [vmem:[#allocation59_spill] sm:$0xff] %v5896_v55  ;;  %v5927_v32 = vpack.c.bf16 %v1248_v12, %v1246_v13  ;;  %v1231_v54 = vsel %vm687_vm10, %v1222_v56, %v1214_v42  ;;  %v5936_v6 = vpack.c.bf16 %v1247_v5, %v1245_v51 }
 0x323   : > { %1506 = vmatpush1.bf16.msra.mxu1 %v5872_v23  ;;  %2252 = vmatprep.subr.bf16.mxu0 %v5883_v18  ;;  %v1172_v48 = vpop.permute.xlu0 %1171 }
 0x324   : > { %1507 = vmatprep.subr.bf16.mxu1 %v5883_v18  ;;  %v1176_v37 = vsel %vm657_vm9, %v5746_v60, %v1172_v48  ;;  %v1180_v57 = vsel %vm657_vm9, %v1172_v48, %v5746_v60  ;;  %8040 = vst [vmem:[#allocation62_spill] sm:$0xff] %v5927_v32  ;;  %8041 = vst [vmem:[#allocation63_spill] sm:$0xff] %v5936_v6 }
 0x325   : > { %v1199_v49 = vmul.f32 %v1186_v53, %v1176_v37  ;;  %v1200_v47 = vmul.f32 %v1190_v59, %v1180_v57  ;;  %v1262_v27 = vpop.permute.xlu1 %1261  ;;  %v1227_v53 = vsel %vm687_vm10, %v1214_v42, %v1222_v56  ;;  %v1285_v59 = vld [vmem:[#allocation6 + $0x10] ss:$8 sm:$0x3]  ;;  %v1250_v56 = vmul.f32 %v1242_v4, %v1231_v54 }
 0x326   : > { %2253 = vmatpush1.bf16.msra.mxu0 %v5896_v55  ;;  %v1294_v48 = vrot.slane %v1285_v59, %v5274_v16  ;;  %v1290_v0 = vrot.slane %v1285_v59, %v5271_v15 }
 0x327   : > { %v5920_v44 = vpack.c.bf16 %v1199_v49, %v1197_v3  ;;  %v5922_v9 = vpack.c.bf16 %v1200_v47, %v1198_v58  ;;  %1508 = vmatpush1.bf16.msra.mxu1 %v5896_v55  ;;  %v1272_v60 = vpop.permute.xlu0 %1271  ;;  %v1249_v3 = vmul.f32 %v1238_v33, %v1227_v53 }
 0x328   : > { %v1282_v61 = vsel %vm717_vm11, %v1272_v60, %v5877_v43  ;;  %v1278_v12 = vsel %vm717_vm11, %v5877_v43, %v1272_v60 }
 0x329   : > { %8038 = vst [vmem:[#allocation60_spill] sm:$0xff] %v5920_v44  ;;  %8039 = vst [vmem:[#allocation61_spill] sm:$0xff] %v5922_v9  ;;  %v1270_v30 = vpop.permute.xlu1 %1269  ;;  %1509 = vmatprep.subr.bf16.mxu1 %v5922_v9  ;;  %2254 = vmatprep.subr.bf16.mxu0 %v5922_v9  ;;  %v1300_v51 = vmul.f32 %v1294_v48, %v1282_v61  ;;  %v1299_v59 = vmul.f32 %v1290_v0, %v1278_v12  ;;  %v8050_v12 = vld [vmem:[#allocation23_spill] sm:$0xff] }
 0x32a   : > { %v1281_v40 = vsel %vm717_vm11, %v1270_v30, %v1262_v27  ;;  %2255 = vmatpush1.bf16.msra.mxu0 %v5920_v44  ;;  %v1277_v57 = vsel %vm717_vm11, %v1262_v27, %v1270_v30 }
 0x32b   : > { %1510 = vmatpush1.bf16.msra.mxu1 %v5920_v44  ;;  %2256 = vmatprep.subr.bf16.mxu0 %v5927_v32  ;;  %v1224_v42 = vpop.permute.xlu0 %1223  ;;  %v1298_v58 = vmul.f32 %v1294_v48, %v1281_v40  ;;  %v1297_v27 = vmul.f32 %v1290_v0, %v1277_v57 }
 0x32c   : > { %1511 = vmatprep.subr.bf16.mxu1 %v5927_v32  ;;  %v1228_v39 = vsel %vm687_vm10, %v5823_v31, %v1224_v42  ;;  %v1232_v37 = vsel %vm687_vm10, %v1224_v42, %v5823_v31 }
 0x32d   : > { %v1251_v13 = vmul.f32 %v1238_v33, %v1228_v39  ;;  %v1252_v49 = vmul.f32 %v1242_v4, %v1232_v37  ;;  %v1266_v47 = vpop.permute.xlu1 %1265  ;;  %v5963_v33 = vpack.c.bf16 %v1300_v51, %v1298_v58  ;;  %v5974_v30 = vpack.c.bf16 %v1299_v59, %v1297_v27  ;;  %v4639_v58 = vld [vmem:[#allocation9 + $0x8] ss:$16 sps:$4 sm:$0xff]   ;;  %v8055_v59 = vld [vmem:[#allocation29_spill] sm:$0xff] }
 0x32e   : > { %2257 = vmatpush1.bf16.msra.mxu0 %v5936_v6  ;;  %v8053_v27 = vld [vmem:[#allocation26_spill] sm:$0xff] }
 0x32f   : > { %v5958_v53 = vpack.c.bf16 %v1251_v13, %v1249_v3  ;;  %v5960_v5 = vpack.c.bf16 %v1252_v49, %v1250_v56  ;;  %1512 = vmatpush1.bf16.msra.mxu1 %v5936_v6  ;;  %v1268_v31 = vpop.permute.xlu0 %1267  ;;  %8044 = vst [vmem:[#allocation66_spill] sm:$0xff] %v5963_v33  ;;  %8045 = vst [vmem:[#allocation67_spill] sm:$0xff] %v5974_v30  ;;  %v4642_v13 = vld [vmem:[#allocation9 + $0x2c] ss:$16 sps:$4 sm:$0xff]  }
 0x330   : > { %v4647_v49 = vld [vmem:[#allocation11 + $0x4] ss:$24 sps:$4 sm:$0xff]  }
 0x331   : > { %8042 = vst [vmem:[#allocation64_spill] sm:$0xff] %v5958_v53  ;;  %8043 = vst [vmem:[#allocation65_spill] sm:$0xff] %v5960_v5  ;;  %v1274_v4 = vpop.permute.xlu1 %1273  ;;  %1513 = vmatprep.subr.bf16.mxu1 %v5960_v5  ;;  %2258 = vmatprep.subr.bf16.mxu0 %v5960_v5 }
 0x332   : > { %v1279_v43 = vsel %vm717_vm11, %v1266_v47, %v1274_v4  ;;  %v1283_v60 = vsel %vm717_vm11, %v1274_v4, %v1266_v47  ;;  %2259 = vmatpush1.bf16.msra.mxu0 %v5958_v53  ;;  %v8048_v47 = vld [vmem:[#allocation22_spill] sm:$0xff]  ;;  %v8054_v4 = vld [vmem:[#allocation27_spill] sm:$0xff] }
 0x333   : > { %1514 = vmatpush1.bf16.msra.mxu1 %v5958_v53  ;;  %2260 = vmatprep.subr.bf16.mxu0 %v5963_v33  ;;  %v1276_v54 = vpop.permute.xlu0 %1275  ;;  %v1301_v42 = vmul.f32 %v1290_v0, %v1279_v43  ;;  %v1302_v56 = vmul.f32 %v1294_v48, %v1283_v60  ;;  %v8056_v43 = vld [vmem:[#allocation28_spill] sm:$0xff]  ;;  %v8057_v60 = vld [vmem:[#allocation31_spill] sm:$0xff] }
 0x334   : > { %1515 = vmatprep.subr.bf16.mxu1 %v5963_v33  ;;  %v1280_v40 = vsel %vm717_vm11, %v1268_v31, %v1276_v54  ;;  %v1284_v3 = vsel %vm717_vm11, %v1276_v54, %v1268_v31  ;;  %v8052_v31 = vld [vmem:[#allocation25_spill] sm:$0xff]  ;;  %v8058_v54 = vld [vmem:[#allocation30_spill] sm:$0xff] }
 0x335   : > { %v1303_v61 = vmul.f32 %v1290_v0, %v1280_v40  ;;  %v1304_v39 = vmul.f32 %v1294_v48, %v1284_v3  ;;  %v4644_v48 = vld [vmem:[#allocation9 + $0x28] ss:$16 sps:$4 sm:$0xff]   ;;  %v8049_v0 = vld [vmem:[#allocation21_spill] sm:$0xff] }
 0x336   : > { %2261 = vmatpush1.bf16.msra.mxu0 %v5974_v30  ;;  %v8059_v40 = vld [vmem:[#allocation33_spill] sm:$0xff]  ;;  %v8060_v3 = vld [vmem:[#allocation32_spill] sm:$0xff] }
 0x337   : > { %v5982_v37 = vpack.c.bf16 %v1303_v61, %v1301_v42  ;;  %v5984_v57 = vpack.c.bf16 %v1304_v39, %v1302_v56  ;;  %1516 = vmatpush1.bf16.msra.mxu1 %v5974_v30  ;;  %v8061_v42 = vld [vmem:[#allocation35_spill] sm:$0xff]  ;;  %v8062_v56 = vld [vmem:[#allocation34_spill] sm:$0xff]  ;;  %v4648_v39 = vld [vmem:[#allocation11 + $0x34] ss:$24 sps:$4 sm:$0xff]  }
 0x338   : > { %v4645_v61 = vld [vmem:[#allocation11] ss:$24 sps:$4 sm:$0xff]  }
 0x339   : > { %8046 = vst [vmem:[#allocation68_spill] sm:$0xff] %v5982_v37  ;;  %8047 = vst [vmem:[#allocation69_spill] sm:$0xff] %v5984_v57  ;;  %1517 = vmatprep.subr.bf16.mxu1 %v5984_v57  ;;  %2262 = vmatprep.subr.bf16.mxu0 %v5984_v57 }
 0x33a   : > { %2263 = vmatpush1.bf16.msra.mxu0 %v5982_v37 }
 0x33b   : > { %1518 = vmatpush1.bf16.msra.mxu1 %v5982_v37 }
 0x33c   : > { %2189 = vmatprep.subr.bf16.mxu1 %v5290_v35 }
 0x33e   : > { %1530 = vmatmul.mubr.bf16.vlgmr.msra.gmra.mrb[8].mxu1 %v4639_v58  ;;  %v2922_v58 = vld [vmem:[%s7844_s5] sm:$0xff] }
 0x33f   : > { %2190 = vmatpush1.bf16.msra.mxu1 %v5288_v34  ;;  %4354 = vmatprep.mubr.msk.bf16.mxu1 %vm1437_vm14, %v4642_v13  ;;  %v2926_v13 = vld [vmem:[%s7844_s5 + $0x20] sm:$0xff] }
 0x340   : > { %2191 = vmatprep.subr.bf16.mxu1 %v5301_v46 }
 0x343   : > { %2192 = vmatpush1.bf16.msra.mxu1 %v5299_v45 }
 0x344   : > { %2193 = vmatprep.subr.bf16.mxu1 %v5316_v63 }
 0x346   : > { %1540 = vmatmul.mubr.bf16.gmra.mrb[12].mxu1 %v4644_v48  ;;  %v4650_v48 = vld [vmem:[#allocation11 + $0x30] ss:$24 sps:$4 sm:$0xff]  }
 0x347   : > { %2194 = vmatpush1.bf16.msra.mxu1 %v5314_v62  ;;  %2221 = vmatprep.mubr.bf16.mxu1 %v4647_v49  ;;  %v4370_v49 = vcombine.high %v2922_v58, %v2926_v13 }
 0x348   : > { %2195 = vmatprep.subr.bf16.mxu1 %v8048_v47 }
 0x34b   : > { %2196 = vmatpush1.bf16.msra.mxu1 %v8049_v0 }
 0x34c   : > { %4409 = vmatprep.subr.msk.bf16.mxu1 %vm5334_vm8, %v8050_v12 }
 0x34f   : > { %4412 = vmatpush1.bf16.msk.msra.mxu1 %vm5334_vm8, %v8052_v31 }
 0x350   : > { %2199 = vmatprep.subr.bf16.mxu1 %v8053_v27 }
 0x353   : > { %2200 = vmatpush1.bf16.msra.mxu1 %v8054_v4 }
 0x354   : > { %2201 = vmatprep.subr.bf16.mxu1 %v8055_v59 }
 0x357   : > { %2202 = vmatpush1.bf16.msra.mxu1 %v8056_v43 }
 0x358   : > { %2203 = vmatprep.subr.bf16.mxu1 %v8057_v60 }
 0x35b   : > { %2204 = vmatpush1.bf16.msra.mxu1 %v8058_v54 }
 0x35c   : > { %2205 = vmatprep.subr.bf16.mxu1 %v8059_v40 }
 0x35f   : > { %2206 = vmatpush1.bf16.msra.mxu1 %v8060_v3 }
 0x360   : > { %2207 = vmatprep.subr.bf16.mxu1 %v8061_v42 }
 0x363   : > { %2208 = vmatpush1.bf16.msra.mxu1 %v8062_v56 }
 0x364   : > { %2209 = vmatprep.subr.bf16.mxu1 %v5660_v28 }
 0x367   : > { %2210 = vmatpush1.bf16.msra.mxu1 %v5658_v8 }
 0x368   : > { %2211 = vmatprep.subr.bf16.mxu1 %v5664_v21 }
 0x36b   : > { %2212 = vmatpush1.bf16.msra.mxu1 %v5676_v22 }
 0x36c   : > { %2213 = vmatprep.subr.bf16.mxu1 %v5698_v41 }
 0x36f   : > { %2214 = vmatpush1.bf16.msra.mxu1 %v5696_v7 }
 0x370   : > { %2215 = vmatprep.subr.bf16.mxu1 %v5702_v25 }
 0x373   : > { %2216 = vmatpush1.bf16.msra.mxu1 %v5717_v50 }
 0x374   : > { %2217 = vmatprep.subr.bf16.mxu1 %v5744_v29 }
 0x377   : > { %2218 = vmatpush1.bf16.msra.mxu1 %v5742_v36 }
 0x378   : > { %2219 = vmatprep.subr.bf16.mxu1 %v5748_v26 }
 0x37b   : > { %2220 = vmatpush1.bf16.msra.mxu1 %v5761_v1 }
 0x37c   : > { %3047 = vmatprep.subr.bf16.mxu1 %v5290_v35 }
 0x37e   : > { %2222 = vmatmul.mubr.bf16.vlgmr.msra.gmra.mrb[16].mxu1 %v4645_v61  ;;  %v4369_v61 = vcombine.low %v2922_v58, %v2926_v13 }
 0x37f   : > { %3048 = vmatpush1.bf16.msra.mxu1 %v5288_v34  ;;  %2231 = vmatprep.mubr.bf16.mxu1 %v4648_v39  ;;  %v1382_v39 = vpop.permute.xlu1 %1381 }
 0x380   : > { %3049 = vmatprep.subr.bf16.mxu1 %v5301_v46 }
 0x383   : > { %3050 = vmatpush1.bf16.msra.mxu1 %v5299_v45 }
 0x384   : > { %3051 = vmatprep.subr.bf16.mxu1 %v5316_v63 }
 0x386   : > { %2232 = vmatmul.mubr.bf16.gmra.mrb[20].mxu1 %v4650_v48 }
 0x387   : > { %3052 = vmatpush1.bf16.msra.mxu1 %v5314_v62  ;;  %3079 = vmatprep.mubr.bf16.mxu1 %v4370_v49  ;;  %v1387_v49 = vpop.permute.xlu0 %1386 }
 0x388   : > { %3053 = vmatprep.subr.bf16.mxu1 %v8048_v47 }
 0x38b   : > { %3054 = vmatpush1.bf16.msra.mxu1 %v8049_v0 }
 0x38c   : > { %4415 = vmatprep.subr.msk.bf16.mxu1 %vm5334_vm8, %v8050_v12 }
 0x38f   : > { %4418 = vmatpush1.bf16.msk.msra.mxu1 %vm5334_vm8, %v8052_v31 }
 0x390   : > { %3057 = vmatprep.subr.bf16.mxu1 %v8053_v27 }
 0x393   : > { %3058 = vmatpush1.bf16.msra.mxu1 %v8054_v4 }
 0x394   : > { %3059 = vmatprep.subr.bf16.mxu1 %v8055_v59 }
 0x397   : > { %3060 = vmatpush1.bf16.msra.mxu1 %v8056_v43 }
 0x398   : > { %3061 = vmatprep.subr.bf16.mxu1 %v8057_v60 }
 0x39b   : > { %3062 = vmatpush1.bf16.msra.mxu1 %v8058_v54 }
 0x39c   : > { %3063 = vmatprep.subr.bf16.mxu1 %v8059_v40 }
 0x39f   : > { %3064 = vmatpush1.bf16.msra.mxu1 %v8060_v3 }
 0x3a0   : > { %3065 = vmatprep.subr.bf16.mxu1 %v8061_v42 }
 0x3a3   : > { %3066 = vmatpush1.bf16.msra.mxu1 %v8062_v56 }
 0x3a4   : > { %3067 = vmatprep.subr.bf16.mxu1 %v5660_v28 }
 0x3a7   : > { %3068 = vmatpush1.bf16.msra.mxu1 %v5658_v8 }
 0x3a8   : > { %3069 = vmatprep.subr.bf16.mxu1 %v5664_v21  ;;  %v1650_v21 = vld [vmem:[#allocation6 + $0x1] ss:$8 sm:$0x3] }
 0x3a9   : > { %v1659_v42 = vrot.slane %v1650_v21, %v5274_v16  ;;  %v1655_v54 = vrot.slane %v1650_v21, %v5271_v15 }
 0x3ab   : > { %3070 = vmatpush1.bf16.msra.mxu1 %v5676_v22 }
 0x3ac   : > { %3071 = vmatprep.subr.bf16.mxu1 %v5698_v41 }
 0x3af   : > { %3072 = vmatpush1.bf16.msra.mxu1 %v5696_v7 }
 0x3b0   : > { %3073 = vmatprep.subr.bf16.mxu1 %v5702_v25 }
 0x3b3   : > { %3074 = vmatpush1.bf16.msra.mxu1 %v5717_v50 }
 0x3b4   : > { %3075 = vmatprep.subr.bf16.mxu1 %v5744_v29 }
 0x3b7   : > { %3076 = vmatpush1.bf16.msra.mxu1 %v5742_v36 }
 0x3b8   : > { %3077 = vmatprep.subr.bf16.mxu1 %v5748_v26 }
 0x3bb   : > { %3078 = vmatpush1.bf16.msra.mxu1 %v5761_v1 }
 0x3bc   : > { %3100 = vmatprep.subr.bf16.mxu1 %v5774_v19 }
 0x3be   : > { %3080 = vmatmul.mubr.bf16.vlgmr.msra.gmra.mrb[24].mxu1 %v4369_v61 }
 0x3bf   : > { %3101 = vmatpush1.bf16.msra.mxu1 %v5772_v14 }
 0x3c0   : > { %3102 = vmatprep.subr.bf16.mxu1 %v5784_v2 }
 0x3c3   : > { %3103 = vmatpush1.bf16.msra.mxu1 %v5807_v20 }
 0x3c4   : > { %3104 = vmatprep.subr.bf16.mxu1 %v5814_v38 }
 0x3c7   : > { %3105 = vmatpush1.bf16.msra.mxu1 %v5832_v24 }
 0x3c8   : > { %3106 = vmatprep.subr.bf16.mxu1 %v5834_v52 }
 0x3cb   : > { %3107 = vmatpush1.bf16.msra.mxu1 %v5847_v10  ;;  %v2101_v10 = vld [vmem:[%s7848_s9 + $0x8] sm:$0xff] }
 0x3cc   : > { %3108 = vmatprep.subr.bf16.mxu1 %v5874_v11 }
 0x3cf   : > { %3109 = vmatpush1.bf16.msra.mxu1 %v5872_v23 }
 0x3d0   : > { %3110 = vmatprep.subr.bf16.mxu1 %v5883_v18 }
 0x3d3   : > { %3111 = vmatpush1.bf16.msra.mxu1 %v5896_v55  ;;  %v2100_v55 = vld [vmem:[%s7848_s9] sm:$0xff] }
 0x3d4   : > { %3112 = vmatprep.subr.bf16.mxu1 %v5922_v9 }
 0x3d7   : > { %3113 = vmatpush1.bf16.msra.mxu1 %v5920_v44 }
 0x3d8   : > { %3114 = vmatprep.subr.bf16.mxu1 %v5927_v32 }
 0x3db   : > { %3115 = vmatpush1.bf16.msra.mxu1 %v5936_v6 }
 0x3dc   : > { %3116 = vmatprep.subr.bf16.mxu1 %v5960_v5 }
 0x3df   : > { %3117 = vmatpush1.bf16.msra.mxu1 %v5958_v53 }
 0x3e0   : > { %3118 = vmatprep.subr.bf16.mxu1 %v5963_v33 }
 0x3e3   : > { %3119 = vmatpush1.bf16.msra.mxu1 %v5974_v30 }
 0x3e4   : > { %3120 = vmatprep.subr.bf16.mxu1 %v5984_v57 }
 0x3e7   : > { %3121 = vmatpush1.bf16.msra.mxu1 %v5982_v37 }
 0x411   : > { %v1531_v58 = vpop.f32.mrb[8].mxu1 }
 0x412   : > { %v4425_v13 = vadd.f32 %v1531_v58, %v1382_v39  ;;  %v1533_v48 = vpop.f32.mrb[9].mxu1 }
 0x413   : > { %v1535_v61 = vpop.f32.mrb[10].mxu1 }
 0x414   : > { %vm1550_vm15 = vcmp.ge.f32.partialorder %v4425_v13, 0.0  ;;  %v1558_v6 = vmul.f32 0.2, %v4425_v13  ;;  %v4427_v32 = vadd.f32 %v1535_v61, %v1387_v49  ;;  %v1537_v5 = vpop.f32.mrb[11].mxu1 }
 0x416   : > { %v6092_v44 = vsel %vm1550_vm15, %v4425_v13, %v1558_v6  ;;  %vm1552_vm0 = vcmp.ge.f32.partialorder %v4427_v32, 0.0  ;;  %v1560_v33 = vmul.f32 0.2, %v4427_v32  ;;  %v4428_v6 = vadd.f32 %v1537_v5, %v1387_v49  ;;  %v1392_v5 = vpop.permute.xlu1 %1391  ;;  %v1397_v49 = vpop.permute.xlu0 %1396 }
 0x417   : > { %1574 = vrot.lane.b32.xlu1 %v6092_v44, %s7959_s28 }
 0x418   : > { %v6096_v57 = vsel %vm1552_vm0, %v4427_v32, %v1560_v33  ;;  %v4426_v32 = vadd.f32 %v1533_v48, %v1382_v39  ;;  %v1561_v13 = vmul.f32 0.2, %v4428_v6  ;;  %vm1553_vm12 = vcmp.ge.f32.partialorder %v4428_v6, 0.0 }
 0x419   : > { %v1541_v37 = vpop.f32.mrb[12].mxu1  ;;  %1576 = vrot.lane.b32.xlu0 %v6096_v57, %s7959_s28 }
 0x41a   : > { %v1543_v58 = vpop.f32.mrb[13].mxu1  ;;  %v1559_v33 = vmul.f32 0.2, %v4426_v32  ;;  %vm1551_vm7 = vcmp.ge.f32.partialorder %v4426_v32, 0.0  ;;  %v6120_v39 = vsel %vm1553_vm12, %v4428_v6, %v1561_v13  ;;  %v4429_v48 = vadd.f32 %v1541_v37, %v1392_v5 }
 0x41b   : > { %v1545_v30 = vpop.f32.mrb[14].mxu1  ;;  %1626 = vrot.lane.b32.xlu1 %v6092_v44, %s7924_s11 }
 0x41c   : > { %v1547_v61 = vpop.f32.mrb[15].mxu1  ;;  %v6116_v53 = vsel %vm1551_vm7, %v4426_v32, %v1559_v33  ;;  %v4431_v32 = vadd.f32 %v1545_v30, %v1397_v49  ;;  %v1562_v6 = vmul.f32 0.2, %v4429_v48  ;;  %vm1554_vm13 = vcmp.ge.f32.partialorder %v4429_v48, 0.0 }
 0x41d   : > { %1628 = vrot.lane.b32.xlu0 %v6096_v57, %s7924_s11  ;;  %v4430_v30 = vadd.f32 %v1543_v58, %v1392_v5  ;;  %v2930_v58 = vld [vmem:[%s7844_s5 + $0x40] sm:$0xff]  ;;  %vm2182_vm7 = vcmask 654336  }
 0x41e   : > { %v1564_v33 = vmul.f32 0.2, %v4431_v32  ;;  %vm1556_vm14 = vcmp.ge.f32.partialorder %v4431_v32, 0.0  ;;  %v6140_v13 = vsel %vm1554_vm13, %v4429_v48, %v1562_v6  ;;  %v4432_v48 = vadd.f32 %v1547_v61, %v1397_v49  ;;  %v2934_v61 = vld [vmem:[%s7844_s5 + $0x60] sm:$0xff] }
 0x41f   : > { %1678 = vrot.lane.b32.xlu1 %v6092_v44, %s8063_s26  ;;  %vm1555_vm15 = vcmp.ge.f32.partialorder %v4430_v30, 0.0  ;;  %v4378_v5 = vcombine.high %v2930_v58, %v2934_v61  ;;  %v4377_v9 = vcombine.low %v2930_v58, %v2934_v61 }
 0x420   : > { %v6144_v37 = vsel %vm1556_vm14, %v4431_v32, %v1564_v33  ;;  %v1563_v32 = vmul.f32 0.2, %v4430_v30  ;;  %v1565_v6 = vmul.f32 0.2, %v4432_v48  ;;  %vm1557_vm0 = vcmp.ge.f32.partialorder %v4432_v48, 0.0 }
 0x421   : > { %1680 = vrot.lane.b32.xlu0 %v6096_v57, %s8063_s26  ;;  %3089 = vmatprep.mubr.bf16.mxu1 %v4378_v5 }
 0x422   : > { %v6164_v33 = vsel %vm1555_vm15, %v4430_v30, %v1563_v32  ;;  %v6174_v49 = vsel %vm1557_vm0, %v4432_v48, %v1565_v6  ;;  %3090 = vmatmul.mubr.bf16.gmra.mrb[28].mxu1 %v4377_v9  ;;  %v6185_v30 = vld [vmem:[%s7844_s5 + $0x8] sm:$0xff]  ;;  %v4653_v9 = vld [vmem:[#allocation11 + $0xc] ss:$24 sps:$4 sm:$0xff]  }
 0x423   : > { %1730 = vrot.lane.b32.xlu1 %v6092_v44, %s8064_s30  ;;  %v6190_v48 = vld [vmem:[%s7844_s5 + $0x28] sm:$0xff]  ;;  %2274 = vmatprep.mubr.bf16.mxu0 %v4653_v9 }
 0x424   : > { %v4372_v6 = vcombine.high %v6185_v30, %v6190_v48 }
 0x425   : > { %1732 = vrot.lane.b32.xlu0 %v6096_v57, %s8064_s30 }
 0x426   : > { %3132 = vmatprep.mubr.bf16.mxu1 %v4372_v6 }
 0x427   : > { %1790 = vrot.lane.b32.xlu1 %v6092_v44, %s8008_s17 }
 0x429   : > { %1792 = vrot.lane.b32.xlu0 %v6096_v57, %s8008_s17 }
 0x42b   : > { %1582 = vrot.lane.b32.xlu1 %v6116_v53, %s7959_s28 }
 0x42d   : > { %1584 = vrot.lane.b32.xlu0 %v6120_v39, %s7959_s28 }
 0x42f   : > { %1634 = vrot.lane.b32.xlu1 %v6116_v53, %s7924_s11 }
 0x431   : > { %1636 = vrot.lane.b32.xlu0 %v6120_v39, %s7924_s11 }
 0x433   : > { %1686 = vrot.lane.b32.xlu1 %v6116_v53, %s8063_s26 }
 0x435   : > { %1688 = vrot.lane.b32.xlu0 %v6120_v39, %s8063_s26 }
 0x437   : > { %1738 = vrot.lane.b32.xlu1 %v6116_v53, %s8064_s30 }
 0x439   : > { %1740 = vrot.lane.b32.xlu0 %v6120_v39, %s8064_s30 }
 0x43b   : > { %1798 = vrot.lane.b32.xlu1 %v6116_v53, %s8008_s17 }
 0x43d   : > { %1800 = vrot.lane.b32.xlu0 %v6120_v39, %s8008_s17 }
 0x43f   : > { %1578 = vrot.lane.b32.xlu1 %v6140_v13, %s7959_s28 }
 0x441   : > { %1580 = vrot.lane.b32.xlu0 %v6144_v37, %s7959_s28 }
 0x443   : > { %1630 = vrot.lane.b32.xlu1 %v6140_v13, %s7924_s11 }
 0x445   : > { %1632 = vrot.lane.b32.xlu0 %v6144_v37, %s7924_s11 }
 0x447   : > { %1682 = vrot.lane.b32.xlu1 %v6140_v13, %s8063_s26 }
 0x449   : > { %1684 = vrot.lane.b32.xlu0 %v6144_v37, %s8063_s26 }
 0x44b   : > { %1734 = vrot.lane.b32.xlu1 %v6140_v13, %s8064_s30 }
 0x44d   : > { %1736 = vrot.lane.b32.xlu0 %v6144_v37, %s8064_s30 }
 0x44f   : > { %1794 = vrot.lane.b32.xlu1 %v6140_v13, %s8008_s17 }
 0x451   : > { %1796 = vrot.lane.b32.xlu0 %v6144_v37, %s8008_s17  ;;  %v6265_v18 = vpop.f32.mrb[16].mxu1 }
 0x452   : > { %8065 = vst [vmem:[#allocation70_spill] sm:$0xff] %v6265_v18  ;;  %v6271_v11 = vpop.f32.mrb[17].mxu1  ;;  %v2102_v18 = vld [vmem:[%s7848_s9 + $0x10] sm:$0xff] }
 0x453   : > { %1586 = vrot.lane.b32.xlu1 %v6164_v33, %s7959_s28  ;;  %8066 = vst [vmem:[#allocation71_spill] sm:$0xff] %v6271_v11  ;;  %v6278_v24 = vpop.f32.mrb[18].mxu1  ;;  %v1598_v11 = vld [vmem:[#allocation6] ss:$8 sm:$0x3] }
 0x454   : > { %8067 = vst [vmem:[#allocation72_spill] sm:$0xff] %v6278_v24  ;;  %v6283_v38 = vpop.f32.mrb[19].mxu1 }
 0x455   : > { %1588 = vrot.lane.b32.xlu0 %v6174_v49, %s7959_s28  ;;  %8068 = vst [vmem:[#allocation73_spill] sm:$0xff] %v6283_v38  ;;  %v1603_v38 = vrot.slane %v1598_v11, %v5271_v15 }
 0x457   : > { %1842 = vrot.lane.b32.xlu1 %v6092_v44, %s8009_s12 }
 0x459   : > { %1844 = vrot.lane.b32.xlu0 %v6096_v57, %s8009_s12  ;;  %v6287_v2 = vpop.f32.mrb[20].mxu1 }
 0x45a   : > { %8069 = vst [vmem:[#allocation74_spill] sm:$0xff] %v6287_v2  ;;  %v6292_v14 = vpop.f32.mrb[21].mxu1 }
 0x45b   : > { %1638 = vrot.lane.b32.xlu1 %v6164_v33, %s7924_s11  ;;  %8070 = vst [vmem:[#allocation75_spill] sm:$0xff] %v6292_v14  ;;  %v6296_v19 = vpop.f32.mrb[22].mxu1 }
 0x45c   : > { %8071 = vst [vmem:[#allocation76_spill] sm:$0xff] %v6296_v19  ;;  %v6298_v1 = vpop.f32.mrb[23].mxu1 }
 0x45d   : > { %1640 = vrot.lane.b32.xlu0 %v6174_v49, %s7924_s11  ;;  %8072 = vst [vmem:[#allocation77_spill] sm:$0xff] %v6298_v1  ;;  %s8141_s11 = sld [smem:[#allocation86_spill]] }
 0x45f   : > { %1690 = vrot.lane.b32.xlu1 %v6164_v33, %s8063_s26 }
 0x461   : > { %1852 = vrot.lane.b32.xlu0 %v6120_v39, %s8009_s12 }
 0x463   : > { %1742 = vrot.lane.b32.xlu1 %v6164_v33, %s8064_s30 }
 0x465   : > { %1692 = vrot.lane.b32.xlu0 %v6174_v49, %s8063_s26 }
 0x467   : > { %1802 = vrot.lane.b32.xlu1 %v6164_v33, %s8008_s17 }
 0x469   : > { %1848 = vrot.lane.b32.xlu0 %v6144_v37, %s8009_s12 }
 0x46b   : > { %1850 = vrot.lane.b32.xlu1 %v6116_v53, %s8009_s12 }
 0x46d   : > { %1744 = vrot.lane.b32.xlu0 %v6174_v49, %s8064_s30 }
 0x46f   : > { %1846 = vrot.lane.b32.xlu1 %v6140_v13, %s8009_s12 }
 0x471   : > { %1896 = vrot.lane.b32.xlu0 %v6096_v57, %s8010_s19 }
 0x473   : > { %1854 = vrot.lane.b32.xlu1 %v6164_v33, %s8009_s12 }
 0x475   : > { %1904 = vrot.lane.b32.xlu0 %v6120_v39, %s8010_s19 }
 0x477   : > { %1894 = vrot.lane.b32.xlu1 %v6092_v44, %s8010_s19 }
 0x479   : > { %1900 = vrot.lane.b32.xlu0 %v6144_v37, %s8010_s19 }
 0x47b   : > { %1902 = vrot.lane.b32.xlu1 %v6116_v53, %s8010_s19 }
 0x47d   : > { %1804 = vrot.lane.b32.xlu0 %v6174_v49, %s8008_s17 }
 0x47f   : > { %1898 = vrot.lane.b32.xlu1 %v6140_v13, %s8010_s19 }
 0x481   : > { %1948 = vrot.lane.b32.xlu0 %v6096_v57, %s8011_s29 }
 0x483   : > { %1906 = vrot.lane.b32.xlu1 %v6164_v33, %s8010_s19 }
 0x485   : > { %1856 = vrot.lane.b32.xlu0 %v6174_v49, %s8009_s12 }
 0x487   : > { %1946 = vrot.lane.b32.xlu1 %v6092_v44, %s8011_s29 }
 0x489   : > { %v1575_v58 = vpop.permute.xlu1 %1574  ;;  %1956 = vrot.lane.b32.xlu0 %v6120_v39, %s8011_s29 }
 0x48b   : > { %1954 = vrot.lane.b32.xlu1 %v6116_v53, %s8011_s29  ;;  %v1577_v61 = vpop.permute.xlu0 %1576 }
 0x48d   : > { %v6246_v5 = vpop.permute.xlu1 %1626  ;;  %1908 = vrot.lane.b32.xlu0 %v6174_v49, %s8010_s19 }
 0x48f   : > { %1950 = vrot.lane.b32.xlu1 %v6140_v13, %s8011_s29  ;;  %v6252_v9 = vpop.permute.xlu0 %1628 }
 0x491   : > { %v6254_v6 = vpop.permute.xlu1 %1678  ;;  %1952 = vrot.lane.b32.xlu0 %v6144_v37, %s8011_s29 }
 0x493   : > { %1958 = vrot.lane.b32.xlu1 %v6164_v33, %s8011_s29  ;;  %v6260_v32 = vpop.permute.xlu0 %1680 }
 0x495   : > { %v6267_v23 = vpop.permute.xlu1 %1730  ;;  %1960 = vrot.lane.b32.xlu0 %v6174_v49, %s8011_s29 }
 0x497   : > { %2106 = vperm.xlu1 %4625, %v2100_v55   ;;  %v6276_v52 = vpop.permute.xlu0 %1732  ;;  %v2103_v55 = vld [vmem:[%s7848_s9 + $0x18] sm:$0xff] }
 0x499   : > { %v6285_v20 = vpop.permute.xlu1 %1790  ;;  %2111 = vperm.xlu0 %4624, %v2101_v10   ;;  %v1607_v10 = vrot.slane %v1598_v11, %v5274_v16 }
 0x49b   : > { %2116 = vperm.xlu1 %4625, %v2102_v18   ;;  %v6294_v24 = vpop.permute.xlu0 %1792 }
 0x49d   : > { %v1583_v26 = vpop.permute.xlu1 %1582  ;;  %2121 = vperm.xlu0 %4624, %v2103_v55  }
 0x49e   : > { %v1590_v2 = vsel %vm504_vm2, %v1575_v58, %v1583_v26  ;;  %v1594_v36 = vsel %vm504_vm2, %v1583_v26, %v1575_v58 }
 0x49f   : > { %v1585_v14 = vpop.permute.xlu0 %1584  ;;  %v1610_v1 = vmul.f32 %v1603_v38, %v1594_v36  ;;  %v1611_v29 = vmul.f32 %v1607_v10, %v1590_v2 }
 0x4a0   : > { %v1591_v18 = vsel %vm504_vm2, %v1577_v61, %v1585_v14  ;;  %v1595_v19 = vsel %vm504_vm2, %v1585_v14, %v1577_v61 }
 0x4a1   : > { %v1612_v50 = vmul.f32 %v1603_v38, %v1595_v19  ;;  %v1613_v25 = vmul.f32 %v1607_v10, %v1591_v18  ;;  %v1635_v11 = vpop.permute.xlu1 %1634 }
 0x4a2   : > { %v1642_v60 = vsel %vm533_vm3, %v6246_v5, %v1635_v11  ;;  %v1646_v0 = vsel %vm533_vm3, %v1635_v11, %v6246_v5 }
 0x4a3   : > { %v1637_v7 = vpop.permute.xlu0 %1636  ;;  %v6310_v55 = vpack.c.bf16 %v1613_v25, %v1611_v29  ;;  %v6312_v41 = vpack.c.bf16 %v1612_v50, %v1610_v1  ;;  %v1663_v47 = vmul.f32 %v1659_v42, %v1642_v60 }
 0x4a4   : > { %v1643_v28 = vsel %vm533_vm3, %v6252_v9, %v1637_v7  ;;  %v1647_v59 = vsel %vm533_vm3, %v1637_v7, %v6252_v9  ;;  %v1702_v7 = vld [vmem:[#allocation6 + $0x2] ss:$8 sm:$0x3] }
 0x4a5   : > { %8073 = vst [vmem:[#allocation78_spill] sm:$0xff] %v6310_v55  ;;  %8074 = vst [vmem:[#allocation79_spill] sm:$0xff] %v6312_v41  ;;  %v6314_v22 = vpop.permute.xlu1 %1686  ;;  %2264 = vmatprep.subr.bf16.mxu0 %v6310_v55  ;;  %3122 = vmatprep.subr.bf16.mxu1 %v6310_v55  ;;  %v1665_v4 = vmul.f32 %v1659_v42, %v1643_v28  ;;  %v1664_v62 = vmul.f32 %v1655_v54, %v1647_v59 }
 0x4a6   : > { %2265 = vmatpush1.bf16.msra.mxu0 %v6312_v41  ;;  %3123 = vmatpush1.bf16.msra.mxu1 %v6312_v41  ;;  %v1711_v59 = vrot.slane %v1702_v7, %v5274_v16 }
 0x4a7   : > { %v1689_v36 = vpop.permute.xlu0 %1688 }
 0x4a9   : > { %v6320_v26 = vpop.permute.xlu1 %1738 }
 0x4ab   : > { %v6322_v14 = vpop.permute.xlu0 %1740 }
 0x4ad   : > { %v6324_v19 = vpop.permute.xlu1 %1798 }
 0x4af   : > { %v6326_v25 = vpop.permute.xlu0 %1800 }
 0x4b1   : > { %v1579_v50 = vpop.permute.xlu1 %1578 }
 0x4b3   : > { %v1581_v29 = vpop.permute.xlu0 %1580 }
 0x4b5   : > { %v1631_v1 = vpop.permute.xlu1 %1630 }
 0x4b7   : > { %v1633_v2 = vpop.permute.xlu0 %1632 }
 0x4b9   : > { %v6328_v58 = vpop.permute.xlu1 %1682 }
 0x4bb   : > { %v6330_v61 = vpop.permute.xlu0 %1684 }
 0x4bd   : > { %v6332_v18 = vpop.permute.xlu1 %1734 }
 0x4bf   : > { %v6334_v41 = vpop.permute.xlu0 %1736 }
 0x4c1   : > { %v6336_v55 = vpop.permute.xlu1 %1794 }
 0x4c3   : > { %v6338_v8 = vpop.permute.xlu0 %1796 }
 0x4c5   : > { %v1587_v56 = vpop.permute.xlu1 %1586 }
 0x4c6   : > { %v1592_v3 = vsel %vm504_vm2, %v1579_v50, %v1587_v56  ;;  %v1596_v40 = vsel %vm504_vm2, %v1587_v56, %v1579_v50 }
 0x4c7   : > { %v1589_v43 = vpop.permute.xlu0 %1588  ;;  %v1614_v51 = vmul.f32 %v1603_v38, %v1596_v40  ;;  %v1615_v56 = vmul.f32 %v1607_v10, %v1592_v3  ;;  %v1699_v40 = vsel %vm563_vm4, %v1689_v36, %v6260_v32 }
 0x4c8   : > { %v1593_v27 = vsel %vm504_vm2, %v1581_v29, %v1589_v43  ;;  %v1597_v31 = vsel %vm504_vm2, %v1589_v43, %v1581_v29  ;;  %v1662_v43 = vmul.f32 %v1655_v54, %v1646_v0  ;;  %v1694_v0 = vsel %vm563_vm4, %v6254_v6, %v6314_v22 }
 0x4c9   : > { %v1616_v50 = vmul.f32 %v1603_v38, %v1597_v31  ;;  %v1617_v21 = vmul.f32 %v1607_v10, %v1593_v27  ;;  %v6359_v12 = vpop.permute.xlu1 %1842  ;;  %v1695_v38 = vsel %vm563_vm4, %v6260_v32, %v1689_v36  ;;  %v6375_v27 = vpack.c.bf16 %v1665_v4, %v1663_v47 }
 0x4ca   : > { %v6390_v4 = vpack.c.bf16 %v1664_v62, %v1662_v43  ;;  %v1717_v3 = vmul.f32 %v1711_v59, %v1695_v38  ;;  %v1754_v62 = vld [vmem:[#allocation6 + $0x3] ss:$8 sm:$0x3]  ;;  %v1698_v32 = vsel %vm563_vm4, %v6314_v22, %v6254_v6  ;;  %v1715_v36 = vmul.f32 %v1711_v59, %v1694_v0 }
 0x4cb   : > { %v6364_v28 = vpop.permute.xlu0 %1844  ;;  %v6366_v9 = vpack.c.bf16 %v1617_v21, %v1615_v56  ;;  %v6368_v63 = vpack.c.bf16 %v1616_v50, %v1614_v51  ;;  %v1707_v21 = vrot.slane %v1702_v7, %v5271_v15  ;;  %v1759_v7 = vrot.slane %v1754_v62, %v5271_v15 }
 0x4cc   : > { %v1746_v0 = vsel %vm593_vm5, %v6267_v23, %v6320_v26 }
 0x4cd   : > { %v1639_v31 = vpop.permute.xlu1 %1638  ;;  %2266 = vmatprep.subr.bf16.mxu0 %v6366_v9  ;;  %3124 = vmatprep.subr.bf16.mxu1 %v6366_v9 }
 0x4ce   : > { %v1644_v60 = vsel %vm533_vm3, %v1631_v1, %v1639_v31  ;;  %v1648_v51 = vsel %vm533_vm3, %v1639_v31, %v1631_v1  ;;  %2267 = vmatpush1.bf16.msra.mxu0 %v6368_v63  ;;  %3125 = vmatpush1.bf16.msra.mxu1 %v6368_v63  ;;  %v6415_v31 = vpack.c.bf16 %v1717_v3, %v1715_v36 }
 0x4cf   : > { %2268 = vmatprep.subr.bf16.mxu0 %v6375_v27  ;;  %3126 = vmatprep.subr.bf16.mxu1 %v6375_v27  ;;  %v1641_v47 = vpop.permute.xlu0 %1640  ;;  %v1666_v11 = vmul.f32 %v1655_v54, %v1648_v51  ;;  %v1667_v29 = vmul.f32 %v1659_v42, %v1644_v60  ;;  %v1714_v60 = vmul.f32 %v1707_v21, %v1698_v32 }
 0x4d0   : > { %v1645_v5 = vsel %vm533_vm3, %v1633_v2, %v1641_v47  ;;  %v1649_v10 = vsel %vm533_vm3, %v1641_v47, %v1633_v2  ;;  %v1763_v51 = vrot.slane %v1754_v62, %v5274_v16  ;;  %v1747_v47 = vsel %vm593_vm5, %v6276_v52, %v6322_v14  ;;  %v4651_v62 = vld [vmem:[#allocation11 + $0x8] ss:$24 sps:$4 sm:$0xff]  }
 0x4d1   : > { %v1668_v1 = vmul.f32 %v1655_v54, %v1649_v10  ;;  %v1669_v56 = vmul.f32 %v1659_v42, %v1645_v5  ;;  %v1691_v50 = vpop.permute.xlu1 %1690  ;;  %v1716_v42 = vmul.f32 %v1707_v21, %v1699_v40  ;;  %v1751_v40 = vsel %vm593_vm5, %v6322_v14, %v6276_v52 }
 0x4d2   : > { %2269 = vmatpush1.bf16.msra.mxu0 %v6390_v4  ;;  %3127 = vmatpush1.bf16.msra.mxu1 %v6390_v4  ;;  %v1696_v22 = vsel %vm563_vm4, %v6328_v58, %v1691_v50  ;;  %v1700_v6 = vsel %vm563_vm4, %v1691_v50, %v6328_v58  ;;  %v1750_v52 = vsel %vm593_vm5, %v6320_v26, %v6267_v23  ;;  %v4654_v23 = vld [vmem:[#allocation11 + $0x3c] ss:$24 sps:$4 sm:$0xff]  }
 0x4d3   : > { %v6406_v43 = vpop.permute.xlu0 %1852  ;;  %v6408_v2 = vpack.c.bf16 %v1669_v56, %v1667_v29  ;;  %v6410_v54 = vpack.c.bf16 %v1668_v1, %v1666_v11  ;;  %v6446_v10 = vpack.c.bf16 %v1716_v42, %v1714_v60  ;;  %v1718_v11 = vmul.f32 %v1707_v21, %v1700_v6 }
 0x4d4   : > { %v1719_v29 = vmul.f32 %v1711_v59, %v1696_v22  ;;  %v1769_v14 = vmul.f32 %v1763_v51, %v1747_v47  ;;  %v1766_v42 = vmul.f32 %v1759_v7, %v1750_v52  ;;  %v8075_v6 = vcombine.low %v6185_v30, %v6190_v48  ;;  %v1814_v52 = vld [vmem:[#allocation6 + $0x5] ss:$8 sm:$0x3] }
 0x4d5   : > { %v1743_v38 = vpop.permute.xlu1 %1742  ;;  %2270 = vmatprep.subr.bf16.mxu0 %v6408_v2  ;;  %3128 = vmatprep.subr.bf16.mxu1 %v6408_v2 }
 0x4d6   : > { %2271 = vmatpush1.bf16.msra.mxu0 %v6410_v54  ;;  %3129 = vmatpush1.bf16.msra.mxu1 %v6410_v54  ;;  %v1748_v26 = vsel %vm593_vm5, %v6332_v18, %v1743_v38  ;;  %v1752_v22 = vsel %vm593_vm5, %v1743_v38, %v6332_v18 }
 0x4d7   : > { %2272 = vmatprep.subr.bf16.mxu0 %v6415_v31  ;;  %3130 = vmatprep.subr.bf16.mxu1 %v6415_v31  ;;  %v1693_v58 = vpop.permute.xlu0 %1692  ;;  %v1770_v48 = vmul.f32 %v1759_v7, %v1752_v22  ;;  %v1771_v38 = vmul.f32 %v1763_v51, %v1748_v26  ;;  %v1866_v26 = vld [vmem:[#allocation6 + $0x6] ss:$8 sm:$0x3]  ;;  %v6540_v22 = vpack.c.bf16 %v6174_v49, %v6164_v33 }
 0x4d8   : > { %v1697_v3 = vsel %vm563_vm4, %v6330_v61, %v1693_v58  ;;  %v1701_v5 = vsel %vm563_vm4, %v1693_v58, %v6330_v61  ;;  %v6551_v33 = vpack.c.bf16 %v6144_v37, %v6140_v13  ;;  %v1875_v49 = vrot.slane %v1866_v26, %v5274_v16 }
 0x4d9   : > { %v1720_v1 = vmul.f32 %v1707_v21, %v1701_v5  ;;  %v1721_v56 = vmul.f32 %v1711_v59, %v1697_v3  ;;  %v6448_v50 = vpop.permute.xlu1 %1802  ;;  %v1767_v59 = vmul.f32 %v1763_v51, %v1746_v0  ;;  %v1768_v21 = vmul.f32 %v1759_v7, %v1751_v40 }
 0x4da   : > { %2273 = vmatpush1.bf16.msra.mxu0 %v6446_v10  ;;  %3131 = vmatpush1.bf16.msra.mxu1 %v6446_v10  ;;  %v1863_v13 = vsel %vm657_vm9, %v6406_v43, %v6364_v28 }
 0x4db   : > { %v6456_v61 = vpack.c.bf16 %v1720_v1, %v1718_v11  ;;  %v6458_v32 = vpop.permute.xlu0 %1848  ;;  %v6460_v36 = vpack.c.bf16 %v1721_v56, %v1719_v29  ;;  %v6475_v0 = vpack.c.bf16 %v1769_v14, %v1767_v59  ;;  %v6479_v58 = vpack.c.bf16 %v1768_v21, %v1766_v42  ;;  %v4656_v11 = vld [vmem:[#allocation11 + $0x38] ss:$24 sps:$4 sm:$0xff]  }
 0x4dc   : > { %v1811_v14 = vsel %vm627_vm6, %v6326_v25, %v6294_v24  ;;  %v1823_v59 = vrot.slane %v1814_v52, %v5274_v16  ;;  %v1810_v21 = vsel %vm627_vm6, %v6324_v19, %v6285_v20 }
 0x4dd   : > { %v6462_v60 = vpop.permute.xlu1 %1850  ;;  %2295 = vmatprep.subr.bf16.mxu0 %v6460_v36  ;;  %3153 = vmatprep.subr.bf16.mxu1 %v6460_v36 }
 0x4de   : > { %2275 = vmatmul.mubr.bf16.vlgmr.msra.gmra.mrb[0].mxu0 %v4651_v62  ;;  %3133 = vmatmul.mubr.bf16.vlgmr.msra.gmra.mrb[24].mxu1 %v8075_v6  ;;  %v1862_v37 = vsel %vm657_vm9, %v6462_v60, %v6359_v12 }
 0x4df   : > { %2296 = vmatpush1.bf16.msra.mxu0 %v6456_v61  ;;  %3154 = vmatpush1.bf16.msra.mxu1 %v6456_v61  ;;  %v1745_v47 = vpop.permute.xlu0 %1744 }
 0x4e0   : > { %2297 = vmatprep.subr.bf16.mxu0 %v6475_v0  ;;  %3155 = vmatprep.subr.bf16.mxu1 %v6475_v0  ;;  %v1749_v18 = vsel %vm593_vm5, %v6334_v41, %v1745_v47  ;;  %v1753_v30 = vsel %vm593_vm5, %v1745_v47, %v6334_v41 }
 0x4e1   : > { %v1772_v40 = vmul.f32 %v1759_v7, %v1753_v30  ;;  %v1773_v3 = vmul.f32 %v1763_v51, %v1749_v18  ;;  %v6489_v5 = vpop.permute.xlu1 %1846  ;;  %2284 = vmatprep.mubr.bf16.mxu0 %v4654_v23  ;;  %v4659_v7 = vld [vmem:[#allocation11 + $0x14] ss:$24 sps:$4 sm:$0xff]   ;;  %v6505_v51 = vpack.c.bf16 %v6120_v39, %v6116_v53  ;;  %v1807_v53 = vsel %vm627_vm6, %v6294_v24, %v6326_v25 }
 0x4e2   : > { %v1819_v39 = vrot.slane %v1814_v52, %v5271_v15  ;;  %v6531_v23 = vpack.c.bf16 %v6096_v57, %v6092_v44  ;;  %v1806_v24 = vsel %vm627_vm6, %v6285_v20, %v6324_v19  ;;  %v1829_v25 = vmul.f32 %v1823_v59, %v1811_v14 }
 0x4e3   : > { %v6491_v29 = vpack.c.bf16 %v1772_v40, %v1770_v48  ;;  %2298 = vmatpush1.bf16.msra.mxu0 %v6479_v58  ;;  %3156 = vmatpush1.bf16.msra.mxu1 %v6479_v58  ;;  %v6495_v1 = vpop.permute.xlu0 %1896  ;;  %v6497_v56 = vpack.c.bf16 %v1773_v3, %v1771_v38  ;;  %v1827_v57 = vmul.f32 %v1823_v59, %v1810_v21 }
 0x4e4   : > { %v1828_v6 = vmul.f32 %v1819_v39, %v1807_v53  ;;  %v1826_v47 = vmul.f32 %v1819_v39, %v1806_v24  ;;  %v1871_v20 = vrot.slane %v1866_v26, %v5271_v15  ;;  %v1808_v18 = vsel %vm627_vm6, %v6336_v55, %v6448_v50  ;;  %v1918_v24 = vld [vmem:[#allocation6 + $0x7] ss:$8 sm:$0x3] }
 0x4e5   : > { %v6499_v41 = vpop.permute.xlu1 %1854  ;;  %2299 = vmatprep.subr.bf16.mxu0 %v6497_v56  ;;  %3157 = vmatprep.subr.bf16.mxu1 %v6497_v56  ;;  %v1812_v30 = vsel %vm627_vm6, %v6448_v50, %v6336_v55  ;;  %v6562_v48 = vpack.c.bf16 %v1829_v25, %v1827_v57  ;;  %v1858_v55 = vsel %vm657_vm9, %v6359_v12, %v6462_v60 }
 0x4e6   : > { %2285 = vmatmul.mubr.bf16.gmra.mrb[4].mxu0 %v4656_v11  ;;  %v6564_v38 = vpack.c.bf16 %v1828_v6, %v1826_v47  ;;  %v1830_v11 = vmul.f32 %v1819_v39, %v1808_v18  ;;  %v1831_v52 = vmul.f32 %v1823_v59, %v1812_v30  ;;  %v1859_v12 = vsel %vm657_vm9, %v6364_v28, %v6406_v43 }
 0x4e7   : > { %2300 = vmatpush1.bf16.msra.mxu0 %v6491_v29  ;;  %3158 = vmatpush1.bf16.msra.mxu1 %v6491_v29  ;;  %v6513_v62 = vpop.permute.xlu0 %1904  ;;  %v1879_v60 = vmul.f32 %v1875_v49, %v1862_v37  ;;  %v1878_v21 = vmul.f32 %v1871_v20, %v1858_v55  ;;  %v1880_v28 = vmul.f32 %v1871_v20, %v1859_v12 }
 0x4e8   : > { %2301 = vmatprep.subr.bf16.mxu0 %v6505_v51  ;;  %3159 = vmatprep.subr.bf16.mxu1 %v6505_v51  ;;  %v1864_v6 = vsel %vm657_vm9, %v6499_v41, %v6489_v5  ;;  %v1923_v57 = vrot.slane %v1918_v24, %v5271_v15  ;;  %v1927_v47 = vrot.slane %v1918_v24, %v5274_v16 }
 0x4e9   : > { %v6527_v42 = vpop.permute.xlu1 %1894  ;;  %4367 = vmatprep.mubr.msk.bf16.mxu0 %vm2182_vm7, %v4659_v7  ;;  %v6614_v30 = vpack.c.bf16 %v1880_v28, %v1878_v21 }
 0x4eb   : > { %2302 = vmatpush1.bf16.msra.mxu0 %v6531_v23  ;;  %3160 = vmatpush1.bf16.msra.mxu1 %v6531_v23  ;;  %v6544_v44 = vpop.permute.xlu0 %1900 }
 0x4ec   : > { %2303 = vmatprep.subr.bf16.mxu0 %v6540_v22  ;;  %3161 = vmatprep.subr.bf16.mxu1 %v6540_v22 }
 0x4ed   : > { %v1903_v19 = vpop.permute.xlu1 %1902 }
 0x4ee   : > { %v1914_v37 = vsel %vm687_vm10, %v1903_v19, %v6527_v42 }
 0x4ef   : > { %2304 = vmatpush1.bf16.msra.mxu0 %v6551_v33  ;;  %3162 = vmatpush1.bf16.msra.mxu1 %v6551_v33  ;;  %v1805_v40 = vpop.permute.xlu0 %1804 }
 0x4f0   : > { %2305 = vmatprep.subr.bf16.mxu0 %v6562_v48  ;;  %3163 = vmatprep.subr.bf16.mxu1 %v6562_v48  ;;  %v1809_v50 = vsel %vm627_vm6, %v6338_v8, %v1805_v40  ;;  %v1813_v3 = vsel %vm627_vm6, %v1805_v40, %v6338_v8 }
 0x4f1   : > { %v1832_v7 = vmul.f32 %v1819_v39, %v1809_v50  ;;  %v1833_v14 = vmul.f32 %v1823_v59, %v1813_v3  ;;  %v1899_v53 = vpop.permute.xlu1 %1898  ;;  %v1881_v59 = vmul.f32 %v1875_v49, %v1863_v13  ;;  %v1860_v39 = vsel %vm657_vm9, %v6489_v5, %v6499_v41 }
 0x4f2   : > { %v1882_v13 = vmul.f32 %v1871_v20, %v1860_v39  ;;  %v1910_v5 = vsel %vm687_vm10, %v6527_v42, %v1903_v19  ;;  %v1883_v50 = vmul.f32 %v1875_v49, %v1864_v6  ;;  %v1915_v3 = vsel %vm687_vm10, %v6513_v62, %v6495_v1 }
 0x4f3   : > { %v6592_v25 = vpack.c.bf16 %v1832_v7, %v1830_v11  ;;  %2306 = vmatpush1.bf16.msra.mxu0 %v6564_v38  ;;  %3164 = vmatpush1.bf16.msra.mxu1 %v6564_v38  ;;  %v6596_v8 = vpop.permute.xlu0 %1948  ;;  %v6598_v26 = vpack.c.bf16 %v1833_v14, %v1831_v52  ;;  %v6612_v18 = vpack.c.bf16 %v1881_v59, %v1879_v60 }
 0x4f4   : > { %v1911_v52 = vsel %vm687_vm10, %v6495_v1, %v6513_v62  ;;  %v1931_v7 = vmul.f32 %v1927_v47, %v1914_v37  ;;  %v1930_v14 = vmul.f32 %v1923_v57, %v1910_v5 }
 0x4f5   : > { %v1907_v43 = vpop.permute.xlu1 %1906  ;;  %2307 = vmatprep.subr.bf16.mxu0 %v6598_v26  ;;  %3165 = vmatprep.subr.bf16.mxu1 %v6598_v26  ;;  %v1932_v24 = vmul.f32 %v1923_v57, %v1911_v52 }
 0x4f6   : > { %v1916_v1 = vsel %vm687_vm10, %v1907_v43, %v1899_v53 }
 0x4f7   : > { %2308 = vmatpush1.bf16.msra.mxu0 %v6592_v25  ;;  %3166 = vmatpush1.bf16.msra.mxu1 %v6592_v25  ;;  %v1857_v40 = vpop.permute.xlu0 %1856  ;;  %v6655_v28 = vpack.c.bf16 %v1932_v24, %v1930_v14  ;;  %v4907_v24 = vmov 1983009808  }
 0x4f8   : > { %2309 = vmatprep.subr.bf16.mxu0 %v6612_v18  ;;  %3167 = vmatprep.subr.bf16.mxu1 %v6612_v18  ;;  %v1861_v41 = vsel %vm657_vm9, %v6458_v32, %v1857_v40  ;;  %v1865_v55 = vsel %vm657_vm9, %v1857_v40, %v6458_v32  ;;  %v1970_v32 = vld [vmem:[#allocation6 + $0x10] ss:$8 sm:$0x3] }
 0x4f9   : > { %v1884_v11 = vmul.f32 %v1871_v20, %v1861_v41  ;;  %v1885_v42 = vmul.f32 %v1875_v49, %v1865_v55  ;;  %v1947_v19 = vpop.permute.xlu1 %1946  ;;  %v1933_v20 = vmul.f32 %v1927_v47, %v1915_v3  ;;  %v1912_v49 = vsel %vm687_vm10, %v1899_v53, %v1907_v43 }
 0x4fa   : > { %v1979_v59 = vrot.slane %v1970_v32, %v5274_v16  ;;  %v1934_v6 = vmul.f32 %v1923_v57, %v1912_v49  ;;  %v1935_v43 = vmul.f32 %v1927_v47, %v1916_v1  ;;  %v3883_v1 = vunpack.c.l.s4 %v4907_v24  ;;  %v8088_v24 = vld [vmem:[#allocation28_spill] sm:$0xff] }
 0x4fb   : > { %v6640_v12 = vpack.c.bf16 %v1884_v11, %v1882_v13  ;;  %2310 = vmatpush1.bf16.msra.mxu0 %v6614_v30  ;;  %3168 = vmatpush1.bf16.msra.mxu1 %v6614_v30  ;;  %v1957_v60 = vpop.permute.xlu0 %1956  ;;  %v6644_v21 = vpack.c.bf16 %v1885_v42, %v1883_v50  ;;  %v6653_v39 = vpack.c.bf16 %v1933_v20, %v1931_v7 }
 0x4fc   : > { %v1967_v5 = vsel %vm717_vm11, %v1957_v60, %v6596_v8  ;;  %v1975_v11 = vrot.slane %v1970_v32, %v5271_v15  ;;  %v1963_v52 = vsel %vm717_vm11, %v6596_v8, %v1957_v60 }
 0x4fd   : > { %v1955_v62 = vpop.permute.xlu1 %1954  ;;  %2311 = vmatprep.subr.bf16.mxu0 %v6644_v21  ;;  %3169 = vmatprep.subr.bf16.mxu1 %v6644_v21 }
 0x4fe   : > { %v1966_v13 = vsel %vm717_vm11, %v1955_v62, %v1947_v19  ;;  %v1962_v41 = vsel %vm717_vm11, %v1947_v19, %v1955_v62  ;;  %v1985_v19 = vmul.f32 %v1979_v59, %v1967_v5  ;;  %v1984_v32 = vmul.f32 %v1975_v11, %v1963_v52 }
 0x4ff   : > { %2312 = vmatpush1.bf16.msra.mxu0 %v6640_v12  ;;  %3170 = vmatpush1.bf16.msra.mxu1 %v6640_v12  ;;  %v1909_v53 = vpop.permute.xlu0 %1908  ;;  %v1983_v42 = vmul.f32 %v1979_v59, %v1966_v13 }
 0x500   : > { %2313 = vmatprep.subr.bf16.mxu0 %v6653_v39  ;;  %3171 = vmatprep.subr.bf16.mxu1 %v6653_v39  ;;  %v1913_v37 = vsel %vm687_vm10, %v6544_v44, %v1909_v53  ;;  %v1917_v40 = vsel %vm687_vm10, %v1909_v53, %v6544_v44 }
 0x501   : > { %v1936_v55 = vmul.f32 %v1923_v57, %v1913_v37  ;;  %v1937_v50 = vmul.f32 %v1927_v47, %v1917_v40  ;;  %v1951_v3 = vpop.permute.xlu1 %1950  ;;  %v1982_v57 = vmul.f32 %v1975_v11, %v1962_v41  ;;  %v6690_v20 = vpack.c.bf16 %v1985_v19, %v1983_v42  ;;  %v3869_v42 = vld [vmem:[%s8077_s18] sm:$0xff] }
 0x503   : > { %v6678_v7 = vpack.c.bf16 %v1936_v55, %v1934_v6  ;;  %2314 = vmatpush1.bf16.msra.mxu0 %v6655_v28  ;;  %3172 = vmatpush1.bf16.msra.mxu1 %v6655_v28  ;;  %v1953_v44 = vpop.permute.xlu0 %1952  ;;  %v6682_v14 = vpack.c.bf16 %v1937_v50, %v1935_v43  ;;  %v6694_v62 = vpack.c.bf16 %v1984_v32, %v1982_v57  ;;  %v3884_v55 = vunpack.c.0.s8 %v3883_v1  ;;  %v4657_v50 = vld [vmem:[#allocation11 + $0x10] ss:$24 sps:$4 sm:$0xff]   ;;  %v8089_v1 = vld [vmem:[#allocation31_spill] sm:$0xff] }
 0x504   : > { %v8078_v57 = vld [vmem:[#allocation20_spill] sm:$0xff]  ;;  %v8081_v32 = vld [vmem:[#allocation21_spill] sm:$0xff] }
 0x505   : > { %v1959_v47 = vpop.permute.xlu1 %1958  ;;  %2315 = vmatprep.subr.bf16.mxu0 %v6682_v14  ;;  %3173 = vmatprep.subr.bf16.mxu1 %v6682_v14 }
 0x506   : > { %v1964_v8 = vsel %vm717_vm11, %v1951_v3, %v1959_v47  ;;  %v1968_v60 = vsel %vm717_vm11, %v1959_v47, %v1951_v3  ;;  %v4660_v3 = vld [vmem:[#allocation11 + $0x44] ss:$24 sps:$4 sm:$0xff]  }
 0x507   : > { %2316 = vmatpush1.bf16.msra.mxu0 %v6678_v7  ;;  %3174 = vmatpush1.bf16.msra.mxu1 %v6678_v7  ;;  %v1961_v49 = vpop.permute.xlu0 %1960  ;;  %v1986_v53 = vmul.f32 %v1975_v11, %v1964_v8  ;;  %v1987_v43 = vmul.f32 %v1979_v59, %v1968_v60  ;;  %v8080_v47 = vld [vmem:[#allocation22_spill] sm:$0xff]  ;;  %v8084_v60 = vld [vmem:[#allocation25_spill] sm:$0xff] }
 0x508   : > { %2317 = vmatprep.subr.bf16.mxu0 %v6690_v20  ;;  %3175 = vmatprep.subr.bf16.mxu1 %v6690_v20  ;;  %v1965_v6 = vsel %vm717_vm11, %v1953_v44, %v1961_v49  ;;  %v1969_v13 = vsel %vm717_vm11, %v1961_v49, %v1953_v44  ;;  %v4662_v44 = vld [vmem:[#allocation11 + $0x40] ss:$24 sps:$4 sm:$0xff]   ;;  %v8087_v49 = vld [vmem:[#allocation29_spill] sm:$0xff] }
 0x509   : > { %v1988_v37 = vmul.f32 %v1975_v11, %v1965_v6  ;;  %v1989_v40 = vmul.f32 %v1979_v59, %v1969_v13  ;;  %v8076_v59 = vld [vmem:[#allocation18_spill] sm:$0xff]  ;;  %v8091_v13 = vld [vmem:[#allocation33_spill] sm:$0xff] }
 0x50a   : > { %v6713_v11 = vsub.s32 %v3884_v55, %v8076_v59  ;;  %v8090_v6 = vld [vmem:[#allocation30_spill] sm:$0xff]  ;;  %v8096_v55 = vld [vmem:[#allocation36_spill] sm:$0xff]  ;;  %v8099_v59 = vld [vmem:[#allocation41_spill] sm:$0xff] }
 0x50b   : > { %v6702_v5 = vpack.c.bf16 %v1988_v37, %v1986_v53  ;;  %2318 = vmatpush1.bf16.msra.mxu0 %v6694_v62  ;;  %3176 = vmatpush1.bf16.msra.mxu1 %v6694_v62  ;;  %v6706_v41 = vpack.c.bf16 %v1989_v40, %v1987_v43  ;;  %v8092_v53 = vld [vmem:[#allocation32_spill] sm:$0xff]  ;;  %v8093_v43 = vld [vmem:[#allocation35_spill] sm:$0xff]  ;;  %v8094_v37 = vld [vmem:[#allocation34_spill] sm:$0xff] }
 0x50c   : > { %v3888_v52 = vrot.slane %v3869_v42, %v6713_v11  ;;  %v8095_v40 = vld [vmem:[#allocation37_spill] sm:$0xff]  ;;  %v8105_v8 = vld [vmem:[#allocation46_spill] sm:$0xff] }
 0x50d   : > { %2319 = vmatprep.subr.bf16.mxu0 %v6706_v41  ;;  %3177 = vmatprep.subr.bf16.mxu1 %v6706_v41 }
 0x50e   : > { %v3896_v19 = vcombine.high %v3888_v52, %v3888_v52 }
 0x50f   : > { %2320 = vmatpush1.bf16.msra.mxu0 %v6702_v5  ;;  %3178 = vmatpush1.bf16.msra.mxu1 %v6702_v5 }
 0x510   : > { %3944 = vmatprep.subr.bf16.mxu0 %v5290_v35  ;;  %v8079_v35 = vld [vmem:[#allocation19_spill] sm:$0xff] }
 0x512   : > { %2328 = vmatmul.mubr.bf16.vlgmr.msra.gmra.mrb[0].mxu0 %v4657_v50  ;;  %v8097_v50 = vld [vmem:[#allocation38_spill] sm:$0xff] }
 0x513   : > { %3945 = vmatpush1.bf16.msra.mxu0 %v5288_v34  ;;  %4368 = vmatprep.mubr.msk.bf16.mxu0 %vm2182_vm7, %v4660_v3  ;;  %v8082_v34 = vld [vmem:[#allocation23_spill] sm:$0xff] }
 0x514   : > { %3946 = vmatprep.subr.bf16.mxu0 %v5301_v46  ;;  %v8086_v46 = vld [vmem:[#allocation27_spill] sm:$0xff] }
 0x515   : > { %v8098_v3 = vld [vmem:[#allocation39_spill] sm:$0xff] }
 0x517   : > { %3947 = vmatpush1.bf16.msra.mxu0 %v5299_v45  ;;  %v8085_v45 = vld [vmem:[#allocation26_spill] sm:$0xff] }
 0x518   : > { %3948 = vmatprep.subr.bf16.mxu0 %v8078_v57  ;;  %v8102_v57 = vld [vmem:[#allocation43_spill] sm:$0xff] }
 0x51a   : > { %2338 = vmatmul.mubr.bf16.gmra.mrb[4].mxu0 %v4662_v44  ;;  %v8100_v44 = vld [vmem:[#allocation40_spill] sm:$0xff] }
 0x51b   : > { %3949 = vmatpush1.bf16.msra.mxu0 %v8079_v35  ;;  %3976 = vmatprep.mubr.bf16.mxu0 %v3896_v19  ;;  %v8101_v19 = vld [vmem:[#allocation42_spill] sm:$0xff]  ;;  %v3881_v35 = vcombine.high %v3869_v42, %v3869_v42  ;;  %v8110_v42 = vld [vmem:[#allocation51_spill] sm:$0xff] }
 0x51c   : > { %3950 = vmatprep.subr.bf16.mxu0 %v8080_v47  ;;  %v8103_v47 = vld [vmem:[#allocation45_spill] sm:$0xff] }
 0x51f   : > { %3951 = vmatpush1.bf16.msra.mxu0 %v8081_v32  ;;  %v8104_v32 = vld [vmem:[#allocation44_spill] sm:$0xff] }
 0x520   : > { %4421 = vmatprep.subr.msk.bf16.mxu0 %vm5334_vm8, %v8082_v34  ;;  %v3895_v34 = vrot.slane %v3881_v35, %v6713_v11  ;;  %v8126_v35 = vld [vmem:[#allocation67_spill] sm:$0xff] }
 0x523   : > { %4424 = vmatpush1.bf16.msk.msra.mxu0 %vm5334_vm8, %v8084_v60  ;;  %v8106_v60 = vld [vmem:[#allocation47_spill] sm:$0xff] }
 0x524   : > { %3954 = vmatprep.subr.bf16.mxu0 %v8085_v45  ;;  %v3897_v45 = vcombine.high %v3895_v34, %v3895_v34 }
 0x527   : > { %3955 = vmatpush1.bf16.msra.mxu0 %v8086_v46  ;;  %v8107_v46 = vld [vmem:[#allocation49_spill] sm:$0xff] }
 0x528   : > { %3956 = vmatprep.subr.bf16.mxu0 %v8087_v49  ;;  %v8108_v49 = vld [vmem:[#allocation48_spill] sm:$0xff] }
 0x52b   : > { %3957 = vmatpush1.bf16.msra.mxu0 %v8088_v24  ;;  %v8109_v24 = vld [vmem:[#allocation50_spill] sm:$0xff] }
 0x52c   : > { %3958 = vmatprep.subr.bf16.mxu0 %v8089_v1  ;;  %v8111_v1 = vld [vmem:[#allocation52_spill] sm:$0xff] }
 0x52f   : > { %3959 = vmatpush1.bf16.msra.mxu0 %v8090_v6  ;;  %v8112_v6 = vld [vmem:[#allocation53_spill] sm:$0xff] }
 0x530   : > { %3960 = vmatprep.subr.bf16.mxu0 %v8091_v13  ;;  %v8113_v13 = vld [vmem:[#allocation54_spill] sm:$0xff] }
 0x533   : > { %3961 = vmatpush1.bf16.msra.mxu0 %v8092_v53  ;;  %v8114_v53 = vld [vmem:[#allocation55_spill] sm:$0xff] }
 0x534   : > { %3962 = vmatprep.subr.bf16.mxu0 %v8093_v43  ;;  %v8115_v43 = vld [vmem:[#allocation57_spill] sm:$0xff] }
 0x537   : > { %3963 = vmatpush1.bf16.msra.mxu0 %v8094_v37  ;;  %v8116_v37 = vld [vmem:[#allocation56_spill] sm:$0xff] }
 0x538   : > { %3964 = vmatprep.subr.bf16.mxu0 %v8095_v40  ;;  %v8118_v40 = vld [vmem:[#allocation59_spill] sm:$0xff] }
 0x53b   : > { %3965 = vmatpush1.bf16.msra.mxu0 %v8096_v55  ;;  %v8119_v55 = vld [vmem:[#allocation61_spill] sm:$0xff] }
 0x53c   : > { %3966 = vmatprep.subr.bf16.mxu0 %v8097_v50  ;;  %v8120_v50 = vld [vmem:[#allocation60_spill] sm:$0xff] }
 0x53f   : > { %3967 = vmatpush1.bf16.msra.mxu0 %v8098_v3  ;;  %v8121_v3 = vld [vmem:[#allocation62_spill] sm:$0xff] }
 0x540   : > { %3968 = vmatprep.subr.bf16.mxu0 %v8099_v59  ;;  %v8122_v59 = vld [vmem:[#allocation63_spill] sm:$0xff] }
 0x543   : > { %3969 = vmatpush1.bf16.msra.mxu0 %v8100_v44  ;;  %v8123_v44 = vld [vmem:[#allocation65_spill] sm:$0xff] }
 0x544   : > { %3970 = vmatprep.subr.bf16.mxu0 %v8101_v19  ;;  %v8124_v19 = vld [vmem:[#allocation64_spill] sm:$0xff] }
 0x547   : > { %3971 = vmatpush1.bf16.msra.mxu0 %v8102_v57  ;;  %v8125_v57 = vld [vmem:[#allocation66_spill] sm:$0xff] }
 0x548   : > { %3972 = vmatprep.subr.bf16.mxu0 %v8103_v47  ;;  %v8127_v47 = vld [vmem:[#allocation69_spill] sm:$0xff] }
 0x54b   : > { %3973 = vmatpush1.bf16.msra.mxu0 %v8104_v32  ;;  %v8128_v32 = vld [vmem:[#allocation68_spill] sm:$0xff] }
 0x54c   : > { %3974 = vmatprep.subr.bf16.mxu0 %v8105_v8  ;;  %v8129_v8 = vld [vmem:[#allocation78_spill] sm:$0xff] }
 0x54f   : > { %3975 = vmatpush1.bf16.msra.mxu0 %v8106_v60  ;;  %v8130_v60 = vld [vmem:[#allocation79_spill] sm:$0xff] }
 0x550   : > { %3985 = vmatprep.subr.bf16.mxu0 %v8107_v46 }
 0x552   : > { %3977 = vmatmul.mubr.bf16.vlgmr.msra.gmra.mrb[8].mxu0 %v3888_v52  ;;  %v8117_v52 = vld [vmem:[#allocation58_spill] sm:$0xff] }
 0x553   : > { %3986 = vmatpush1.bf16.msra.mxu0 %v8108_v49  ;;  %4017 = vmatprep.mubr.bf16.mxu0 %v3897_v45  ;;  %v8139_v45 = vld [vmem:[#allocation77_spill] sm:$0xff] }
 0x554   : > { %3987 = vmatprep.subr.bf16.mxu0 %v8109_v24 }
 0x557   : > { %3988 = vmatpush1.bf16.msra.mxu0 %v8110_v42 }
 0x558   : > { %3989 = vmatprep.subr.bf16.mxu0 %v8111_v1 }
 0x55b   : > { %3990 = vmatpush1.bf16.msra.mxu0 %v8112_v6 }
 0x55c   : > { %3991 = vmatprep.subr.bf16.mxu0 %v8113_v13 }
 0x55f   : > { %3992 = vmatpush1.bf16.msra.mxu0 %v8114_v53 }
 0x560   : > { %3993 = vmatprep.subr.bf16.mxu0 %v8115_v43 }
 0x563   : > { %3994 = vmatpush1.bf16.msra.mxu0 %v8116_v37 }
 0x564   : > { %3995 = vmatprep.subr.bf16.mxu0 %v8117_v52 }
 0x567   : > { %3996 = vmatpush1.bf16.msra.mxu0 %v8118_v40 }
 0x568   : > { %3997 = vmatprep.subr.bf16.mxu0 %v8119_v55  ;;  %v2931_v55 = vld [vmem:[%s7844_s5 + $0x48] sm:$0xff] }
 0x56b   : > { %3998 = vmatpush1.bf16.msra.mxu0 %v8120_v50  ;;  %v2935_v50 = vld [vmem:[%s7844_s5 + $0x68] sm:$0xff] }
 0x56c   : > { %3999 = vmatprep.subr.bf16.mxu0 %v8121_v3  ;;  %v4380_v3 = vcombine.high %v2931_v55, %v2935_v50 }
 0x56e   : > { %3142 = vmatprep.mubr.bf16.mxu1 %v4380_v3 }
 0x56f   : > { %4000 = vmatpush1.bf16.msra.mxu0 %v8122_v59  ;;  %v4379_v59 = vcombine.low %v2931_v55, %v2935_v50 }
 0x570   : > { %4001 = vmatprep.subr.bf16.mxu0 %v8123_v44 }
 0x571   : > { %3143 = vmatmul.mubr.bf16.gmra.mrb[28].mxu1 %v4379_v59 }
 0x573   : > { %4002 = vmatpush1.bf16.msra.mxu0 %v8124_v19 }
 0x574   : > { %4003 = vmatprep.subr.bf16.mxu0 %v8125_v57  ;;  %v6902_v57 = vld [vmem:[%s8077_s18 + $0x8] sm:$0xff] }
 0x577   : > { %4004 = vmatpush1.bf16.msra.mxu0 %v8126_v35  ;;  %v6908_v35 = vrot.slane %v6902_v57, %v6713_v11 }
 0x578   : > { %4005 = vmatprep.subr.bf16.mxu0 %v8127_v47 }
 0x57b   : > { %4006 = vmatpush1.bf16.msra.mxu0 %v8128_v32  ;;  %v6915_v32 = vld [vmem:[%s7844_s5 + $0x10] sm:$0xff] }
 0x57c   : > { %4007 = vmatprep.subr.bf16.mxu0 %v8129_v8  ;;  %v6920_v8 = vld [vmem:[%s7844_s5 + $0x30] sm:$0xff] }
 0x57f   : > { %4008 = vmatpush1.bf16.msra.mxu0 %v8130_v60  ;;  %v4374_v60 = vcombine.high %v6915_v32, %v6920_v8 }
 0x580   : > { %4009 = vmatprep.subr.bf16.mxu0 %v6366_v9  ;;  %v2112_v9 = vpop.permute.xlu0 %2111 }
 0x581   : > { %3185 = vmatprep.mubr.bf16.mxu1 %v4374_v60 }
 0x583   : > { %4010 = vmatpush1.bf16.msra.mxu0 %v6368_v63  ;;  %v2107_v63 = vpop.permute.xlu1 %2106 }
 0x584   : > { %4011 = vmatprep.subr.bf16.mxu0 %v6375_v27  ;;  %v8131_v27 = vld [vmem:[#allocation70_spill] sm:$0xff] }
 0x587   : > { %4012 = vmatpush1.bf16.msra.mxu0 %v6390_v4  ;;  %v2224_v4 = vadd.f32 %v8131_v27, %v2107_v63  ;;  %v2500_v27 = vld [vmem:[#allocation6 + $0x2] ss:$8 sm:$0x3] }
 0x588   : > { %4013 = vmatprep.subr.bf16.mxu0 %v6408_v2 }
 0x58b   : > { %4014 = vmatpush1.bf16.msra.mxu0 %v6410_v54  ;;  %v8132_v54 = vld [vmem:[#allocation71_spill] sm:$0xff] }
 0x58c   : > { %4015 = vmatprep.subr.bf16.mxu0 %v6415_v31  ;;  %v2226_v31 = vadd.f32 %v8132_v54, %v2107_v63  ;;  %v3913_v63 = vcombine.high %v6908_v35, %v6908_v35 }
 0x58f   : > { %4016 = vmatpush1.bf16.msra.mxu0 %v6446_v10 }
 0x590   : > { %4026 = vmatprep.subr.bf16.mxu0 %v6460_v36  ;;  %v8133_v36 = vld [vmem:[#allocation72_spill] sm:$0xff] }
 0x592   : > { %4018 = vmatmul.mubr.bf16.vlgmr.msra.gmra.mrb[8].mxu0 %v3895_v34 }
 0x593   : > { %4027 = vmatpush1.bf16.msra.mxu0 %v6456_v61  ;;  %4058 = vmatprep.mubr.bf16.mxu0 %v3913_v63  ;;  %v2448_v63 = vld [vmem:[#allocation6 + $0x1] ss:$8 sm:$0x3] }
 0x594   : > { %4028 = vmatprep.subr.bf16.mxu0 %v6475_v0  ;;  %v2228_v0 = vadd.f32 %v8133_v36, %v2112_v9  ;;  %v2938_v36 = vld [vmem:[%s8141_s11] sm:$0xff] }
 0x597   : > { %4029 = vmatpush1.bf16.msra.mxu0 %v6479_v58 }
 0x598   : > { %4030 = vmatprep.subr.bf16.mxu0 %v6497_v56  ;;  %v8134_v56 = vld [vmem:[#allocation73_spill] sm:$0xff] }
 0x59b   : > { %4031 = vmatpush1.bf16.msra.mxu0 %v6491_v29 }
 0x59c   : > { %4032 = vmatprep.subr.bf16.mxu0 %v6505_v51  ;;  %v2230_v51 = vadd.f32 %v8134_v56, %v2112_v9  ;;  %v2940_v56 = vld [vmem:[%s8141_s11 + $0x10] sm:$0xff] }
 0x59f   : > { %4033 = vmatpush1.bf16.msra.mxu0 %v6531_v23 }
 0x5a0   : > { %4034 = vmatprep.subr.bf16.mxu0 %v6540_v22 }
 0x5a3   : > { %4035 = vmatpush1.bf16.msra.mxu0 %v6551_v33 }
 0x5a4   : > { %4036 = vmatprep.subr.bf16.mxu0 %v6562_v48  ;;  %v2117_v48 = vpop.permute.xlu1 %2116 }
 0x5a7   : > { %4037 = vmatpush1.bf16.msra.mxu0 %v6564_v38 }
 0x5a8   : > { %4038 = vmatprep.subr.bf16.mxu0 %v6598_v26 }
 0x5ab   : > { %4039 = vmatpush1.bf16.msra.mxu0 %v6592_v25 }
 0x5ac   : > { %4040 = vmatprep.subr.bf16.mxu0 %v6612_v18  ;;  %v2122_v18 = vpop.permute.xlu0 %2121 }
 0x5ad   : > { %v2240_v46 = vadd.f32 %v8139_v45, %v2122_v18 }
 0x5af   : > { %4041 = vmatpush1.bf16.msra.mxu0 %v6614_v30 }
 0x5b0   : > { %4042 = vmatprep.subr.bf16.mxu0 %v6644_v21 }
 0x5b3   : > { %4043 = vmatpush1.bf16.msra.mxu0 %v6640_v12  ;;  %v8135_v12 = vld [vmem:[#allocation74_spill] sm:$0xff] }
 0x5b4   : > { %4044 = vmatprep.subr.bf16.mxu0 %v6653_v39  ;;  %v2234_v21 = vadd.f32 %v8135_v12, %v2117_v48 }
 0x5b7   : > { %4045 = vmatpush1.bf16.msra.mxu0 %v6655_v28  ;;  %v8136_v28 = vld [vmem:[#allocation75_spill] sm:$0xff] }
 0x5b8   : > { %4046 = vmatprep.subr.bf16.mxu0 %v6682_v14 }
 0x5bb   : > { %4047 = vmatpush1.bf16.msra.mxu0 %v6678_v7  ;;  %v2236_v7 = vadd.f32 %v8136_v28, %v2117_v48 }
 0x5bc   : > { %4048 = vmatprep.subr.bf16.mxu0 %v6690_v20 }
 0x5bf   : > { %4049 = vmatpush1.bf16.msra.mxu0 %v6694_v62  ;;  %v8137_v62 = vld [vmem:[#allocation76_spill] sm:$0xff] }
 0x5c0   : > { %4050 = vmatprep.subr.bf16.mxu0 %v6706_v41 }
 0x5c3   : > { %4051 = vmatpush1.bf16.msra.mxu0 %v6702_v5  ;;  %v2238_v5 = vadd.f32 %v8137_v62, %v2122_v18 }
 0x5e5   : > { %v2329_v2 = vpop.f32.mrb[0].mxu0 }
 0x5e6   : > { %v4434_v10 = vadd.f32 %v2329_v2, %v2224_v4  ;;  %v2331_v61 = vpop.f32.mrb[1].mxu0 }
 0x5e7   : > { %v4436_v58 = vadd.f32 %v2331_v61, %v2226_v31  ;;  %v2333_v29 = vpop.f32.mrb[2].mxu0 }
 0x5e8   : > { %vm2348_vm8 = vcmp.ge.f32.partialorder %v4434_v10, 0.0  ;;  %v2356_v23 = vmul.f32 0.2, %v4434_v10  ;;  %v4438_v22 = vadd.f32 %v2333_v29, %v2228_v0  ;;  %v2335_v33 = vpop.f32.mrb[3].mxu0 }
 0x5e9   : > { %v4440_v38 = vadd.f32 %v2335_v33, %v2230_v51  ;;  %v2357_v1 = vmul.f32 0.2, %v4436_v58  ;;  %vm2349_vm13 = vcmp.ge.f32.partialorder %v4436_v58, 0.0 }
 0x5ea   : > { %v6819_v25 = vsel %vm2348_vm8, %v4434_v10, %v2356_v23  ;;  %vm2350_vm12 = vcmp.ge.f32.partialorder %v4438_v22, 0.0  ;;  %v2358_v26 = vmul.f32 0.2, %v4438_v22  ;;  %v2396_v23 = vld [vmem:[#allocation6] ss:$8 sm:$0x3] }
 0x5eb   : > { %2372 = vrot.lane.b32.xlu1 %v6819_v25, %s7959_s28  ;;  %v2359_v6 = vmul.f32 0.2, %v4440_v38  ;;  %vm2351_vm14 = vcmp.ge.f32.partialorder %v4440_v38, 0.0  ;;  %v6847_v13 = vsel %vm2349_vm13, %v4436_v58, %v2357_v1  ;;  %v2939_v58 = vld [vmem:[%s8141_s11 + $0x8] sm:$0xff]  ;;  %v2401_v48 = vrot.slane %v2396_v23, %v5271_v15 }
 0x5ec   : > { %v6823_v30 = vsel %vm2350_vm12, %v4438_v22, %v2358_v26  ;;  %v2941_v22 = vld [vmem:[%s8141_s11 + $0x18] sm:$0xff]  ;;  %vm3040_vm12 = vcmask 916480  }
 0x5ed   : > { %v2339_v39 = vpop.f32.mrb[4].mxu0  ;;  %2374 = vrot.lane.b32.xlu0 %v6823_v30, %s7959_s28  ;;  %v6851_v53 = vsel %vm2351_vm14, %v4440_v38, %v2359_v6  ;;  %v2405_v38 = vrot.slane %v2396_v23, %v5274_v16 }
 0x5ee   : > { %v4442_v14 = vadd.f32 %v2339_v39, %v2234_v21  ;;  %v2341_v20 = vpop.f32.mrb[5].mxu0 }
 0x5ef   : > { %v4444_v41 = vadd.f32 %v2341_v20, %v2236_v7  ;;  %v2343_v34 = vpop.f32.mrb[6].mxu0  ;;  %2424 = vrot.lane.b32.xlu1 %v6819_v25, %s8138_s6 }
 0x5f0   : > { %v4446_v49 = vadd.f32 %v2343_v34, %v2238_v5  ;;  %v2345_v24 = vpop.f32.mrb[7].mxu0  ;;  %v2360_v43 = vmul.f32 0.2, %v4442_v14  ;;  %vm2352_vm15 = vcmp.ge.f32.partialorder %v4442_v14, 0.0 }
 0x5f1   : > { %v4448_v42 = vadd.f32 %v2345_v24, %v2240_v46  ;;  %2426 = vrot.lane.b32.xlu0 %v6823_v30, %s8138_s6  ;;  %v2361_v44 = vmul.f32 0.2, %v4444_v41  ;;  %vm2353_vm7 = vcmp.ge.f32.partialorder %v4444_v41, 0.0 }
 0x5f2   : > { %v2362_v37 = vmul.f32 0.2, %v4446_v49  ;;  %vm2354_vm0 = vcmp.ge.f32.partialorder %v4446_v49, 0.0  ;;  %v6871_v52 = vsel %vm2352_vm15, %v4442_v14, %v2360_v43 }
 0x5f3   : > { %2476 = vrot.lane.b32.xlu1 %v6819_v25, %s8063_s26  ;;  %v2363_v19 = vmul.f32 0.2, %v4448_v42  ;;  %vm2355_vm8 = vcmp.ge.f32.partialorder %v4448_v42, 0.0  ;;  %v6910_v47 = vsel %vm2353_vm7, %v4444_v41, %v2361_v44 }
 0x5f4   : > { %v6875_v40 = vsel %vm2354_vm0, %v4446_v49, %v2362_v37 }
 0x5f5   : > { %2478 = vrot.lane.b32.xlu0 %v6823_v30, %s8063_s26  ;;  %v6928_v9 = vsel %vm2355_vm8, %v4448_v42, %v2363_v19 }
 0x5f7   : > { %2528 = vrot.lane.b32.xlu1 %v6819_v25, %s8064_s30 }
 0x5f9   : > { %2530 = vrot.lane.b32.xlu0 %v6823_v30, %s8064_s30 }
 0x5fb   : > { %2588 = vrot.lane.b32.xlu1 %v6819_v25, %s8008_s17 }
 0x5fd   : > { %2590 = vrot.lane.b32.xlu0 %v6823_v30, %s8008_s17 }
 0x5ff   : > { %2380 = vrot.lane.b32.xlu1 %v6847_v13, %s7959_s28 }
 0x601   : > { %2382 = vrot.lane.b32.xlu0 %v6851_v53, %s7959_s28 }
 0x603   : > { %2432 = vrot.lane.b32.xlu1 %v6847_v13, %s8138_s6 }
 0x605   : > { %2434 = vrot.lane.b32.xlu0 %v6851_v53, %s8138_s6 }
 0x607   : > { %2484 = vrot.lane.b32.xlu1 %v6847_v13, %s8063_s26 }
 0x609   : > { %2486 = vrot.lane.b32.xlu0 %v6851_v53, %s8063_s26 }
 0x60b   : > { %2536 = vrot.lane.b32.xlu1 %v6847_v13, %s8064_s30 }
 0x60d   : > { %2538 = vrot.lane.b32.xlu0 %v6851_v53, %s8064_s30 }
 0x60f   : > { %2596 = vrot.lane.b32.xlu1 %v6847_v13, %s8008_s17 }
 0x611   : > { %2598 = vrot.lane.b32.xlu0 %v6851_v53, %s8008_s17 }
 0x613   : > { %2376 = vrot.lane.b32.xlu1 %v6871_v52, %s7959_s28 }
 0x615   : > { %2378 = vrot.lane.b32.xlu0 %v6875_v40, %s7959_s28 }
 0x617   : > { %2428 = vrot.lane.b32.xlu1 %v6871_v52, %s8138_s6 }
 0x619   : > { %2430 = vrot.lane.b32.xlu0 %v6875_v40, %s8138_s6 }
 0x61b   : > { %2480 = vrot.lane.b32.xlu1 %v6871_v52, %s8063_s26 }
 0x61d   : > { %2482 = vrot.lane.b32.xlu0 %v6875_v40, %s8063_s26 }
 0x61f   : > { %2532 = vrot.lane.b32.xlu1 %v6871_v52, %s8064_s30 }
 0x621   : > { %2534 = vrot.lane.b32.xlu0 %v6875_v40, %s8064_s30 }
 0x623   : > { %2592 = vrot.lane.b32.xlu1 %v6871_v52, %s8008_s17 }
 0x625   : > { %2594 = vrot.lane.b32.xlu0 %v6875_v40, %s8008_s17 }
 0x627   : > { %2384 = vrot.lane.b32.xlu1 %v6910_v47, %s8140_s15 }
 0x629   : > { %2386 = vrot.lane.b32.xlu0 %v6928_v9, %s8140_s15 }
 0x62b   : > { %2640 = vrot.lane.b32.xlu1 %v6819_v25, %s8009_s12 }
 0x62d   : > { %2642 = vrot.lane.b32.xlu0 %v6823_v30, %s8009_s12 }
 0x62f   : > { %2436 = vrot.lane.b32.xlu1 %v6910_v47, %s8138_s6 }
 0x631   : > { %2438 = vrot.lane.b32.xlu0 %v6928_v9, %s8138_s6 }
 0x633   : > { %2488 = vrot.lane.b32.xlu1 %v6910_v47, %s8063_s26 }
 0x635   : > { %2650 = vrot.lane.b32.xlu0 %v6851_v53, %s8009_s12 }
 0x637   : > { %2540 = vrot.lane.b32.xlu1 %v6910_v47, %s8064_s30 }
 0x639   : > { %2490 = vrot.lane.b32.xlu0 %v6928_v9, %s8063_s26 }
 0x63b   : > { %2600 = vrot.lane.b32.xlu1 %v6910_v47, %s8008_s17 }
 0x63d   : > { %2646 = vrot.lane.b32.xlu0 %v6875_v40, %s8009_s12 }
 0x63f   : > { %2648 = vrot.lane.b32.xlu1 %v6847_v13, %s8009_s12 }
 0x641   : > { %2542 = vrot.lane.b32.xlu0 %v6928_v9, %s8064_s30 }
 0x643   : > { %2644 = vrot.lane.b32.xlu1 %v6871_v52, %s8009_s12 }
 0x645   : > { %2694 = vrot.lane.b32.xlu0 %v6823_v30, %s8010_s19 }
 0x647   : > { %2652 = vrot.lane.b32.xlu1 %v6910_v47, %s8009_s12 }
 0x649   : > { %2702 = vrot.lane.b32.xlu0 %v6851_v53, %s8010_s19 }
 0x64b   : > { %2692 = vrot.lane.b32.xlu1 %v6819_v25, %s8010_s19 }
 0x64d   : > { %2698 = vrot.lane.b32.xlu0 %v6875_v40, %s8010_s19 }
 0x64f   : > { %2700 = vrot.lane.b32.xlu1 %v6847_v13, %s8010_s19 }
 0x651   : > { %2602 = vrot.lane.b32.xlu0 %v6928_v9, %s8008_s17 }
 0x653   : > { %2696 = vrot.lane.b32.xlu1 %v6871_v52, %s8010_s19 }
 0x655   : > { %2746 = vrot.lane.b32.xlu0 %v6823_v30, %s8011_s29 }
 0x657   : > { %2704 = vrot.lane.b32.xlu1 %v6910_v47, %s8010_s19 }
 0x659   : > { %2654 = vrot.lane.b32.xlu0 %v6928_v9, %s8009_s12 }
 0x65b   : > { %2744 = vrot.lane.b32.xlu1 %v6819_v25, %s8011_s29 }
 0x65d   : > { %v2373_v4 = vpop.permute.xlu1 %2372  ;;  %2754 = vrot.lane.b32.xlu0 %v6851_v53, %s8011_s29 }
 0x65f   : > { %2752 = vrot.lane.b32.xlu1 %v6847_v13, %s8011_s29  ;;  %v2375_v2 = vpop.permute.xlu0 %2374 }
 0x661   : > { %v6988_v54 = vpop.permute.xlu1 %2424  ;;  %2706 = vrot.lane.b32.xlu0 %v6928_v9, %s8010_s19 }
 0x663   : > { %2748 = vrot.lane.b32.xlu1 %v6871_v52, %s8011_s29  ;;  %v6994_v31 = vpop.permute.xlu0 %2426 }
 0x665   : > { %v6996_v10 = vpop.permute.xlu1 %2476  ;;  %2750 = vrot.lane.b32.xlu0 %v6875_v40, %s8011_s29 }
 0x667   : > { %2756 = vrot.lane.b32.xlu1 %v6910_v47, %s8011_s29  ;;  %v7002_v61 = vpop.permute.xlu0 %2478 }
 0x669   : > { %v7007_v0 = vpop.permute.xlu1 %2528  ;;  %2758 = vrot.lane.b32.xlu0 %v6928_v9, %s8011_s29 }
 0x66b   : > { %2944 = vperm.xlu1 %4625, %v2938_v36   ;;  %v7014_v29 = vpop.permute.xlu0 %2530 }
 0x66d   : > { %v7019_v51 = vpop.permute.xlu1 %2588  ;;  %2949 = vperm.xlu0 %4624, %v2939_v58   ;;  %v2457_v58 = vrot.slane %v2448_v63, %v5274_v16 }
 0x66f   : > { %2954 = vperm.xlu1 %4625, %v2940_v56   ;;  %v7024_v33 = vpop.permute.xlu0 %2590 }
 0x671   : > { %v2381_v26 = vpop.permute.xlu1 %2380  ;;  %2959 = vperm.xlu0 %4624, %v2941_v22  }
 0x672   : > { %v2388_v18 = vsel %vm504_vm2, %v2373_v4, %v2381_v26  ;;  %v2392_v12 = vsel %vm504_vm2, %v2381_v26, %v2373_v4 }
 0x673   : > { %v2383_v21 = vpop.permute.xlu0 %2382  ;;  %v2408_v7 = vmul.f32 %v2401_v48, %v2392_v12  ;;  %v2409_v14 = vmul.f32 %v2405_v38, %v2388_v18 }
 0x674   : > { %v2389_v39 = vsel %vm504_vm2, %v2375_v2, %v2383_v21  ;;  %v2393_v28 = vsel %vm504_vm2, %v2383_v21, %v2375_v2 }
 0x675   : > { %v2410_v20 = vmul.f32 %v2401_v48, %v2393_v28  ;;  %v2411_v62 = vmul.f32 %v2405_v38, %v2389_v39  ;;  %v2433_v5 = vpop.permute.xlu1 %2432 }
 0x676   : > { %v2440_v22 = vsel %vm533_vm3, %v6988_v54, %v2433_v5 }
 0x677   : > { %v2416_v41 = vpack.c.bf16 %v2410_v20, %v2408_v7  ;;  %v2435_v34 = vpop.permute.xlu0 %2434  ;;  %v2417_v45 = vpack.c.bf16 %v2411_v62, %v2409_v14 }
 0x678   : > { %v2441_v2 = vsel %vm533_vm3, %v6994_v31, %v2435_v34  ;;  %v2445_v18 = vsel %vm533_vm3, %v2435_v34, %v6994_v31  ;;  %v2461_v31 = vmul.f32 %v2457_v58, %v2440_v22 }
 0x679   : > { %v7036_v46 = vpop.permute.xlu1 %2484  ;;  %3179 = vmatprep.subr.bf16.mxu1 %v2417_v45  ;;  %4052 = vmatprep.subr.bf16.mxu0 %v2417_v45  ;;  %v2463_v12 = vmul.f32 %v2457_v58, %v2441_v2  ;;  %v2444_v45 = vsel %vm533_vm3, %v2433_v5, %v6988_v54  ;;  %v2509_v54 = vrot.slane %v2500_v27, %v5274_v16 }
 0x67a   : > { %3180 = vmatpush1.bf16.msra.mxu1 %v2416_v41  ;;  %4053 = vmatpush1.bf16.msra.mxu0 %v2416_v41  ;;  %v2453_v41 = vrot.slane %v2448_v63, %v5271_v15  ;;  %v2492_v5 = vsel %vm563_vm4, %v6996_v10, %v7036_v46 }
 0x67b   : > { %v2487_v49 = vpop.permute.xlu0 %2486 }
 0x67d   : > { %v7038_v24 = vpop.permute.xlu1 %2536 }
 0x67f   : > { %v7040_v42 = vpop.permute.xlu0 %2538 }
 0x681   : > { %v7042_v1 = vpop.permute.xlu1 %2596 }
 0x683   : > { %v7044_v6 = vpop.permute.xlu0 %2598 }
 0x685   : > { %v2377_v43 = vpop.permute.xlu1 %2376 }
 0x687   : > { %v2379_v37 = vpop.permute.xlu0 %2378 }
 0x689   : > { %v2429_v55 = vpop.permute.xlu1 %2428 }
 0x68b   : > { %v2431_v50 = vpop.permute.xlu0 %2430 }
 0x68d   : > { %v7046_v3 = vpop.permute.xlu1 %2480 }
 0x68f   : > { %v7048_v59 = vpop.permute.xlu0 %2482 }
 0x691   : > { %v7050_v44 = vpop.permute.xlu1 %2532 }
 0x693   : > { %v7052_v19 = vpop.permute.xlu0 %2534 }
 0x695   : > { %v7054_v60 = vpop.permute.xlu1 %2592 }
 0x697   : > { %v7056_v4 = vpop.permute.xlu0 %2594 }
 0x699   : > { %v2385_v36 = vpop.permute.xlu1 %2384 }
 0x69a   : > { %v2390_v56 = vsel %vm504_vm2, %v2377_v43, %v2385_v36  ;;  %v2394_v23 = vsel %vm504_vm2, %v2385_v36, %v2377_v43  ;;  %v2462_v36 = vmul.f32 %v2453_v41, %v2445_v18 }
 0x69b   : > { %v2387_v26 = vpop.permute.xlu0 %2386  ;;  %v2412_v28 = vmul.f32 %v2401_v48, %v2394_v23  ;;  %v2413_v7 = vmul.f32 %v2405_v38, %v2390_v56  ;;  %v2493_v23 = vsel %vm563_vm4, %v7002_v61, %v2487_v49 }
 0x69c   : > { %v2391_v21 = vsel %vm504_vm2, %v2379_v37, %v2387_v26  ;;  %v2395_v39 = vsel %vm504_vm2, %v2387_v26, %v2379_v37 }
 0x69d   : > { %v2414_v14 = vmul.f32 %v2401_v48, %v2395_v39  ;;  %v2415_v20 = vmul.f32 %v2405_v38, %v2391_v21  ;;  %v7076_v62 = vpop.permute.xlu1 %2640  ;;  %v2469_v48 = vpack.c.bf16 %v2463_v12, %v2461_v31  ;;  %v2460_v38 = vmul.f32 %v2453_v41, %v2444_v45  ;;  %v2552_v31 = vld [vmem:[#allocation6 + $0x3] ss:$8 sm:$0x3] }
 0x69e   : > { %v2515_v45 = vmul.f32 %v2509_v54, %v2493_v23  ;;  %v2545_v23 = vsel %vm593_vm5, %v7014_v29, %v7040_v42 }
 0x69f   : > { %v2418_v34 = vpack.c.bf16 %v2414_v14, %v2412_v28  ;;  %v7082_v43 = vpop.permute.xlu0 %2642  ;;  %v2419_v2 = vpack.c.bf16 %v2415_v20, %v2413_v7  ;;  %v2468_v26 = vpack.c.bf16 %v2462_v36, %v2460_v38  ;;  %v2505_v20 = vrot.slane %v2500_v27, %v5271_v15 }
 0x6a0   : > { %v2557_v36 = vrot.slane %v2552_v31, %v5271_v15 }
 0x6a1   : > { %v2437_v37 = vpop.permute.xlu1 %2436  ;;  %3181 = vmatprep.subr.bf16.mxu1 %v2419_v2  ;;  %4054 = vmatprep.subr.bf16.mxu0 %v2419_v2 }
 0x6a2   : > { %v2442_v56 = vsel %vm533_vm3, %v2429_v55, %v2437_v37  ;;  %v2446_v63 = vsel %vm533_vm3, %v2437_v37, %v2429_v55  ;;  %3182 = vmatpush1.bf16.msra.mxu1 %v2418_v34  ;;  %4055 = vmatpush1.bf16.msra.mxu0 %v2418_v34  ;;  %v2497_v55 = vsel %vm563_vm4, %v2487_v49, %v7002_v61  ;;  %v7107_v61 = vld [vmem:[%s7844_s5 + $0x50] sm:$0xff] }
 0x6a3   : > { %3183 = vmatprep.subr.bf16.mxu1 %v2469_v48  ;;  %4056 = vmatprep.subr.bf16.mxu0 %v2469_v48  ;;  %v2439_v22 = vpop.permute.xlu0 %2438  ;;  %v2464_v21 = vmul.f32 %v2453_v41, %v2446_v63  ;;  %v2465_v39 = vmul.f32 %v2457_v58, %v2442_v56  ;;  %v7112_v49 = vld [vmem:[%s7844_s5 + $0x70] sm:$0xff]  ;;  %v2513_v34 = vmul.f32 %v2509_v54, %v2492_v5 }
 0x6a4   : > { %v2443_v18 = vsel %vm533_vm3, %v2431_v50, %v2439_v22  ;;  %v2447_v12 = vsel %vm533_vm3, %v2439_v22, %v2431_v50  ;;  %v2496_v50 = vsel %vm563_vm4, %v7036_v46, %v6996_v10  ;;  %v2514_v2 = vmul.f32 %v2505_v20, %v2497_v55 }
 0x6a5   : > { %v2466_v28 = vmul.f32 %v2453_v41, %v2447_v12  ;;  %v2467_v7 = vmul.f32 %v2457_v58, %v2443_v18  ;;  %v2489_v14 = vpop.permute.xlu1 %2488  ;;  %v2561_v37 = vrot.slane %v2552_v31, %v5274_v16  ;;  %v4382_v38 = vcombine.high %v7107_v61, %v7112_v49 }
 0x6a6   : > { %3184 = vmatpush1.bf16.msra.mxu1 %v2468_v26  ;;  %4057 = vmatpush1.bf16.msra.mxu0 %v2468_v26  ;;  %v2512_v56 = vmul.f32 %v2505_v20, %v2496_v50  ;;  %v2498_v10 = vsel %vm563_vm4, %v2489_v14, %v7046_v3  ;;  %v8142_v46 = vcombine.low %v6915_v32, %v6920_v8 }
 0x6a7   : > { %v2470_v27 = vpack.c.bf16 %v2466_v28, %v2464_v21  ;;  %v7118_v58 = vpop.permute.xlu0 %2650  ;;  %v2471_v41 = vpack.c.bf16 %v2467_v7, %v2465_v39  ;;  %v2521_v63 = vpack.c.bf16 %v2515_v45, %v2513_v34  ;;  %v2544_v5 = vsel %vm593_vm5, %v7007_v0, %v7038_v24 }
 0x6a8   : > { %v2494_v22 = vsel %vm563_vm4, %v7046_v3, %v2489_v14  ;;  %v2520_v8 = vpack.c.bf16 %v2514_v2, %v2512_v56  ;;  %v2549_v55 = vsel %vm593_vm5, %v7040_v42, %v7014_v29  ;;  %v2516_v3 = vmul.f32 %v2505_v20, %v2498_v10  ;;  %v7166_v29 = vld [vmem:[%s7844_s5 + $0x38] sm:$0xff] }
 0x6a9   : > { %v2541_v48 = vpop.permute.xlu1 %2540  ;;  %3206 = vmatprep.subr.bf16.mxu1 %v2471_v41  ;;  %4067 = vmatprep.subr.bf16.mxu0 %v2471_v41  ;;  %v2548_v39 = vsel %vm593_vm5, %v7038_v24, %v7007_v0  ;;  %v2567_v28 = vmul.f32 %v2561_v37, %v2545_v23  ;;  %v2517_v7 = vmul.f32 %v2509_v54, %v2494_v22  ;;  %v2612_v22 = vld [vmem:[#allocation6 + $0x5] ss:$8 sm:$0x3] }
 0x6aa   : > { %3186 = vmatmul.mubr.bf16.vlgmr.msra.gmra.mrb[24].mxu1 %v8142_v46  ;;  %4059 = vmatmul.mubr.bf16.vlgmr.msra.gmra.mrb[8].mxu0 %v6908_v35  ;;  %v2566_v45 = vmul.f32 %v2557_v36, %v2549_v55  ;;  %v2564_v24 = vmul.f32 %v2557_v36, %v2548_v39  ;;  %v4381_v31 = vcombine.low %v7107_v61, %v7112_v49 }
 0x6ab   : > { %3207 = vmatpush1.bf16.msra.mxu1 %v2470_v27  ;;  %4068 = vmatpush1.bf16.msra.mxu0 %v2470_v27  ;;  %v2491_v32 = vpop.permute.xlu0 %2490  ;;  %v2546_v27 = vsel %vm593_vm5, %v7050_v44, %v2541_v48  ;;  %v2550_v41 = vsel %vm593_vm5, %v2541_v48, %v7050_v44  ;;  %v2580_v55 = vpack.c.bf16 %v6823_v30, %v6819_v25 }
 0x6ac   : > { %3208 = vmatprep.subr.bf16.mxu1 %v2521_v63  ;;  %4069 = vmatprep.subr.bf16.mxu0 %v2521_v63  ;;  %v2495_v35 = vsel %vm563_vm4, %v7048_v59, %v2491_v32  ;;  %v2499_v26 = vsel %vm563_vm4, %v2491_v32, %v7048_v59  ;;  %v7161_v59 = vld [vmem:[%s7844_s5 + $0x18] sm:$0xff]  ;;  %v2568_v56 = vmul.f32 %v2557_v36, %v2550_v41 }
 0x6ad   : > { %v2518_v18 = vmul.f32 %v2505_v20, %v2499_v26  ;;  %v2519_v12 = vmul.f32 %v2509_v54, %v2495_v35  ;;  %v7152_v21 = vpop.permute.xlu1 %2600  ;;  %3195 = vmatprep.mubr.bf16.mxu1 %v4382_v38  ;;  %v2565_v20 = vmul.f32 %v2561_v37, %v2544_v5  ;;  %v4376_v50 = vcombine.high %v7161_v59, %v7166_v29 }
 0x6ae   : > { %v2572_v38 = vpack.c.bf16 %v2566_v45, %v2564_v24  ;;  %v2569_v44 = vmul.f32 %v2561_v37, %v2546_v27  ;;  %v2605_v35 = vsel %vm627_vm6, %v7024_v33, %v7044_v6  ;;  %v2661_v45 = vsel %vm657_vm9, %v7118_v58, %v7082_v43 }
 0x6af   : > { %v2522_v42 = vpack.c.bf16 %v2518_v18, %v2516_v3  ;;  %3209 = vmatpush1.bf16.msra.mxu1 %v2520_v8  ;;  %4070 = vmatpush1.bf16.msra.mxu0 %v2520_v8  ;;  %v7168_v14 = vpop.permute.xlu0 %2646  ;;  %v2523_v0 = vpack.c.bf16 %v2519_v12, %v2517_v7  ;;  %v2573_v34 = vpack.c.bf16 %v2567_v28, %v2565_v20 }
 0x6b0   : > { %v2621_v8 = vrot.slane %v2612_v22, %v5274_v16  ;;  %v2604_v3 = vsel %vm627_vm6, %v7019_v51, %v7042_v1  ;;  %v2583_v18 = vpack.c.bf16 %v6928_v9, %v6910_v47  ;;  %v2606_v47 = vsel %vm627_vm6, %v7054_v60, %v7152_v21 }
 0x6b1   : > { %v7170_v54 = vpop.permute.xlu1 %2648  ;;  %3210 = vmatprep.subr.bf16.mxu1 %v2523_v0  ;;  %4071 = vmatprep.subr.bf16.mxu0 %v2523_v0  ;;  %v2610_v9 = vsel %vm627_vm6, %v7152_v21, %v7054_v60 }
 0x6b2   : > { %3196 = vmatmul.mubr.bf16.gmra.mrb[28].mxu1 %v4381_v31  ;;  %v2656_v60 = vsel %vm657_vm9, %v7076_v62, %v7170_v54  ;;  %v2629_v31 = vmul.f32 %v2621_v8, %v2610_v9 }
 0x6b3   : > { %3211 = vmatpush1.bf16.msra.mxu1 %v2522_v42  ;;  %4072 = vmatpush1.bf16.msra.mxu0 %v2522_v42  ;;  %v2543_v2 = vpop.permute.xlu0 %2542 }
 0x6b4   : > { %3212 = vmatprep.subr.bf16.mxu1 %v2573_v34  ;;  %4073 = vmatprep.subr.bf16.mxu0 %v2573_v34  ;;  %v2547_v61 = vsel %vm593_vm5, %v7052_v19, %v2543_v2  ;;  %v2551_v49 = vsel %vm593_vm5, %v2543_v2, %v7052_v19  ;;  %v2581_v19 = vpack.c.bf16 %v6851_v53, %v6847_v13  ;;  %v2716_v2 = vld [vmem:[#allocation6 + $0x7] ss:$8 sm:$0x3] }
 0x6b5   : > { %v2570_v48 = vmul.f32 %v2557_v36, %v2551_v49  ;;  %v2571_v10 = vmul.f32 %v2561_v37, %v2547_v61  ;;  %v7188_v46 = vpop.permute.xlu1 %2644  ;;  %4385 = vmatprep.mubr.msk.bf16.mxu1 %vm3040_vm12, %v4376_v50  ;;  %v2609_v36 = vsel %vm627_vm6, %v7044_v6, %v7024_v33  ;;  %v2617_v13 = vrot.slane %v2612_v22, %v5271_v15  ;;  %v2664_v6 = vld [vmem:[#allocation6 + $0x6] ss:$8 sm:$0x3] }
 0x6b6   : > { %v2608_v53 = vsel %vm627_vm6, %v7042_v1, %v7019_v51  ;;  %v2627_v33 = vmul.f32 %v2621_v8, %v2609_v36  ;;  %v2669_v25 = vrot.slane %v2664_v6, %v5271_v15  ;;  %v2582_v51 = vpack.c.bf16 %v6875_v40, %v6871_v52 }
 0x6b7   : > { %v2574_v63 = vpack.c.bf16 %v2570_v48, %v2568_v56  ;;  %3213 = vmatpush1.bf16.msra.mxu1 %v2572_v38  ;;  %4074 = vmatpush1.bf16.msra.mxu0 %v2572_v38  ;;  %v7191_v5 = vpop.permute.xlu0 %2694  ;;  %v2575_v23 = vpack.c.bf16 %v2571_v10, %v2569_v44  ;;  %v2626_v12 = vmul.f32 %v2617_v13, %v2605_v35 }
 0x6b8   : > { %v2625_v28 = vmul.f32 %v2621_v8, %v2608_v53  ;;  %v2624_v7 = vmul.f32 %v2617_v13, %v2604_v3  ;;  %v2673_v1 = vrot.slane %v2664_v6, %v5274_v16  ;;  %v2660_v52 = vsel %vm657_vm9, %v7170_v54, %v7076_v62 }
 0x6b9   : > { %v7193_v32 = vpop.permute.xlu1 %2652  ;;  %3214 = vmatprep.subr.bf16.mxu1 %v2575_v23  ;;  %4075 = vmatprep.subr.bf16.mxu0 %v2575_v23  ;;  %v2628_v24 = vmul.f32 %v2617_v13, %v2606_v47  ;;  %v2657_v62 = vsel %vm657_vm9, %v7082_v43, %v7118_v58  ;;  %v2676_v34 = vmul.f32 %v2669_v25, %v2656_v60 }
 0x6ba   : > { %v2633_v42 = vpack.c.bf16 %v2627_v33, %v2625_v28  ;;  %v2632_v20 = vpack.c.bf16 %v2626_v12, %v2624_v7  ;;  %v2677_v54 = vmul.f32 %v2673_v1, %v2660_v52  ;;  %v2658_v56 = vsel %vm657_vm9, %v7188_v46, %v7193_v32 }
 0x6bb   : > { %3215 = vmatpush1.bf16.msra.mxu1 %v2574_v63  ;;  %4076 = vmatpush1.bf16.msra.mxu0 %v2574_v63  ;;  %v7201_v37 = vpop.permute.xlu0 %2702  ;;  %v2678_v44 = vmul.f32 %v2669_v25, %v2657_v62  ;;  %v2662_v43 = vsel %vm657_vm9, %v7193_v32, %v7188_v46  ;;  %v2721_v58 = vrot.slane %v2716_v2, %v5271_v15 }
 0x6bc   : > { %3216 = vmatprep.subr.bf16.mxu1 %v2581_v19  ;;  %4077 = vmatprep.subr.bf16.mxu0 %v2581_v19  ;;  %v2725_v10 = vrot.slane %v2716_v2, %v5274_v16  ;;  %v2680_v22 = vmul.f32 %v2669_v25, %v2658_v56  ;;  %v2681_v35 = vmul.f32 %v2673_v1, %v2662_v43 }
 0x6bd   : > { %v7213_v26 = vpop.permute.xlu1 %2692  ;;  %v2684_v23 = vpack.c.bf16 %v2678_v44, %v2676_v34 }
 0x6bf   : > { %3217 = vmatpush1.bf16.msra.mxu1 %v2580_v55  ;;  %4078 = vmatpush1.bf16.msra.mxu0 %v2580_v55  ;;  %v7223_v39 = vpop.permute.xlu0 %2698 }
 0x6c0   : > { %3218 = vmatprep.subr.bf16.mxu1 %v2583_v18  ;;  %4079 = vmatprep.subr.bf16.mxu0 %v2583_v18 }
 0x6c1   : > { %v2701_v30 = vpop.permute.xlu1 %2700 }
 0x6c2   : > { %v2712_v19 = vsel %vm687_vm10, %v2701_v30, %v7213_v26 }
 0x6c3   : > { %3219 = vmatpush1.bf16.msra.mxu1 %v2582_v51  ;;  %4080 = vmatpush1.bf16.msra.mxu0 %v2582_v51  ;;  %v2603_v40 = vpop.permute.xlu0 %2602  ;;  %v2729_v33 = vmul.f32 %v2725_v10, %v2712_v19 }
 0x6c4   : > { %3220 = vmatprep.subr.bf16.mxu1 %v2633_v42  ;;  %4081 = vmatprep.subr.bf16.mxu0 %v2633_v42  ;;  %v2607_v21 = vsel %vm627_vm6, %v7056_v4, %v2603_v40  ;;  %v2611_v0 = vsel %vm627_vm6, %v2603_v40, %v7056_v4  ;;  %v2679_v4 = vmul.f32 %v2673_v1, %v2661_v45 }
 0x6c5   : > { %v2630_v50 = vmul.f32 %v2617_v13, %v2607_v21  ;;  %v2631_v27 = vmul.f32 %v2621_v8, %v2611_v0  ;;  %v2697_v41 = vpop.permute.xlu1 %2696  ;;  %v2708_v8 = vsel %vm687_vm10, %v7213_v26, %v2701_v30  ;;  %v2713_v13 = vsel %vm687_vm10, %v7201_v37, %v7191_v5 }
 0x6c6   : > { %v2685_v63 = vpack.c.bf16 %v2679_v4, %v2677_v54  ;;  %v2709_v26 = vsel %vm687_vm10, %v7191_v5, %v7201_v37  ;;  %v2728_v6 = vmul.f32 %v2721_v58, %v2708_v8  ;;  %v2731_v7 = vmul.f32 %v2725_v10, %v2713_v13  ;;  %v2933_v8 = vld [vmem:[%s7844_s5 + $0x58] sm:$0xff] }
 0x6c7   : > { %v2634_v38 = vpack.c.bf16 %v2630_v50, %v2628_v24  ;;  %3221 = vmatpush1.bf16.msra.mxu1 %v2632_v20  ;;  %4082 = vmatpush1.bf16.msra.mxu0 %v2632_v20  ;;  %v7259_v61 = vpop.permute.xlu0 %2746  ;;  %v2635_v49 = vpack.c.bf16 %v2631_v27, %v2629_v31 }
 0x6c8   : > { %v2737_v37 = vpack.c.bf16 %v2731_v7, %v2729_v33 }
 0x6c9   : > { %v2705_v48 = vpop.permute.xlu1 %2704  ;;  %3222 = vmatprep.subr.bf16.mxu1 %v2635_v49  ;;  %4083 = vmatprep.subr.bf16.mxu0 %v2635_v49 }
 0x6ca   : > { %v2710_v30 = vsel %vm687_vm10, %v2697_v41, %v2705_v48  ;;  %v2714_v51 = vsel %vm687_vm10, %v2705_v48, %v2697_v41 }
 0x6cb   : > { %3223 = vmatpush1.bf16.msra.mxu1 %v2634_v38  ;;  %4084 = vmatpush1.bf16.msra.mxu0 %v2634_v38  ;;  %v2655_v36 = vpop.permute.xlu0 %2654  ;;  %v2732_v9 = vmul.f32 %v2721_v58, %v2710_v30  ;;  %v2733_v45 = vmul.f32 %v2725_v10, %v2714_v51 }
 0x6cc   : > { %3224 = vmatprep.subr.bf16.mxu1 %v2685_v63  ;;  %4085 = vmatprep.subr.bf16.mxu0 %v2685_v63  ;;  %v2659_v46 = vsel %vm657_vm9, %v7168_v14, %v2655_v36  ;;  %v2663_v32 = vsel %vm657_vm9, %v2655_v36, %v7168_v14  ;;  %v2768_v14 = vld [vmem:[#allocation6 + $0x10] ss:$8 sm:$0x3] }
 0x6cd   : > { %v2682_v53 = vmul.f32 %v2669_v25, %v2659_v46  ;;  %v2683_v55 = vmul.f32 %v2673_v1, %v2663_v32  ;;  %v2745_v3 = vpop.permute.xlu1 %2744  ;;  %v2730_v25 = vmul.f32 %v2721_v58, %v2709_v26  ;;  %v2777_v5 = vrot.slane %v2768_v14, %v5274_v16  ;;  %v2937_v46 = vld [vmem:[%s7844_s5 + $0x78] sm:$0xff] }
 0x6ce   : > { %v2773_v50 = vrot.slane %v2768_v14, %v5271_v15  ;;  %v4375_v32 = vcombine.low %v7161_v59, %v7166_v29  ;;  %v4383_v13 = vcombine.low %v2933_v8, %v2937_v46 }
 0x6cf   : > { %v2686_v18 = vpack.c.bf16 %v2682_v53, %v2680_v22  ;;  %3225 = vmatpush1.bf16.msra.mxu1 %v2684_v23  ;;  %4086 = vmatpush1.bf16.msra.mxu0 %v2684_v23  ;;  %v2755_v12 = vpop.permute.xlu0 %2754  ;;  %v2687_v28 = vpack.c.bf16 %v2683_v55, %v2681_v35  ;;  %v2736_v47 = vpack.c.bf16 %v2730_v25, %v2728_v6 }
 0x6d0   : > { %v2765_v60 = vsel %vm717_vm11, %v2755_v12, %v7259_v61  ;;  %v2761_v41 = vsel %vm717_vm11, %v7259_v61, %v2755_v12  ;;  %v4384_v35 = vcombine.high %v2933_v8, %v2937_v46 }
 0x6d1   : > { %v2753_v1 = vpop.permute.xlu1 %2752  ;;  %3226 = vmatprep.subr.bf16.mxu1 %v2687_v28  ;;  %4087 = vmatprep.subr.bf16.mxu0 %v2687_v28  ;;  %v2783_v34 = vmul.f32 %v2777_v5, %v2765_v60  ;;  %v2782_v49 = vmul.f32 %v2773_v50, %v2761_v41 }
 0x6d2   : > { %v2764_v42 = vsel %vm717_vm11, %v2753_v1, %v2745_v3  ;;  %v2760_v21 = vsel %vm717_vm11, %v2745_v3, %v2753_v1 }
 0x6d3   : > { %3227 = vmatpush1.bf16.msra.mxu1 %v2686_v18  ;;  %4088 = vmatpush1.bf16.msra.mxu0 %v2686_v18  ;;  %v2707_v20 = vpop.permute.xlu0 %2706  ;;  %v2781_v27 = vmul.f32 %v2777_v5, %v2764_v42  ;;  %v2780_v2 = vmul.f32 %v2773_v50, %v2760_v21 }
 0x6d4   : > { %3228 = vmatprep.subr.bf16.mxu1 %v2737_v37  ;;  %4089 = vmatprep.subr.bf16.mxu0 %v2737_v37  ;;  %v2711_v52 = vsel %vm687_vm10, %v7223_v39, %v2707_v20  ;;  %v2715_v40 = vsel %vm687_vm10, %v2707_v20, %v7223_v39 }
 0x6d5   : > { %v2734_v0 = vmul.f32 %v2721_v58, %v2711_v52  ;;  %v2735_v24 = vmul.f32 %v2725_v10, %v2715_v40  ;;  %v2749_v31 = vpop.permute.xlu1 %2748  ;;  %v2789_v44 = vpack.c.bf16 %v2783_v34, %v2781_v27  ;;  %v2788_v48 = vpack.c.bf16 %v2782_v49, %v2780_v2 }
 0x6d7   : > { %v2738_v62 = vpack.c.bf16 %v2734_v0, %v2732_v9  ;;  %3229 = vmatpush1.bf16.msra.mxu1 %v2736_v47  ;;  %4090 = vmatpush1.bf16.msra.mxu0 %v2736_v47  ;;  %v2751_v39 = vpop.permute.xlu0 %2750  ;;  %v2739_v54 = vpack.c.bf16 %v2735_v24, %v2733_v45 }
 0x6d9   : > { %v2757_v38 = vpop.permute.xlu1 %2756  ;;  %3230 = vmatprep.subr.bf16.mxu1 %v2739_v54  ;;  %4091 = vmatprep.subr.bf16.mxu0 %v2739_v54 }
 0x6da   : > { %v2762_v4 = vsel %vm717_vm11, %v2749_v31, %v2757_v38  ;;  %v2766_v56 = vsel %vm717_vm11, %v2757_v38, %v2749_v31  ;;  %v3898_v31 = vcombine.high %v6902_v57, %v6902_v57 }
 0x6db   : > { %3231 = vmatpush1.bf16.msra.mxu1 %v2738_v62  ;;  %4092 = vmatpush1.bf16.msra.mxu0 %v2738_v62  ;;  %v2759_v61 = vpop.permute.xlu0 %2758  ;;  %v2784_v10 = vmul.f32 %v2773_v50, %v2762_v4  ;;  %v2785_v63 = vmul.f32 %v2777_v5, %v2766_v56 }
 0x6dc   : > { %3232 = vmatprep.subr.bf16.mxu1 %v2789_v44  ;;  %4093 = vmatprep.subr.bf16.mxu0 %v2789_v44  ;;  %v2763_v43 = vsel %vm717_vm11, %v2751_v39, %v2759_v61  ;;  %v2767_v58 = vsel %vm717_vm11, %v2759_v61, %v2751_v39 }
 0x6dd   : > { %v2786_v23 = vmul.f32 %v2773_v50, %v2763_v43  ;;  %v2787_v22 = vmul.f32 %v2777_v5, %v2767_v58  ;;  %v7393_v50 = vrot.slane %v3898_v31, %v6713_v11 }
 0x6df   : > { %v2790_v19 = vpack.c.bf16 %v2786_v23, %v2784_v10  ;;  %3233 = vmatpush1.bf16.msra.mxu1 %v2788_v48  ;;  %4094 = vmatpush1.bf16.msra.mxu0 %v2788_v48  ;;  %v2791_v36 = vpack.c.bf16 %v2787_v22, %v2785_v63  ;;  %v3914_v41 = vcombine.high %v7393_v50, %v7393_v50  ;;  %v3307_v10 = vld [vmem:[#allocation6] ss:$8 sm:$0x3] }
 0x6e0   : > { %v7497_v23 = vrot.slane %v3307_v10, %v5271_v15  ;;  %v7500_v22 = vrot.slane %v3307_v10, %v5274_v16  ;;  %v3411_v10 = vld [vmem:[#allocation6 + $0x2] ss:$8 sm:$0x3] }
 0x6e1   : > { %3234 = vmatprep.subr.bf16.mxu1 %v2791_v36  ;;  %4095 = vmatprep.subr.bf16.mxu0 %v2791_v36 }
 0x6e2   : > { %4099 = vmatprep.mubr.bf16.mxu0 %v3914_v41 }
 0x6e3   : > { %3235 = vmatpush1.bf16.msra.mxu1 %v2790_v19  ;;  %4096 = vmatpush1.bf16.msra.mxu0 %v2790_v19 }
 0x6e6   : > { %3239 = vmatmul.mubr.bf16.vlgmr.msra.gmra.mrb[24].mxu1 %v4375_v32  ;;  %v7509_v32 = vld [vmem:[%s8077_s18 + $0x10] sm:$0x3f] }
 0x6e7   : > { %4386 = vmatprep.mubr.msk.bf16.mxu1 %vm3040_vm12, %v4384_v35 }
 0x6ea   : > { %v2945_v53 = vpop.permute.xlu1 %2944 }
 0x6ec   : > { %v2950_v33 = vpop.permute.xlu0 %2949 }
 0x6ee   : > { %3249 = vmatmul.mubr.bf16.gmra.mrb[28].mxu1 %v4383_v13  ;;  %v2955_v20 = vpop.permute.xlu1 %2954 }
 0x6f0   : > { %v2960_v52 = vpop.permute.xlu0 %2959 }
 0x7b9   : > { %v3240_v55 = vpop.f32.mrb[24].mxu1 }
 0x7ba   : > { %v4449_v3 = vadd.f32 %v3240_v55, %v2945_v53  ;;  %v3242_v26 = vpop.f32.mrb[25].mxu1 }
 0x7bb   : > { %v3244_v6 = vpop.f32.mrb[26].mxu1  ;;  %v4450_v1 = vadd.f32 %v3242_v26, %v2945_v53 }
 0x7bc   : > { %vm3259_vm13 = vcmp.ge.f32.partialorder %v4449_v3, 0.0  ;;  %v3267_v18 = vmul.f32 0.2, %v4449_v3  ;;  %v4451_v14 = vadd.f32 %v3244_v6, %v2950_v33  ;;  %v3246_v12 = vpop.f32.mrb[27].mxu1  ;;  %v7523_v6 = vrot.slane %v7509_v32, %v6713_v11 }
 0x7bd   : > { %v4452_v5 = vadd.f32 %v3246_v12, %v2950_v33  ;;  %v3268_v37 = vmul.f32 0.2, %v4450_v1  ;;  %vm3260_vm15 = vcmp.ge.f32.partialorder %v4450_v1, 0.0 }
 0x7be   : > { %v7330_v28 = vsel %vm3259_vm13, %v4449_v3, %v3267_v18  ;;  %vm3261_vm14 = vcmp.ge.f32.partialorder %v4451_v14, 0.0  ;;  %v3269_v59 = vmul.f32 0.2, %v4451_v14 }
 0x7bf   : > { %3283 = vrot.lane.b32.xlu1 %v7330_v28, %s8140_s15  ;;  %v3270_v47 = vmul.f32 0.2, %v4452_v5  ;;  %vm3262_vm0 = vcmp.ge.f32.partialorder %v4452_v5, 0.0  ;;  %v7354_v9 = vsel %vm3260_vm15, %v4450_v1, %v3268_v37  ;;  %v3523_v37 = vld [vmem:[#allocation6 + $0x5] ss:$8 sm:$0x3] }
 0x7c0   : > { %v7334_v29 = vsel %vm3261_vm14, %v4451_v14, %v3269_v59 }
 0x7c1   : > { %v3250_v7 = vpop.f32.mrb[28].mxu1  ;;  %3285 = vrot.lane.b32.xlu0 %v7334_v29, %s8140_s15  ;;  %v7358_v42 = vsel %vm3262_vm0, %v4452_v5, %v3270_v47 }
 0x7c2   : > { %v3252_v30 = vpop.f32.mrb[29].mxu1  ;;  %v4453_v45 = vadd.f32 %v3250_v7, %v2955_v20  ;;  %v7527_v7 = vld [vmem:[#allocation6 + $0x3] ss:$8 sm:$0x3] }
 0x7c3   : > { %v3254_v25 = vpop.f32.mrb[30].mxu1  ;;  %3335 = vrot.lane.b32.xlu1 %v7330_v28, %s8138_s6  ;;  %v4454_v27 = vadd.f32 %v3252_v30, %v2955_v20  ;;  %v3930_v30 = vcombine.high %v7523_v6, %v7523_v6 }
 0x7c4   : > { %v3256_v51 = vpop.f32.mrb[31].mxu1  ;;  %v4455_v40 = vadd.f32 %v3254_v25, %v2960_v52  ;;  %v3271_v60 = vmul.f32 0.2, %v4453_v45  ;;  %vm3263_vm7 = vcmp.ge.f32.partialorder %v4453_v45, 0.0 }
 0x7c5   : > { %3337 = vrot.lane.b32.xlu0 %v7334_v29, %s8138_s6  ;;  %v4456_v62 = vadd.f32 %v3256_v51, %v2960_v52  ;;  %v3272_v39 = vmul.f32 0.2, %v4454_v27  ;;  %vm3264_vm12 = vcmp.ge.f32.partialorder %v4454_v27, 0.0  ;;  %v7535_v51 = vrot.slane %v7527_v7, %v5271_v15 }
 0x7c6   : > { %v3273_v21 = vmul.f32 0.2, %v4455_v40  ;;  %vm3265_vm8 = vcmp.ge.f32.partialorder %v4455_v40, 0.0  ;;  %v7378_v0 = vsel %vm3263_vm7, %v4453_v45, %v3271_v60  ;;  %v7560_v60 = vrot.slane %v3523_v37, %v5274_v16 }
 0x7c7   : > { %3387 = vrot.lane.b32.xlu1 %v7330_v28, %s8063_s26  ;;  %v3274_v57 = vmul.f32 0.2, %v4456_v62  ;;  %vm3266_vm13 = vcmp.ge.f32.partialorder %v4456_v62, 0.0  ;;  %v7405_v54 = vsel %vm3264_vm12, %v4454_v27, %v3272_v39 }
 0x7c8   : > { %v7382_v24 = vsel %vm3265_vm8, %v4455_v40, %v3273_v21  ;;  %v7557_v40 = vrot.slane %v3523_v37, %v5271_v15 }
 0x7c9   : > { %3389 = vrot.lane.b32.xlu0 %v7334_v29, %s8063_s26  ;;  %v7409_v34 = vsel %vm3266_vm13, %v4456_v62, %v3274_v57 }
 0x7cb   : > { %3439 = vrot.lane.b32.xlu1 %v7330_v28, %s8064_s30 }
 0x7cd   : > { %3441 = vrot.lane.b32.xlu0 %v7334_v29, %s8064_s30 }
 0x7cf   : > { %3499 = vrot.lane.b32.xlu1 %v7330_v28, %s8008_s17 }
 0x7d1   : > { %3501 = vrot.lane.b32.xlu0 %v7334_v29, %s8008_s17 }
 0x7d3   : > { %3291 = vrot.lane.b32.xlu1 %v7354_v9, %s8140_s15 }
 0x7d5   : > { %3293 = vrot.lane.b32.xlu0 %v7358_v42, %s8140_s15 }
 0x7d7   : > { %3343 = vrot.lane.b32.xlu1 %v7354_v9, %s8138_s6 }
 0x7d9   : > { %3345 = vrot.lane.b32.xlu0 %v7358_v42, %s8138_s6 }
 0x7db   : > { %3395 = vrot.lane.b32.xlu1 %v7354_v9, %s8063_s26 }
 0x7dd   : > { %3397 = vrot.lane.b32.xlu0 %v7358_v42, %s8063_s26 }
 0x7df   : > { %3447 = vrot.lane.b32.xlu1 %v7354_v9, %s8064_s30 }
 0x7e1   : > { %3449 = vrot.lane.b32.xlu0 %v7358_v42, %s8064_s30 }
 0x7e3   : > { %3507 = vrot.lane.b32.xlu1 %v7354_v9, %s8008_s17 }
 0x7e5   : > { %3509 = vrot.lane.b32.xlu0 %v7358_v42, %s8008_s17 }
 0x7e7   : > { %3287 = vrot.lane.b32.xlu1 %v7378_v0, %s8140_s15 }
 0x7e9   : > { %3289 = vrot.lane.b32.xlu0 %v7382_v24, %s8140_s15 }
 0x7eb   : > { %3339 = vrot.lane.b32.xlu1 %v7378_v0, %s8138_s6 }
 0x7ed   : > { %3341 = vrot.lane.b32.xlu0 %v7382_v24, %s8138_s6 }
 0x7ef   : > { %3391 = vrot.lane.b32.xlu1 %v7378_v0, %s8063_s26 }
 0x7f1   : > { %3393 = vrot.lane.b32.xlu0 %v7382_v24, %s8063_s26 }
 0x7f3   : > { %3443 = vrot.lane.b32.xlu1 %v7378_v0, %s8064_s30 }
 0x7f5   : > { %3445 = vrot.lane.b32.xlu0 %v7382_v24, %s8064_s30 }
 0x7f7   : > { %3295 = vrot.lane.b32.xlu1 %v7405_v54, %s8140_s15 }
 0x7f9   : > { %3297 = vrot.lane.b32.xlu0 %v7409_v34, %s8140_s15 }
 0x7fb   : > { %3503 = vrot.lane.b32.xlu1 %v7378_v0, %s8008_s17 }
 0x7fd   : > { %3505 = vrot.lane.b32.xlu0 %v7382_v24, %s8008_s17 }
 0x7ff   : > { %3347 = vrot.lane.b32.xlu1 %v7405_v54, %s8138_s6 }
 0x801   : > { %3349 = vrot.lane.b32.xlu0 %v7409_v34, %s8138_s6  ;;  %s8147_s6 = sshll.u32 %s5190_s1, 3 }
 0x802   : > { %s487_s15 = scalar_lea.vmem [#allocation12], %s8147_s6 }
 0x803   : > { %3399 = vrot.lane.b32.xlu1 %v7405_v54, %s8063_s26  ;;  %s4214_s3 = sshll.u32 %s487_s15, 4  ;;  %s7797_s3 = int_to_ptr.vmem [resolvable:$true] %s4214_s3 }
 0x804   : > { %s4809_s28 = scalar_lea.vmem %s7797_s3, 128 }
 0x805   : > { %3553 = vrot.lane.b32.xlu0 %v7334_v29, %s8009_s12  ;;  %p4810_p6 = scmp.ne.s32.totalorder %s7797_s3, %s4809_s28 }
 0x807   : > { %3451 = vrot.lane.b32.xlu1 %v7405_v54, %s8064_s30  ;;  %p4811_p7 = pnand %p4810_p6, %p8150_p5 }
 0x809   : > { %3401 = vrot.lane.b32.xlu0 %v7409_v34, %s8063_s26  ;;  %p4812_p9 = pneg %p4811_p7 }
 0x80b   : > { %3511 = vrot.lane.b32.xlu1 %v7405_v54, %s8008_s17 }
 0x80d   : > { %3561 = vrot.lane.b32.xlu0 %v7358_v42, %s8009_s12 }
 0x80f   : > { %3551 = vrot.lane.b32.xlu1 %v7330_v28, %s8009_s12 }
 0x811   : > { %3453 = vrot.lane.b32.xlu0 %v7409_v34, %s8064_s30  ;;  %s4394_s30 = sshll.u32 %s4995_s27, 7  ;;  %s4908_s27 = smov [#allocation12]  }
 0x812   : > { %s7795_s2 = scalar_lea.hbm %s8149_s13, %s4394_s30 }
 0x813   : > { %3559 = vrot.lane.b32.xlu1 %v7354_v9, %s8009_s12 }
 0x815   : > { %3557 = vrot.lane.b32.xlu0 %v7382_v24, %s8009_s12 }
 0x817   : > { %3555 = vrot.lane.b32.xlu1 %v7378_v0, %s8009_s12 }
 0x819   : > { %3605 = vrot.lane.b32.xlu0 %v7334_v29, %s8010_s19 }
 0x81b   : > { %3563 = vrot.lane.b32.xlu1 %v7405_v54, %s8009_s12 }
 0x81d   : > { %3613 = vrot.lane.b32.xlu0 %v7358_v42, %s8010_s19 }
 0x81f   : > { %3603 = vrot.lane.b32.xlu1 %v7330_v28, %s8010_s19 }
 0x821   : > { %3513 = vrot.lane.b32.xlu0 %v7409_v34, %s8008_s17  ;;  %s4813_s17 = sshll.u32 %s4908_s27, 4  ;;  %s4814_s17 = int_to_ptr.vmem [resolvable:$false] %s4813_s17 }
 0x822   : > { %p4816_p12 = scmp.lt.s32.totalorder %s7797_s3, %s4814_s17 }
 0x823   : > { %3611 = vrot.lane.b32.xlu1 %v7354_v9, %s8010_s19 }
 0x825   : > { %3609 = vrot.lane.b32.xlu0 %v7382_v24, %s8010_s19 }
 0x827   : > { %3607 = vrot.lane.b32.xlu1 %v7378_v0, %s8010_s19 }
 0x829   : > { %3565 = vrot.lane.b32.xlu0 %v7409_v34, %s8009_s12  ;;  %s4815_s12 = scalar_lea.vmem %s4814_s17, 256 }
 0x82a   : > { %p4817_p3 = scmp.lt.s32.totalorder %s4815_s12, %s4809_s28 }
 0x82b   : > { %3615 = vrot.lane.b32.xlu1 %v7405_v54, %s8010_s19 }
 0x82c   : > { %p4818_p13 = por %p4817_p3, %p4816_p12 }
 0x82d   : > { %3657 = vrot.lane.b32.xlu0 %v7334_v29, %s8011_s29 }
 0x82e   : > { %p4819_p0 = pnand %p4818_p13, %p4812_p9 }
 0x82f   : > { %3655 = vrot.lane.b32.xlu1 %v7330_v28, %s8011_s29 }
 0x831   : > { %v3284_v2 = vpop.permute.xlu1 %3283  ;;  %3617 = vrot.lane.b32.xlu0 %v7409_v34, %s8010_s19  ;;  %s8143_s19 = sld [smem:[#allocation87_spill]] }
 0x833   : > { %3663 = vrot.lane.b32.xlu1 %v7354_v9, %s8011_s29  ;;  %v3286_v38 = vpop.permute.xlu0 %3285 }
 0x835   : > { %v7471_v49 = vpop.permute.xlu1 %3335  ;;  %3665 = vrot.lane.b32.xlu0 %v7358_v42, %s8011_s29 }
 0x837   : > { %3659 = vrot.lane.b32.xlu1 %v7378_v0, %s8011_s29  ;;  %v7477_v4 = vpop.permute.xlu0 %3337  ;;  %v3872_v61 = vld [vmem:[%s8143_s19] sm:$0xf] }
 0x839   : > { %v7479_v56 = vpop.permute.xlu1 %3387  ;;  %3661 = vrot.lane.b32.xlu0 %v7382_v24, %s8011_s29 }
 0x83b   : > { %3667 = vrot.lane.b32.xlu1 %v7405_v54, %s8011_s29  ;;  %v7485_v44 = vpop.permute.xlu0 %3389 }
 0x83d   : > { %v7490_v48 = vpop.permute.xlu1 %3439  ;;  %3669 = vrot.lane.b32.xlu0 %v7409_v34, %s8011_s29 }
 0x83f   : > { %3875 = vperm.xlu1 %4625, %v3872_v61   ;;  %v7494_v43 = vpop.permute.xlu0 %3441 }
 0x841   : > { %v3500_v58 = vpop.permute.xlu1 %3499 }
 0x843   : > { %v3502_v63 = vpop.permute.xlu0 %3501 }
 0x845   : > { %v3292_v19 = vpop.permute.xlu1 %3291 }
 0x846   : > { %v3299_v36 = vsel %vm504_vm2, %v3284_v2, %v3292_v19  ;;  %v3303_v8 = vsel %vm504_vm2, %v3292_v19, %v3284_v2 }
 0x847   : > { %v3294_v46 = vpop.permute.xlu0 %3293  ;;  %v3319_v53 = vmul.f32 %v7497_v23, %v3303_v8  ;;  %v3320_v55 = vmul.f32 %v7500_v22, %v3299_v36 }
 0x848   : > { %v3300_v35 = vsel %vm504_vm2, %v3286_v38, %v3294_v46  ;;  %v3304_v13 = vsel %vm504_vm2, %v3294_v46, %v3286_v38 }
 0x849   : > { %v3321_v3 = vmul.f32 %v7497_v23, %v3304_v13  ;;  %v3322_v26 = vmul.f32 %v7500_v22, %v3300_v35  ;;  %v7519_v33 = vpop.permute.xlu1 %3343 }
 0x84a   : > { %v3351_v37 = vsel %vm533_vm3, %v7471_v49, %v7519_v33 }
 0x84b   : > { %v3327_v18 = vpack.c.bf16 %v3321_v3, %v3319_v53  ;;  %v3346_v14 = vpop.permute.xlu0 %3345  ;;  %v3328_v12 = vpack.c.bf16 %v3322_v26, %v3320_v55  ;;  %v3359_v53 = vld [vmem:[#allocation6 + $0x1] ss:$8 sm:$0x3] }
 0x84c   : > { %v3352_v3 = vsel %vm533_vm3, %v7477_v4, %v3346_v14 }
 0x84d   : > { %v7525_v59 = vpop.permute.xlu1 %3395  ;;  %4097 = vmatprep.subr.bf16.mxu0 %v3328_v12 }
 0x84e   : > { %4098 = vmatpush1.bf16.msra.mxu0 %v3327_v18  ;;  %v3368_v18 = vrot.slane %v3359_v53, %v5274_v16 }
 0x84f   : > { %v7531_v25 = vpop.permute.xlu0 %3397 }
 0x851   : > { %v7537_v1 = vpop.permute.xlu1 %3447  ;;  %4100 = vmatmul.mubr.bf16.vlgmr.msra.gmra.mrb[8].mxu0 %v7393_v50 }
 0x852   : > { %v3459_v5 = vsel %vm593_vm5, %v7537_v1, %v7490_v48  ;;  %4140 = vmatprep.mubr.bf16.mxu0 %v3930_v30 }
 0x853   : > { %v7544_v47 = vpop.permute.xlu0 %3449  ;;  %v7551_v45 = vmul.f32 %v7535_v51, %v3459_v5  ;;  %v3364_v5 = vrot.slane %v3359_v53, %v5271_v15 }
 0x854   : > { %v3460_v20 = vsel %vm593_vm5, %v7544_v47, %v7494_v43 }
 0x855   : > { %v7554_v52 = vmul.f32 %v7535_v51, %v3460_v20  ;;  %v3508_v21 = vpop.permute.xlu1 %3507 }
 0x856   : > { %v3515_v31 = vsel %vm627_vm6, %v3500_v58, %v3508_v21  ;;  %v3519_v50 = vsel %vm627_vm6, %v3508_v21, %v3500_v58  ;;  %v3356_v21 = vsel %vm533_vm3, %v3346_v14, %v7477_v4  ;;  %v3355_v4 = vsel %vm533_vm3, %v7519_v33, %v7471_v49 }
 0x857   : > { %v3483_v27 = vpack.c.bf16 %v7554_v52, %v7551_v45  ;;  %v3510_v41 = vpop.permute.xlu0 %3509  ;;  %v7573_v57 = vmul.f32 %v7557_v40, %v3515_v31  ;;  %v7576_v2 = vmul.f32 %v7560_v60, %v3519_v50  ;;  %v3374_v31 = vmul.f32 %v3368_v18, %v3352_v3 }
 0x858   : > { %v3516_v62 = vsel %vm627_vm6, %v3502_v63, %v3510_v41  ;;  %v3520_v39 = vsel %vm627_vm6, %v3510_v41, %v3502_v63  ;;  %v3372_v14 = vmul.f32 %v3368_v18, %v3351_v37  ;;  %v3373_v3 = vmul.f32 %v3364_v5, %v3356_v21 }
 0x859   : > { %v7579_v38 = vmul.f32 %v7557_v40, %v3516_v62  ;;  %v7582_v61 = vmul.f32 %v7560_v60, %v3520_v39  ;;  %v3288_v58 = vpop.permute.xlu1 %3287  ;;  %v3403_v21 = vsel %vm563_vm4, %v7479_v56, %v7525_v59 }
 0x85b   : > { %v3290_v19 = vpop.permute.xlu0 %3289 }
 0x85d   : > { %v3340_v36 = vpop.permute.xlu1 %3339 }
 0x85f   : > { %v3342_v8 = vpop.permute.xlu0 %3341 }
 0x861   : > { %v7588_v46 = vpop.permute.xlu1 %3391 }
 0x863   : > { %v7590_v35 = vpop.permute.xlu0 %3393 }
 0x865   : > { %v7592_v13 = vpop.permute.xlu1 %3443 }
 0x867   : > { %v7594_v55 = vpop.permute.xlu0 %3445 }
 0x869   : > { %v3296_v26 = vpop.permute.xlu1 %3295 }
 0x86a   : > { %v3301_v12 = vsel %vm504_vm2, %v3288_v58, %v3296_v26  ;;  %v3305_v30 = vsel %vm504_vm2, %v3296_v26, %v3288_v58 }
 0x86b   : > { %v3298_v20 = vpop.permute.xlu0 %3297  ;;  %v3323_v62 = vmul.f32 %v7497_v23, %v3305_v30  ;;  %v3324_v39 = vmul.f32 %v7500_v22, %v3301_v12  ;;  %v3380_v12 = vpack.c.bf16 %v3374_v31, %v3372_v14  ;;  %v3408_v31 = vsel %vm563_vm4, %v7531_v25, %v7485_v44 }
 0x86c   : > { %v3302_v50 = vsel %vm504_vm2, %v3290_v19, %v3298_v20  ;;  %v3306_v41 = vsel %vm504_vm2, %v3298_v20, %v3290_v19  ;;  %v3371_v20 = vmul.f32 %v3364_v5, %v3355_v4 }
 0x86d   : > { %v3325_v58 = vmul.f32 %v7497_v23, %v3306_v41  ;;  %v3326_v53 = vmul.f32 %v7500_v22, %v3302_v50  ;;  %v7620_v26 = vpop.permute.xlu1 %3503  ;;  %v3404_v23 = vsel %vm563_vm4, %v7485_v44, %v7531_v25  ;;  %v3420_v50 = vrot.slane %v3411_v10, %v5274_v16 }
 0x86e   : > { %v3379_v37 = vpack.c.bf16 %v3373_v3, %v3371_v20  ;;  %v3416_v3 = vrot.slane %v3411_v10, %v5271_v15  ;;  %v3407_v44 = vsel %vm563_vm4, %v7525_v59, %v7479_v56 }
 0x86f   : > { %v3329_v63 = vpack.c.bf16 %v3325_v58, %v3323_v62  ;;  %v7626_v19 = vpop.permute.xlu0 %3505  ;;  %v3330_v30 = vpack.c.bf16 %v3326_v53, %v3324_v39  ;;  %v3426_v62 = vmul.f32 %v3420_v50, %v3404_v23  ;;  %v3424_v25 = vmul.f32 %v3420_v50, %v3403_v21 }
 0x871   : > { %v3348_v22 = vpop.permute.xlu1 %3347  ;;  %4108 = vmatprep.subr.bf16.mxu0 %v3330_v30  ;;  %v3432_v10 = vpack.c.bf16 %v3426_v62, %v3424_v25 }
 0x872   : > { %v3353_v49 = vsel %vm533_vm3, %v3340_v36, %v3348_v22  ;;  %v3357_v33 = vsel %vm533_vm3, %v3348_v22, %v3340_v36  ;;  %4109 = vmatpush1.bf16.msra.mxu0 %v3329_v63  ;;  %v3425_v22 = vmul.f32 %v3416_v3, %v3408_v31 }
 0x873   : > { %4110 = vmatprep.subr.bf16.mxu0 %v3380_v12  ;;  %v3350_v41 = vpop.permute.xlu0 %3349  ;;  %v3375_v36 = vmul.f32 %v3364_v5, %v3357_v33  ;;  %v3376_v58 = vmul.f32 %v3368_v18, %v3353_v49  ;;  %v3472_v12 = vrot.slane %v7527_v7, %v5274_v16 }
 0x874   : > { %v3354_v39 = vsel %vm533_vm3, %v3342_v8, %v3350_v41  ;;  %v3358_v63 = vsel %vm533_vm3, %v3350_v41, %v3342_v8  ;;  %v3456_v8 = vsel %vm593_vm5, %v7494_v43, %v7544_v47  ;;  %v3455_v43 = vsel %vm593_vm5, %v7490_v48, %v7537_v1 }
 0x875   : > { %v3377_v53 = vmul.f32 %v3364_v5, %v3358_v63  ;;  %v3378_v4 = vmul.f32 %v3368_v18, %v3354_v39  ;;  %v3400_v14 = vpop.permute.xlu1 %3399  ;;  %v3423_v5 = vmul.f32 %v3416_v3, %v3407_v44  ;;  %v3478_v33 = vmul.f32 %v3472_v12, %v3456_v8 }
 0x876   : > { %4111 = vmatpush1.bf16.msra.mxu0 %v3379_v37  ;;  %v3405_v56 = vsel %vm563_vm4, %v7588_v46, %v3400_v14  ;;  %v3409_v59 = vsel %vm563_vm4, %v3400_v14, %v7588_v46  ;;  %v3476_v39 = vmul.f32 %v3472_v12, %v3455_v43 }
 0x877   : > { %v3381_v30 = vpack.c.bf16 %v3377_v53, %v3375_v36  ;;  %v7654_v20 = vpop.permute.xlu0 %3553  ;;  %v3382_v23 = vpack.c.bf16 %v3378_v4, %v3376_v58  ;;  %v3431_v49 = vpack.c.bf16 %v3425_v22, %v3423_v5  ;;  %v3427_v21 = vmul.f32 %v3416_v3, %v3409_v59 }
 0x878   : > { %v3428_v46 = vmul.f32 %v3420_v50, %v3405_v56  ;;  %v3484_v58 = vpack.c.bf16 %v3478_v33, %v3476_v39  ;;  %v8144_v59 = vpack.c.bf16 %v7582_v61, %v7576_v2 }
 0x879   : > { %v3452_v18 = vpop.permute.xlu1 %3451  ;;  %4112 = vmatprep.subr.bf16.mxu0 %v3382_v23 }
 0x87a   : > { %4113 = vmatpush1.bf16.msra.mxu0 %v3381_v30  ;;  %v3457_v53 = vsel %vm593_vm5, %v7592_v13, %v3452_v18 }
 0x87b   : > { %4114 = vmatprep.subr.bf16.mxu0 %v3432_v10  ;;  %v3402_v47 = vpop.permute.xlu0 %3401  ;;  %v3480_v44 = vmul.f32 %v3472_v12, %v3457_v53  ;;  %v3492_v10 = vpack.c.bf16 %v7358_v42, %v7354_v9  ;;  %v3493_v9 = vpack.c.bf16 %v7382_v24, %v7378_v0 }
 0x87c   : > { %v3406_v7 = vsel %vm563_vm4, %v7590_v35, %v3402_v47  ;;  %v3410_v37 = vsel %vm563_vm4, %v3402_v47, %v7590_v35  ;;  %v3461_v35 = vsel %vm593_vm5, %v3452_v18, %v7592_v13 }
 0x87d   : > { %v3429_v41 = vmul.f32 %v3416_v3, %v3410_v37  ;;  %v3430_v31 = vmul.f32 %v3420_v50, %v3406_v7  ;;  %v3512_v62 = vpop.permute.xlu1 %3511  ;;  %v3479_v3 = vmul.f32 %v7535_v51, %v3461_v35 }
 0x87e   : > { %4115 = vmatpush1.bf16.msra.mxu0 %v3431_v49  ;;  %v3517_v52 = vsel %vm627_vm6, %v7620_v26, %v3512_v62 }
 0x87f   : > { %v3433_v48 = vpack.c.bf16 %v3429_v41, %v3427_v21  ;;  %v3562_v1 = vpop.permute.xlu0 %3561  ;;  %v3434_v63 = vpack.c.bf16 %v3430_v31, %v3428_v46  ;;  %v8145_v21 = vpack.c.bf16 %v7579_v38, %v7573_v57 }
 0x880   : > { %v3572_v24 = vsel %vm657_vm9, %v3562_v1, %v7654_v20  ;;  %v3568_v37 = vsel %vm657_vm9, %v7654_v20, %v3562_v1 }
 0x881   : > { %v3552_v36 = vpop.permute.xlu1 %3551  ;;  %4116 = vmatprep.subr.bf16.mxu0 %v3434_v63 }
 0x882   : > { %4117 = vmatpush1.bf16.msra.mxu0 %v3433_v48 }
 0x883   : > { %4118 = vmatprep.subr.bf16.mxu0 %v3484_v58  ;;  %v3454_v50 = vpop.permute.xlu0 %3453 }
 0x884   : > { %v3458_v4 = vsel %vm593_vm5, %v7594_v55, %v3454_v50  ;;  %v3462_v14 = vsel %vm593_vm5, %v3454_v50, %v7594_v55 }
 0x885   : > { %v3481_v25 = vmul.f32 %v7535_v51, %v3462_v14  ;;  %v3482_v30 = vmul.f32 %v3472_v12, %v3458_v4  ;;  %v3560_v23 = vpop.permute.xlu1 %3559  ;;  %v3491_v51 = vpack.c.bf16 %v7334_v29, %v7330_v28  ;;  %v3494_v12 = vpack.c.bf16 %v7409_v34, %v7405_v54 }
 0x886   : > { %4119 = vmatpush1.bf16.msra.mxu0 %v3483_v27  ;;  %v3575_v27 = vld [vmem:[#allocation6 + $0x6] ss:$8 sm:$0x3]  ;;  %v3521_v28 = vsel %vm627_vm6, %v3512_v62, %v7620_v26  ;;  %v3571_v29 = vsel %vm657_vm9, %v3560_v23, %v3552_v36  ;;  %v3539_v54 = vmul.f32 %v7557_v40, %v3517_v52  ;;  %v3567_v26 = vsel %vm657_vm9, %v3552_v36, %v3560_v23 }
 0x887   : > { %v3485_v13 = vpack.c.bf16 %v3481_v25, %v3479_v3  ;;  %v3558_v22 = vpop.permute.xlu0 %3557  ;;  %v3486_v8 = vpack.c.bf16 %v3482_v30, %v3480_v44  ;;  %v3580_v34 = vrot.slane %v3575_v27, %v5271_v15  ;;  %v3584_v56 = vrot.slane %v3575_v27, %v5274_v16 }
 0x888   : > { %v3540_v49 = vmul.f32 %v7560_v60, %v3521_v28 }
 0x889   : > { %v3556_v18 = vpop.permute.xlu1 %3555  ;;  %4120 = vmatprep.subr.bf16.mxu0 %v3486_v8  ;;  %v3588_v2 = vmul.f32 %v3584_v56, %v3571_v29  ;;  %v3590_v46 = vmul.f32 %v3584_v56, %v3572_v24  ;;  %v3587_v41 = vmul.f32 %v3580_v34, %v3567_v26  ;;  %v3589_v48 = vmul.f32 %v3580_v34, %v3568_v37 }
 0x88a   : > { %4121 = vmatpush1.bf16.msra.mxu0 %v3485_v13 }
 0x88b   : > { %4122 = vmatprep.subr.bf16.mxu0 %v3492_v10  ;;  %v3606_v55 = vpop.permute.xlu0 %3605  ;;  %v3596_v20 = vpack.c.bf16 %v3590_v46, %v3588_v2  ;;  %v3595_v38 = vpack.c.bf16 %v3589_v48, %v3587_v41 }
 0x88d   : > { %v3564_v5 = vpop.permute.xlu1 %3563 }
 0x88e   : > { %4123 = vmatpush1.bf16.msra.mxu0 %v3491_v51  ;;  %v3569_v39 = vsel %vm657_vm9, %v3556_v18, %v3564_v5 }
 0x88f   : > { %4124 = vmatprep.subr.bf16.mxu0 %v3494_v12  ;;  %v3614_v45 = vpop.permute.xlu0 %3613  ;;  %v3591_v1 = vmul.f32 %v3580_v34, %v3569_v39  ;;  %v3679_v12 = vld [vmem:[#allocation6 + $0x10] ss:$8 sm:$0x3] }
 0x890   : > { %v3624_v35 = vsel %vm687_vm10, %v3614_v45, %v3606_v55  ;;  %v3620_v13 = vsel %vm687_vm10, %v3606_v55, %v3614_v45  ;;  %v3684_v55 = vrot.slane %v3679_v12, %v5271_v15 }
 0x891   : > { %v3604_v42 = vpop.permute.xlu1 %3603 }
 0x892   : > { %4125 = vmatpush1.bf16.msra.mxu0 %v3493_v9 }
 0x893   : > { %4126 = vmatprep.subr.bf16.mxu0 %v8144_v59  ;;  %v3514_v0 = vpop.permute.xlu0 %3513 }
 0x894   : > { %v3518_v43 = vsel %vm627_vm6, %v7626_v19, %v3514_v0  ;;  %v3522_v47 = vsel %vm627_vm6, %v3514_v0, %v7626_v19 }
 0x895   : > { %v3541_v61 = vmul.f32 %v7557_v40, %v3518_v43  ;;  %v3542_v33 = vmul.f32 %v7560_v60, %v3522_v47  ;;  %v3612_v7 = vpop.permute.xlu1 %3611  ;;  %v3627_v40 = vld [vmem:[#allocation6 + $0x7] ss:$8 sm:$0x3]  ;;  %v3573_v60 = vsel %vm657_vm9, %v3564_v5, %v3556_v18 }
 0x896   : > { %4127 = vmatpush1.bf16.msra.mxu0 %v8145_v21  ;;  %v3623_v57 = vsel %vm687_vm10, %v3612_v7, %v3604_v42  ;;  %v3636_v36 = vrot.slane %v3627_v40, %v5274_v16  ;;  %v3592_v53 = vmul.f32 %v3584_v56, %v3573_v60  ;;  %v3619_v14 = vsel %vm687_vm10, %v3604_v42, %v3612_v7 }
 0x897   : > { %v3545_v31 = vpack.c.bf16 %v3541_v61, %v3539_v54  ;;  %v3610_v19 = vpop.permute.xlu0 %3609  ;;  %v3546_v62 = vpack.c.bf16 %v3542_v33, %v3540_v49  ;;  %v3632_v23 = vrot.slane %v3627_v40, %v5271_v15 }
 0x898   : > { %v3640_v3 = vmul.f32 %v3636_v36, %v3623_v57  ;;  %v3642_v8 = vmul.f32 %v3636_v36, %v3624_v35  ;;  %v3915_v35 = vcombine.high %v7509_v32, %v7509_v32  ;;  %v4666_v32 = vld [vmem:[%s5196_s25] sm:$0xff]  ;;  %s4200_s25 = scalar_lea.sflag [#allocation5], %s5190_s1 }
 0x899   : > { %v3608_v63 = vpop.permute.xlu1 %3607  ;;  %4128 = vmatprep.subr.bf16.mxu0 %v3546_v62  ;;  %v3639_v5 = vmul.f32 %v3632_v23, %v3619_v14  ;;  %v3641_v27 = vmul.f32 %v3632_v23, %v3620_v13 }
 0x89a   : > { %4129 = vmatpush1.bf16.msra.mxu0 %v3545_v31  ;;  %v3648_v52 = vpack.c.bf16 %v3642_v8, %v3640_v3  ;;  %v3929_v17 = vrot.slane %v3915_v35, %v6713_v11  ;;  %v8148_v11 = vld [vmem:[#allocation17_spill] sm:$0xff] }
 0x89b   : > { %4130 = vmatprep.subr.bf16.mxu0 %v3596_v20  ;;  %v3566_v58 = vpop.permute.xlu0 %3565  ;;  %v3647_v45 = vpack.c.bf16 %v3641_v27, %v3639_v5 }
 0x89c   : > { %v3570_v50 = vsel %vm657_vm9, %v3558_v22, %v3566_v58  ;;  %v3574_v4 = vsel %vm657_vm9, %v3566_v58, %v3558_v22 }
 0x89d   : > { %v3593_v44 = vmul.f32 %v3580_v34, %v3570_v50  ;;  %v3594_v25 = vmul.f32 %v3584_v56, %v3574_v4  ;;  %v3616_v30 = vpop.permute.xlu1 %3615  ;;  %v3688_v34 = vrot.slane %v3679_v12, %v5274_v16 }
 0x89e   : > { %4131 = vmatpush1.bf16.msra.mxu0 %v3595_v38  ;;  %v3621_v9 = vsel %vm687_vm10, %v3608_v63, %v3616_v30  ;;  %v3625_v42 = vsel %vm687_vm10, %v3616_v30, %v3608_v63 }
 0x89f   : > { %v3597_v18 = vpack.c.bf16 %v3593_v44, %v3591_v1  ;;  %v3658_v10 = vpop.permute.xlu0 %3657  ;;  %v3598_v51 = vpack.c.bf16 %v3594_v25, %v3592_v53  ;;  %v3643_v56 = vmul.f32 %v3632_v23, %v3621_v9  ;;  %v3644_v59 = vmul.f32 %v3636_v36, %v3625_v42 }
 0x8a1   : > { %v3656_v22 = vpop.permute.xlu1 %3655  ;;  %4132 = vmatprep.subr.bf16.mxu0 %v3598_v51 }
 0x8a2   : > { %4133 = vmatpush1.bf16.msra.mxu0 %v3597_v18 }
 0x8a3   : > { %4134 = vmatprep.subr.bf16.mxu0 %v3648_v52  ;;  %v3618_v28 = vpop.permute.xlu0 %3617 }
 0x8a4   : > { %v3622_v29 = vsel %vm687_vm10, %v3610_v19, %v3618_v28  ;;  %v3626_v54 = vsel %vm687_vm10, %v3618_v28, %v3610_v19 }
 0x8a5   : > { %v3645_v0 = vmul.f32 %v3632_v23, %v3622_v29  ;;  %v3646_v24 = vmul.f32 %v3636_v36, %v3626_v54  ;;  %v3664_v26 = vpop.permute.xlu1 %3663  ;;  %v8146_v36 = vmov 0  }
 0x8a6   : > { %v3671_v43 = vsel %vm717_vm11, %v3656_v22, %v3664_v26  ;;  %v3675_v15 = vsel %vm717_vm11, %v3664_v26, %v3656_v22  ;;  %4135 = vmatpush1.bf16.msra.mxu0 %v3647_v45 }
 0x8a7   : > { %v3649_v47 = vpack.c.bf16 %v3645_v0, %v3643_v56  ;;  %v3666_v49 = vpop.permute.xlu0 %3665  ;;  %v3650_v2 = vpack.c.bf16 %v3646_v24, %v3644_v59  ;;  %v3691_v33 = vmul.f32 %v3684_v55, %v3671_v43  ;;  %v3692_v7 = vmul.f32 %v3688_v34, %v3675_v15 }
 0x8a8   : > { %v3672_v61 = vsel %vm717_vm11, %v3658_v10, %v3666_v49  ;;  %v3676_v16 = vsel %vm717_vm11, %v3666_v49, %v3658_v10 }
 0x8a9   : > { %v3693_v37 = vmul.f32 %v3684_v55, %v3672_v61  ;;  %v3694_v21 = vmul.f32 %v3688_v34, %v3676_v16  ;;  %v3660_v46 = vpop.permute.xlu1 %3659  ;;  %4136 = vmatprep.subr.bf16.mxu0 %v3650_v2 }
 0x8aa   : > { %4137 = vmatpush1.bf16.msra.mxu0 %v3649_v47 }
 0x8ab   : > { %v3699_v41 = vpack.c.bf16 %v3693_v37, %v3691_v33  ;;  %v3662_v31 = vpop.permute.xlu0 %3661  ;;  %v3700_v19 = vpack.c.bf16 %v3694_v21, %v3692_v7 }
 0x8ad   : > { %v3668_v62 = vpop.permute.xlu1 %3667  ;;  %4138 = vmatprep.subr.bf16.mxu0 %v3700_v19 }
 0x8ae   : > { %v3673_v39 = vsel %vm717_vm11, %v3660_v46, %v3668_v62  ;;  %v3677_v40 = vsel %vm717_vm11, %v3668_v62, %v3660_v46  ;;  %4139 = vmatpush1.bf16.msra.mxu0 %v3699_v41 }
 0x8af   : > { %v3670_v48 = vpop.permute.xlu0 %3669  ;;  %v3695_v20 = vmul.f32 %v3684_v55, %v3673_v39  ;;  %v3696_v57 = vmul.f32 %v3688_v34, %v3677_v40 }
 0x8b0   : > { %v3674_v60 = vsel %vm717_vm11, %v3662_v31, %v3670_v48  ;;  %v3678_v63 = vsel %vm717_vm11, %v3670_v48, %v3662_v31 }
 0x8b1   : > { %v3697_v38 = vmul.f32 %v3684_v55, %v3674_v60  ;;  %v3698_v1 = vmul.f32 %v3688_v34, %v3678_v63  ;;  %4141 = vmatmul.mubr.bf16.vlgmr.msra.gmra.mrb[8].mxu0 %v7523_v6 }
 0x8b2   : > { %4181 = vmatprep.mubr.bf16.mxu0 %v8146_v36 }
 0x8b3   : > { %v3701_v58 = vpack.c.bf16 %v3697_v38, %v3695_v20  ;;  %v3702_v53 = vpack.c.bf16 %v3698_v1, %v3696_v57 }
 0x8b5   : > { %4149 = vmatprep.subr.bf16.mxu0 %v3702_v53 }
 0x8b6   : > { %4150 = vmatpush1.bf16.msra.mxu0 %v3701_v58 }
 0x8bd   : > { %4387 = vmatmul.mubr.msk.bf16.vlgmr.msra.gmra.mrb[8].mxu0 %vm805_vm1, %v3929_v17 }
 0x8be   : > { %v3876_v50 = vpop.permute.xlu1 %3875 }
 0x990   : > { %v4183_v4 = vpop.f32.mrb[8].mxu0 }
 0x991   : > { %v4457_v14 = vadd.f32 %v4183_v4, %v3876_v50  ;;  %v4185_v6 = vpop.f32.mrb[9].mxu0 }
 0x992   : > { %v4458_v3 = vadd.f32 %v4185_v6, %v3876_v50  ;;  %v4187_v44 = vpop.f32.mrb[10].mxu0 }
 0x993   : > { %v4190_v25 = vmul.f32 0.2, %v4457_v14  ;;  %v4188_v30 = vpop.f32.mrb[11].mxu0 }
 0x994   : > { %v4191_v23 = vmul.f32 0.2, %v4458_v3 }
 0x995   : > { %v4192_v13 = vadd.f32 %v4666_v32, %v4190_v25 }
 0x996   : > { %v4193_v8 = vadd.f32 %v4191_v23, %v8148_v11 }
 0x998   : > { %v4196_v18 = vcombine.low %v4192_v13, %v4193_v8 }
 0x99a   : > { %4198 = vst [vmem:[%s487_s15] sm:$0xff] %v4196_v18 }
 0x99b   : > { %4822 = shalt.err (!%p4819_p0)
}
 0x99c   : > { %s4823_s1 = scalar_lea.hbm %s7795_s2, 128  ;;  %s4827_s26 = scalar_lea.hbm %s8149_s13, 256 }
 0x99d   : > { %p4824_p2 = scmp.ne.s32.totalorder %s7795_s2, %s4823_s1  ;;  %p4828_p10 = scmp.lt.u32.totalorder %s7795_s2, %s8149_s13 }
 0x99e   : > { %p4829_p11 = scmp.lt.u32.totalorder %s4827_s26, %s4823_s1  ;;  %p4831_p6 = scmp.lt.u32.totalorder %s4823_s1, %s7795_s2 }
 0x99f   : > { %p4825_p8 = pnand %p4824_p2, %p8150_p5 }
 0x9a0   : > { %p4830_p1 = por %p4829_p11, %p4828_p10 }
 0x9a1   : > { %p4826_p4 = pneg %p4825_p8 }
 0x9a2   : > { %p4832_p7 = por %p4831_p6, %p4830_p1 }
 0x9a4   : > { %p4833_p9 = pnand %p4832_p7, %p4826_p4 }
 0x9a6   : > { %4836 = shalt.err (!%p4833_p9)
}
 0x9a7   : > { %4537 = dma.vmem_to_hbm [thread:$0]  (%p8150_p5), %s7797_s3, 128, %s7795_s2, %s4200_s25  }
 0x9a8 PF: > { %s4226_s15 = sand.u32 1, %s4871_s21   ;;  %p8151_p12 = scmp.ne.s32.totalorder %s7981_s16, 0 }
 0x9a9   : > { %p8152_p3 = scmp.ge.s32.totalorder %s4883_s24, 2  ;;  %s4227_s4 = scalar_lea.sflag [#allocation5], %s4226_s15 }
 0x9ab   : > { %p4557_p13 = pnand %p8152_p3, %p8151_p12 }
 0x9ad   : > { %4866 = dma.done.wait (!%p4557_p13), %s4227_s4, 128  }
 0x9ae   : > { %4868 = vsyncadd (!%p4557_p13), %s4227_s4, 4294967168  ;;  %p27_p0 = scmp.ge.s32.totalorder %s5114_s10, 4   ;;  %s8153_s21 = smov %s4875_s22 }
 0x9af   : > { %s8154_s22 = smov %s4879_s23  ;;  %s8155_s23 = smov %s5125_s20 }
 0x9b0   : > { %s8156_s24 = smov %s5114_s10  ;;  %29 = sbr.rel (!%p27_p0) target bundleno = 17 (0x11), region = 136 }
 0x9b7   :  { %4232 = vsyncpa [#allocation4], 1 }
 0x9b8   :  { %4234 = vsyncpa [#allocation4 + $0x1], 1 }
 0x9b9   :  { %4235 = vsyncpa [#allocation7], 1 }
 0x9ba   :  { %4236 = vsyncpa [#allocation10], 1 }
 0x9bb   :  { %4237 = vsyncpa [#allocation5], 1 }
 0x9bc   :  { %4239 = vsyncpa [#allocation5 + $0x1], 1 }

</bundles_post_ra>
